<compile_context>
chip_gen: v6e
topology: v6e:2x2x1
jax: 0.10.0
libtpu: 0.0.40
codegen_flags: <defaults>
</compile_context>

<pallas_src>
import functools

import jax
import jax.numpy as jnp
from jax.experimental import pallas as pl
from jax.experimental.pallas import tpu as pltpu


# -----------------------------------------------------------------------------
# Config (mirrors the `config.encoder` list the PyTorch Encoder consumes).
# (type, activation, in_ch, out_ch, kernel_size, padding, stride)
# -----------------------------------------------------------------------------
class EncoderConfig:
    encoder = [
        ("conv", "leaky", 1, 8, 3, 1, 2),
        ("convlstm", "", 8, 8, 3, 1, 1),
        ("conv", "leaky", 8, 16, 3, 1, 2),
        ("convlstm", "", 16, 16, 3, 1, 1),
    ]


# -----------------------------------------------------------------------------
# Pallas kernels
# -----------------------------------------------------------------------------
def matmul_bn_act_kernel(p_ref, w_ref, scale_ref, bias_ref, o_ref, *, act):
    """conv-as-matmul on im2col patches, fused BatchNorm (inference) + activation."""
    y = jnp.dot(p_ref[...], w_ref[...], preferred_element_type=jnp.float32)
    y = y * scale_ref[...] + bias_ref[...]
    if act == "leaky":
        y = jnp.where(y >= 0.0, y, 0.01 * y)
    elif act == "relu":
        y = jnp.maximum(y, 0.0)
    o_ref[...] = y.astype(o_ref.dtype)


def convlstm_kernel(xg_ref, bigw_ref, o_ref, hxp_ref, cx_ref, *, B, H, W, F, K, pad):
    """One time-step of the ConvLSTM for all batches.

    xg_ref  : (B, H, 4*W*F)  precomputed x-gates (BN scale/bias already applied),
                             gate-major lane layout: col = gate*(W*F) + w*F + f
    bigw_ref: (K, W*F, 4*W*F) banded hidden->gates weights (BN scale folded in)
    o_ref   : (B, H, W*F)    hidden state output for this step (lane-dense)
    hxp_ref : (B, H+2p, W*F) scratch: H-padded hidden state (persists across steps)
    cx_ref  : (B, H, W*F)    scratch: cell state            (persists across steps)
    """
    s = pl.program_id(0)
    WF = W * F

    @pl.when(s == 0)
    def _init():
        hxp_ref[...] = jnp.zeros_like(hxp_ref)
        cx_ref[...] = jnp.zeros_like(cx_ref)

    for b in range(B):
        # x-part gates (BN already applied) + K banded MXU matmuls for the h-part.
        acc = xg_ref[b]                                       # (H, 4*W*F) f32
        for kh in range(K):
            tap = hxp_ref[b, pl.ds(kh, H), :]                 # (H, W*F) lane-dense
            acc = acc + jnp.dot(tap, bigw_ref[kh],
                                preferred_element_type=jnp.float32)

        ingate = jax.nn.sigmoid(acc[:, 0 * WF:1 * WF])
        forgetgate = jax.nn.sigmoid(acc[:, 1 * WF:2 * WF])
        cellgate = acc[:, 2 * WF:3 * WF]    # reference module: no tanh on cell gate
        outgate = jax.nn.sigmoid(acc[:, 3 * WF:4 * WF])

        cy = forgetgate * cx_ref[b] + ingate * cellgate
        hy = outgate * jnp.tanh(cy)

        cx_ref[b] = cy
        hxp_ref[b, pl.ds(pad, H), :] = hy                     # full-lane-width store
        o_ref[b] = hy                                         # lane-dense (W*F) store


# -----------------------------------------------------------------------------
# Wrappers (glue around the kernels)
# -----------------------------------------------------------------------------
def _im2col(x_nhwc, K, pad, stride):
    """(N,H,W,C) -> patches (N*Ho*Wo, K*K*C) with (kh, kw, c) element ordering."""
    N, H, W, C = x_nhwc.shape
    Ho = (H + 2 * pad - K) // stride + 1
    Wo = (W + 2 * pad - K) // stride + 1
    xp = jnp.pad(x_nhwc, ((0, 0), (pad, pad), (pad, pad), (0, 0)))
    slabs = []
    for kh in range(K):
        for kw in range(K):
            slabs.append(xp[:, kh:kh + stride * (Ho - 1) + 1:stride,
                          kw:kw + stride * (Wo - 1) + 1:stride, :])
    patches = jnp.concatenate(slabs, axis=-1)                 # (N, Ho, Wo, K*K*C)
    return patches.reshape(N * Ho * Wo, K * K * C), Ho, Wo


def _matmul_bn_act(pr, wmat, scale, bias, act):
    """Fused (rows,kkc)@(kkc,cout) * scale + bias (+act) in a single-pass Pallas call."""
    rows, kkc = pr.shape
    cout = wmat.shape[1]

    # Largest tile that fits comfortably in VMEM — at these sizes that is the whole
    # problem (one grid step; per-step pipeline overhead amortized away).
    tile = rows
    bytes_per_row = (kkc + cout) * 4
    while tile * bytes_per_row > (6 << 20) and tile % 16 == 0:
        tile //= 2
    grid = (rows // tile,)

    return pl.pallas_call(
        functools.partial(matmul_bn_act_kernel, act=act),
        out_shape=jax.ShapeDtypeStruct((rows, cout), jnp.float32),
        grid_spec=pltpu.PrefetchScalarGridSpec(
            num_scalar_prefetch=0,
            grid=grid,
            in_specs=[
                pl.BlockSpec((tile, kkc), lambda i: (i, 0)),
                pl.BlockSpec((kkc, cout), lambda i: (0, 0)),
                pl.BlockSpec((1, cout), lambda i: (0, 0)),
                pl.BlockSpec((1, cout), lambda i: (0, 0)),
            ],
            out_specs=pl.BlockSpec((tile, cout), lambda i: (i, 0)),
        ),
        compiler_params=pltpu.CompilerParams(dimension_semantics=("parallel",)),
    )(pr, wmat,
      scale.reshape(1, cout).astype(jnp.float32),
      bias.reshape(1, cout).astype(jnp.float32))


def conv_bn_act(frames_nhwc, p):
    """Conv2d(bias=False) + BatchNorm(eval) + activation on NHWC frames."""
    K, pad, stride = p["k"], p["pad"], p["stride"]
    N = frames_nhwc.shape[0]
    cin, cout = p["cin"], p["cout"]
    pr, Ho, Wo = _im2col(frames_nhwc, K, pad, stride)
    # PyTorch weight (Cout, Cin, K, K) -> (K, K, Cin, Cout) -> (K*K*Cin, Cout)
    wmat = jnp.transpose(p["w"], (2, 3, 1, 0)).reshape(K * K * cin, cout)
    out = _matmul_bn_act(pr, wmat, p["scale"], p["bias"], p["act"])
    return out.reshape(N, Ho, Wo, cout)


def _build_banded_wh(wh_s, *, W, F, K, pad):
    """Banded block-Toeplitz hidden->gates matrices.

    wh_s: (K, K, F, 4F) hidden-part conv weight with BN scale folded into the last dim.
    Returns (K, W*F, 4*W*F) with
      out[kh, w'*F+fi, g*(W*F) + w*F + fo] = wh_s[kh, w'-w+pad, fi, g*F+fo]
    and zero outside the band (this handles the W-boundary exactly).
    """
    wh2 = wh_s.reshape(K, K, F, 4, F)                          # (kh, kw, fi, g, fo)
    wp = jnp.arange(W)[:, None]                                # w' (source col)
    wq = jnp.arange(W)[None, :]                                # w  (output col)
    kw_idx = wp - wq + pad                                     # (W, W)
    valid = (kw_idx >= 0) & (kw_idx < K)
    kw_safe = jnp.clip(kw_idx, 0, K - 1)
    big = wh2[:, kw_safe]                                      # (kh, w', w, fi, g, fo)
    big = big * valid[None, :, :, None, None, None].astype(wh_s.dtype)
    big = jnp.transpose(big, (0, 1, 3, 4, 2, 5))               # (kh, w', fi, g, w, fo)
    return big.reshape(K, W * F, 4 * W * F)


def convlstm_block(x_bshwc, p):
    """ConvLSTMBlock on (B, S, H, W, Cin) channels-last input -> (B, S, H, W, F)."""
    B, S, H, W, Cin = x_bshwc.shape
    F, K, pad, stride = p["cout"], p["k"], p["pad"], p["stride"]
    assert stride == 1 and 2 * pad == K - 1, "ConvLSTM conv must be shape-preserving"
    WF = W * F
    G = 4 * F
    GWF = 4 * W * F

    w = p["w"]                                      # (4F, Cin+F, K, K)
    wx = jnp.transpose(w[:, :Cin], (2, 3, 1, 0))    # (K, K, Cin, 4F)
    wh = jnp.transpose(w[:, Cin:], (2, 3, 1, 0))    # (K, K, F,   4F)

    # ---- hoisted x-part: one big batched matmul over all (B, S) frames ----
    frames = x_bshwc.reshape(B * S, H, W, Cin)
    pr, _, _ = _im2col(frames, K, pad, stride)                 # stride 1 -> H, W kept
    wx_mat = wx.reshape(K * K * Cin, G)
    xg = _matmul_bn_act(pr, wx_mat, p["scale"], p["bias"], act="")   # (B*S*H*W, 4F)
    # gate-major lane layout per step: (S, B, H, 4*W*F) with col = g*(W*F) + w*F + f
    xg = xg.reshape(B, S, H, W, 4, F).transpose(1, 0, 2, 4, 3, 5).reshape(S, B, H, GWF)

    # ---- h-part weights as banded matrices (BN scale folded in; exact) ----
    wh_s = wh * p["scale"].astype(jnp.float32)[None, None, None, :]
    bigw = _build_banded_wh(wh_s, W=W, F=F, K=K, pad=pad)      # (K, W*F, 4*W*F)

    out = pl.pallas_call(
        functools.partial(convlstm_kernel, B=B, H=H, W=W, F=F, K=K, pad=pad),
        out_shape=jax.ShapeDtypeStruct((B, S, H, WF), jnp.float32),
        grid_spec=pltpu.PrefetchScalarGridSpec(
            num_scalar_prefetch=0,
            grid=(S,),                       # sequential (stateful) time axis only
            in_specs=[
                pl.BlockSpec((None, B, H, GWF), lambda s: (s, 0, 0, 0)),
                pl.BlockSpec((K, WF, GWF), lambda s: (0, 0, 0)),
            ],
            out_specs=pl.BlockSpec((B, None, H, WF), lambda s: (0, s, 0, 0)),
            scratch_shapes=[
                pltpu.VMEM((B, H + 2 * pad, WF), jnp.float32),  # H-padded hidden, lane-dense
                pltpu.VMEM((B, H, WF), jnp.float32),            # cell state
            ],
        ),
        compiler_params=pltpu.CompilerParams(dimension_semantics=("arbitrary",)),
    )(xg, bigw)
    return out.reshape(B, S, H, W, F)


def encoder_forward(x, params):
    """Pallas Encoder forward.  x: (B, S, C, H, W) -> list of (B, S, C', H', W')."""
    outputs = [x]
    cur = jnp.transpose(x, (0, 1, 3, 4, 2))          # channels-last internally
    for p in params:
        if p["type"] == "conv":
            B, S, H, W, C = cur.shape
            y = conv_bn_act(cur.reshape(B * S, H, W, C), p)   # (B*S, Ho, Wo, Co)
            cur = y.reshape(B, S, y.shape[1], y.shape[2], y.shape[3])
        else:  # convlstm
            cur = convlstm_block(cur, p)                      # (B, S, H, W, F)
            outputs.append(jnp.transpose(cur, (0, 1, 4, 2, 3)))  # NCHW only at boundary
    return outputs


# -----------------------------------------------------------------------------
# Pure-JAX reference (mirrors the PyTorch forward exactly) for verification.
# -----------------------------------------------------------------------------
def _ref_conv_bn_act(x_nchw, p):
    y = jax.lax.conv_general_dilated(
        x_nchw, p["w"], (p["stride"], p["stride"]),
        [(p["pad"], p["pad"]), (p["pad"], p["pad"])],
        dimension_numbers=("NCHW", "OIHW", "NCHW"),
        precision=jax.lax.Precision.HIGHEST)
    y = y * p["scale"][None, :, None, None] + p["bias"][None, :, None, None]
    if p["act"] == "leaky":
        y = jnp.where(y >= 0.0, y, 0.01 * y)
    elif p["act"] == "relu":
        y = jnp.maximum(y, 0.0)
    return y


def _ref_convlstm(x, p):
    B, S, C, H, W = x.shape
    F = p["cout"]
    hx = jnp.zeros((B, F, H, W), jnp.float32)
    cx = jnp.zeros((B, F, H, W), jnp.float32)
    outs = []
    for t in range(S):
        combined = jnp.concatenate([x[:, t], hx], axis=1)
        gates = _ref_conv_bn_act(combined, p)
        i, f, g, o = jnp.split(gates, 4, axis=1)
        i = jax.nn.sigmoid(i)
        f = jax.nn.sigmoid(f)
        o = jax.nn.sigmoid(o)
        cy = f * cx + i * g          # no tanh on cell gate (matches PyTorch module)
        hy = o * jnp.tanh(cy)
        outs.append(hy)
        hx, cx = hy, cy
    return jnp.stack(outs, axis=1)   # (B, S, F, H, W)


def encoder_forward_ref(x, params):
    outputs = [x]
    cur = x
    for p in params:
        if p["type"] == "conv":
            B, S, C, H, W = cur.shape
            y = _ref_conv_bn_act(cur.reshape(B * S, C, H, W), p)
            cur = y.reshape(B, S, y.shape[1], y.shape[2], y.shape[3])
        else:
            cur = _ref_convlstm(cur, p)
            outputs.append(cur)
    return outputs


# -----------------------------------------------------------------------------
# Deterministic parameter init (PyTorch shapes: conv weight OIHW, BN per-channel).
# -----------------------------------------------------------------------------
def init_params(config, key):
    params = []
    eps = 1e-5
    for (typ, act, cin, cout, k, pad, stride) in config.encoder:
        key, k1, k2, k3, k4, k5 = jax.random.split(key, 6)
        n_out = cout if typ == "conv" else 4 * cout
        n_in = cin if typ == "conv" else cin + cout
        w = jax.random.normal(k1, (n_out, n_in, k, k), jnp.float32) * 0.3
        gamma = jax.random.uniform(k2, (n_out,), jnp.float32, 0.5, 1.5)
        beta = jax.random.normal(k3, (n_out,), jnp.float32) * 0.1
        mean = jax.random.normal(k4, (n_out,), jnp.float32) * 0.1
        var = jax.random.uniform(k5, (n_out,), jnp.float32, 0.5, 1.5)
        scale = gamma / jnp.sqrt(var + eps)      # folded BN (inference)
        bias = beta - mean * scale
        params.append(dict(type=typ, act=act, cin=cin, cout=cout, k=k, pad=pad,
                           stride=stride, w=w, scale=scale, bias=bias))
    return params


if __name__ == "__main__":
    key = jax.random.PRNGKey(0)
    kx, kp = jax.random.split(key)
    x = jax.random.normal(kx, (2, 4, 1, 32, 32), jnp.float32)   # (B, S, C, H, W)
    params = init_params(EncoderConfig(), kp)

    outs = encoder_forward(x, params)
    outs = jax.block_until_ready(outs)

    refs = encoder_forward_ref(x, params)
    assert len(outs) == len(refs)
    for o, r in zip(outs, refs):
        assert o.shape == r.shape, (o.shape, r.shape)
        assert bool(jnp.all(jnp.isfinite(o)))
        assert bool(jnp.allclose(o, r, atol=2e-2, rtol=2e-2)), \
            float(jnp.max(jnp.abs(o - r)))
    print("KERNEL_OK")
</pallas_src>

<mosaic_0001>
module attributes {stable_mosaic.version = 11 : i64} {
  func.func @matmul_bn_act_kernel(%arg0: i32, %arg1: memref<2048x9xf32, #tpu.memory_space<vmem>>, %arg2: memref<9x8xf32, #tpu.memory_space<vmem>>, %arg3: memref<1x8xf32, #tpu.memory_space<vmem>>, %arg4: memref<1x8xf32, #tpu.memory_space<vmem>>, %arg5: memref<2048x8xf32, #tpu.memory_space<vmem>>) attributes {dimension_semantics = [#tpu.dimension_semantics<parallel>], iteration_bounds = array<i64: 1>, scalar_prefetch = 0 : i64, scratch_operands = 0 : i64, tpu.core_type = #tpu.core_type<tc>, window_params = [{transform_indices = @transform_0, window_bounds = array<i64: 2048, 9>}, {pipeline_mode = #tpu.pipeline_mode<synchronous>, transform_indices = @transform_1, window_bounds = array<i64: 9, 8>}, {pipeline_mode = #tpu.pipeline_mode<synchronous>, transform_indices = @transform_2, window_bounds = array<i64: 1, 8>}, {pipeline_mode = #tpu.pipeline_mode<synchronous>, transform_indices = @transform_3, window_bounds = array<i64: 1, 8>}, {transform_indices = @transform_4, window_bounds = array<i64: 2048, 8>}]} {
    %c0 = arith.constant 0 : index
    %c0_0 = arith.constant 0 : index
    %0 = vector.load %arg1[%c0, %c0_0] : memref<2048x9xf32, #tpu.memory_space<vmem>>, vector<2048x9xf32>
    %c0_1 = arith.constant 0 : index
    %c0_2 = arith.constant 0 : index
    %1 = vector.load %arg2[%c0_1, %c0_2] : memref<9x8xf32, #tpu.memory_space<vmem>>, vector<9x8xf32>
    %cst = arith.constant dense<0.000000e+00> : vector<2048x8xf32>
    %2 = tpu.matmul %0, %1, %cst {dimension_numbers = #tpu.dot_dimension_numbers<[1], [0], [0], [1], [0, 0, 1, 1], [], []>} : vector<2048x9xf32>, vector<9x8xf32>, vector<2048x8xf32> -> vector<2048x8xf32>
    %c0_3 = arith.constant 0 : index
    %c0_4 = arith.constant 0 : index
    %3 = vector.load %arg3[%c0_3, %c0_4] : memref<1x8xf32, #tpu.memory_space<vmem>>, vector<1x8xf32>
    %4 = vector.broadcast %3 : vector<1x8xf32> to vector<2048x8xf32>
    %5 = arith.mulf %2, %4 : vector<2048x8xf32>
    %c0_5 = arith.constant 0 : index
    %c0_6 = arith.constant 0 : index
    %6 = vector.load %arg4[%c0_5, %c0_6] : memref<1x8xf32, #tpu.memory_space<vmem>>, vector<1x8xf32>
    %7 = vector.broadcast %6 : vector<1x8xf32> to vector<2048x8xf32>
    %8 = arith.addf %5, %7 : vector<2048x8xf32>
    %cst_7 = arith.constant 0.000000e+00 : f32
    %9 = vector.broadcast %cst_7 : f32 to vector<2048x8xf32>
    %10 = arith.cmpf oge, %8, %9 : vector<2048x8xf32>
    %cst_8 = arith.constant 0.00999999977 : f32
    %11 = vector.broadcast %cst_8 : f32 to vector<2048x8xf32>
    %12 = arith.mulf %11, %8 : vector<2048x8xf32>
    %13 = arith.select %10, %8, %12 : vector<2048x8xi1>, vector<2048x8xf32>
    %c0_9 = arith.constant 0 : index
    %c0_10 = arith.constant 0 : index
    %14 = vector.load %arg5[%c0_9, %c0_10] : memref<2048x8xf32, #tpu.memory_space<vmem>>, vector<2048x8xf32>
    tpu.vector_store %arg5[%c0_9, %c0_10], %13 {strides = array<i32>} : memref<2048x8xf32, #tpu.memory_space<vmem>>, vector<2048x8xf32>,
    return
  }
  func.func @transform_0(%arg0: i32) -> (i32, i32) {
    %c0_i32 = arith.constant 0 : i32
    %c0_i32_0 = arith.constant 0 : i32
    return %arg0, %c0_i32 : i32, i32
  }
  func.func @transform_1(%arg0: i32) -> (i32, i32) {
    %c0_i32 = arith.constant 0 : i32
    %c0_i32_0 = arith.constant 0 : i32
    %c0_i32_1 = arith.constant 0 : i32
    return %c0_i32, %c0_i32_0 : i32, i32
  }
  func.func @transform_2(%arg0: i32) -> (i32, i32) {
    %c0_i32 = arith.constant 0 : i32
    %c0_i32_0 = arith.constant 0 : i32
    %c0_i32_1 = arith.constant 0 : i32
    return %c0_i32, %c0_i32_0 : i32, i32
  }
  func.func @transform_3(%arg0: i32) -> (i32, i32) {
    %c0_i32 = arith.constant 0 : i32
    %c0_i32_0 = arith.constant 0 : i32
    %c0_i32_1 = arith.constant 0 : i32
    return %c0_i32, %c0_i32_0 : i32, i32
  }
  func.func @transform_4(%arg0: i32) -> (i32, i32) {
    %c0_i32 = arith.constant 0 : i32
    %c0_i32_0 = arith.constant 0 : i32
    return %arg0, %c0_i32 : i32, i32
  }
}

</mosaic_0001>

<bundles_post_ra>
// kernel: tpu_custom_call.1
= control target key start
LH: loop header
LB: loop body
LE: loop exit
PB: predicated region body
PF: predicated region fallthrough
CT: control target
= control target key end

     0   :  { %vm1044_vm0 = vcmask 1040384   ;;  %vm275_vm1 = vcmask 72704   ;;  %vm3687_vm2 = vcmask 64512   ;;  %s8125_s1 = inlined_call_operand.vmem [shape: f32[9,8], index: 1, kind: input, shape index: {}]   ;;  %s8126_s0 = inlined_call_operand.vmem [shape: f32[2048,9], index: 0, kind: input, shape index: {}]   ;;  %s8127_s2 = inlined_call_operand.vmem [shape: f32[1,8], index: 2, kind: input, shape index: {}]   ;;  %s8128_s3 = inlined_call_operand.vmem [shape: f32[1,8], index: 3, kind: input, shape index: {}]   ;;  %s8129_s4 = inlined_call_operand.vmem [shape: f32[2048,8], index: 4, kind: output, shape index: {}]  }
   0x1   :  { %v274_v0 = vld [vmem:[%s8125_s1 + $0x8] sm:$0x1]  ;;  %v273_v1 = vld [vmem:[%s8125_s1] sm:$0xff]  ;;  %v19_v6 = vld [vmem:[%s8126_s0 + $0x10] sm:$0xff] }
   0x2   :  { %4465 = vmatprep.subr.msk.mxu0 %vm1044_vm0, %v274_v0  ;;  %4853 = vmatprep.subr.msk.mxu1 %vm1044_vm0, %v274_v0  ;;  %v17_v2 = vld [vmem:[%s8126_s0] sm:$0xff]  ;;  %v18_v4 = vld [vmem:[%s8126_s0 + $0x8] sm:$0xff]  ;;  %v147_v7 = vld [vmem:[%s8126_s0 + $0x410] sm:$0xff] }
   0x3   :  { %4466 = vmatpush3.msk.msra.mxu0 %vm1044_vm0, %v274_v0  ;;  %4855 = vmatpush3.msk.msra.mxu1 %vm1044_vm0, %v274_v0  ;;  %v145_v3 = vld [vmem:[%s8126_s0 + $0x400] sm:$0xff]  ;;  %v146_v5 = vld [vmem:[%s8126_s0 + $0x408] sm:$0xff]  ;;  %v20_v8 = vld [vmem:[%s8126_s0 + $0x18] sm:$0xff] }
   0x4   :  { %4467 = vmatprep.subr.mxu0 %v273_v1  ;;  %4854 = vmatprep.subr.mxu1 %v273_v1  ;;  %v148_v9 = vld [vmem:[%s8126_s0 + $0x418] sm:$0xff]  ;;  %v21_v10 = vld [vmem:[%s8126_s0 + $0x20] sm:$0xff]  ;;  %v22_v12 = vld [vmem:[%s8126_s0 + $0x28] sm:$0xff] }
   0x5   :  { %4468 = vmatpush3.msra.mxu0 %v273_v1  ;;  %4856 = vmatpush3.msra.mxu1 %v273_v1  ;;  %v149_v11 = vld [vmem:[%s8126_s0 + $0x420] sm:$0xff]  ;;  %v150_v13 = vld [vmem:[%s8126_s0 + $0x428] sm:$0xff]  ;;  %v23_v14 = vld [vmem:[%s8126_s0 + $0x30] sm:$0xff] }
   0x6   :  { %4469 = vmatprep.mubr.msk.f32.mxu0 %vm275_vm1, %v17_v2  ;;  %4661 = vmatprep.mubr.msk.f32.mxu1 %vm275_vm1, %v145_v3  ;;  %v151_v15 = vld [vmem:[%s8126_s0 + $0x430] sm:$0xff]  ;;  %v24_v16 = vld [vmem:[%s8126_s0 + $0x38] sm:$0xff]  ;;  %v25_v18 = vld [vmem:[%s8126_s0 + $0x40] sm:$0xff] }
   0x7   :  { %4470 = vmatmul.mubr.msk.f32.vlgmr.msra.gmra.mxu0 %vm275_vm1, %v18_v4  ;;  %4662 = vmatmul.mubr.msk.f32.vlgmr.msra.gmra.mxu1 %vm275_vm1, %v146_v5  ;;  %v152_v17 = vld [vmem:[%s8126_s0 + $0x438] sm:$0xff]  ;;  %v153_v19 = vld [vmem:[%s8126_s0 + $0x440] sm:$0xff]  ;;  %v26_v20 = vld [vmem:[%s8126_s0 + $0x48] sm:$0xff] }
   0x8   :  { %4472 = vmatprep.mubr.msk.f32.mxu0 %vm275_vm1, %v19_v6  ;;  %4664 = vmatprep.mubr.msk.f32.mxu1 %vm275_vm1, %v147_v7  ;;  %v154_v21 = vld [vmem:[%s8126_s0 + $0x448] sm:$0xff]  ;;  %v27_v22 = vld [vmem:[%s8126_s0 + $0x50] sm:$0xff]  ;;  %v28_v24 = vld [vmem:[%s8126_s0 + $0x58] sm:$0xff] }
   0x9   :  { %v155_v23 = vld [vmem:[%s8126_s0 + $0x450] sm:$0xff]  ;;  %v156_v25 = vld [vmem:[%s8126_s0 + $0x458] sm:$0xff]  ;;  %v29_v26 = vld [vmem:[%s8126_s0 + $0x60] sm:$0xff] }
   0xa   :  { %v157_v27 = vld [vmem:[%s8126_s0 + $0x460] sm:$0xff]  ;;  %v30_v28 = vld [vmem:[%s8126_s0 + $0x68] sm:$0xff]  ;;  %v31_v30 = vld [vmem:[%s8126_s0 + $0x70] sm:$0xff] }
   0xb   :  { %4473 = vmatmul.mubr.msk.f32.gmra.mxu0 %vm275_vm1, %v20_v8  ;;  %4665 = vmatmul.mubr.msk.f32.gmra.mxu1 %vm275_vm1, %v148_v9  ;;  %v158_v29 = vld [vmem:[%s8126_s0 + $0x468] sm:$0xff]  ;;  %v159_v31 = vld [vmem:[%s8126_s0 + $0x470] sm:$0xff]  ;;  %v32_v32 = vld [vmem:[%s8126_s0 + $0x78] sm:$0xff] }
   0xc   :  { %4475 = vmatprep.mubr.msk.f32.mxu0 %vm275_vm1, %v21_v10  ;;  %4667 = vmatprep.mubr.msk.f32.mxu1 %vm275_vm1, %v149_v11  ;;  %v160_v33 = vld [vmem:[%s8126_s0 + $0x478] sm:$0xff]  ;;  %v33_v34 = vld [vmem:[%s8126_s0 + $0x80] sm:$0xff]  ;;  %v34_v36 = vld [vmem:[%s8126_s0 + $0x88] sm:$0xff] }
   0xd   :  { %v161_v35 = vld [vmem:[%s8126_s0 + $0x480] sm:$0xff]  ;;  %v162_v37 = vld [vmem:[%s8126_s0 + $0x488] sm:$0xff]  ;;  %v35_v38 = vld [vmem:[%s8126_s0 + $0x90] sm:$0xff] }
   0xe   :  { %v163_v39 = vld [vmem:[%s8126_s0 + $0x490] sm:$0xff]  ;;  %v36_v40 = vld [vmem:[%s8126_s0 + $0x98] sm:$0xff]  ;;  %v37_v42 = vld [vmem:[%s8126_s0 + $0xa0] sm:$0xff] }
   0xf   :  { %4476 = vmatmul.mubr.msk.f32.gmra.mxu0 %vm275_vm1, %v22_v12  ;;  %4668 = vmatmul.mubr.msk.f32.gmra.mxu1 %vm275_vm1, %v150_v13  ;;  %v164_v41 = vld [vmem:[%s8126_s0 + $0x498] sm:$0xff]  ;;  %v165_v43 = vld [vmem:[%s8126_s0 + $0x4a0] sm:$0xff]  ;;  %v38_v44 = vld [vmem:[%s8126_s0 + $0xa8] sm:$0xff] }
  0x10   :  { %4478 = vmatprep.mubr.msk.f32.mxu0 %vm275_vm1, %v23_v14  ;;  %4670 = vmatprep.mubr.msk.f32.mxu1 %vm275_vm1, %v151_v15  ;;  %v166_v45 = vld [vmem:[%s8126_s0 + $0x4a8] sm:$0xff]  ;;  %v39_v46 = vld [vmem:[%s8126_s0 + $0xb0] sm:$0xff]  ;;  %v40_v48 = vld [vmem:[%s8126_s0 + $0xb8] sm:$0xff] }
  0x11   :  { %v167_v47 = vld [vmem:[%s8126_s0 + $0x4b0] sm:$0xff]  ;;  %v168_v49 = vld [vmem:[%s8126_s0 + $0x4b8] sm:$0xff]  ;;  %v41_v50 = vld [vmem:[%s8126_s0 + $0xc0] sm:$0xff] }
  0x12   :  { %v169_v51 = vld [vmem:[%s8126_s0 + $0x4c0] sm:$0xff]  ;;  %v42_v52 = vld [vmem:[%s8126_s0 + $0xc8] sm:$0xff]  ;;  %v43_v54 = vld [vmem:[%s8126_s0 + $0xd0] sm:$0xff] }
  0x13   :  { %4479 = vmatmul.mubr.msk.f32.gmra.mxu0 %vm275_vm1, %v24_v16  ;;  %4671 = vmatmul.mubr.msk.f32.gmra.mxu1 %vm275_vm1, %v152_v17  ;;  %v170_v53 = vld [vmem:[%s8126_s0 + $0x4c8] sm:$0xff]  ;;  %v171_v55 = vld [vmem:[%s8126_s0 + $0x4d0] sm:$0xff]  ;;  %v44_v56 = vld [vmem:[%s8126_s0 + $0xd8] sm:$0xff] }
  0x14   :  { %4481 = vmatprep.mubr.msk.f32.mxu0 %vm275_vm1, %v25_v18  ;;  %4673 = vmatprep.mubr.msk.f32.mxu1 %vm275_vm1, %v153_v19  ;;  %v172_v57 = vld [vmem:[%s8126_s0 + $0x4d8] sm:$0xff]  ;;  %v45_v58 = vld [vmem:[%s8126_s0 + $0xe0] sm:$0xff]  ;;  %v46_v60 = vld [vmem:[%s8126_s0 + $0xe8] sm:$0xff] }
  0x15   :  { %v173_v59 = vld [vmem:[%s8126_s0 + $0x4e0] sm:$0xff]  ;;  %v174_v61 = vld [vmem:[%s8126_s0 + $0x4e8] sm:$0xff]  ;;  %v47_v62 = vld [vmem:[%s8126_s0 + $0xf0] sm:$0xff] }
  0x16   :  { %v175_v63 = vld [vmem:[%s8126_s0 + $0x4f0] sm:$0xff]  ;;  %v48_v0 = vld [vmem:[%s8126_s0 + $0xf8] sm:$0xff]  ;;  %v49_v2 = vld [vmem:[%s8126_s0 + $0x100] sm:$0xff] }
  0x17   :  { %4482 = vmatmul.mubr.msk.f32.gmra.mxu0 %vm275_vm1, %v26_v20  ;;  %4674 = vmatmul.mubr.msk.f32.gmra.mxu1 %vm275_vm1, %v154_v21  ;;  %v176_v1 = vld [vmem:[%s8126_s0 + $0x4f8] sm:$0xff]  ;;  %v177_v3 = vld [vmem:[%s8126_s0 + $0x500] sm:$0xff]  ;;  %v50_v4 = vld [vmem:[%s8126_s0 + $0x108] sm:$0xff] }
  0x18   :  { %4484 = vmatprep.mubr.msk.f32.mxu0 %vm275_vm1, %v27_v22  ;;  %4676 = vmatprep.mubr.msk.f32.mxu1 %vm275_vm1, %v155_v23  ;;  %v178_v5 = vld [vmem:[%s8126_s0 + $0x508] sm:$0xff]  ;;  %v51_v6 = vld [vmem:[%s8126_s0 + $0x110] sm:$0xff]  ;;  %v52_v8 = vld [vmem:[%s8126_s0 + $0x118] sm:$0xff] }
  0x19   :  { %v179_v7 = vld [vmem:[%s8126_s0 + $0x510] sm:$0xff]  ;;  %v180_v9 = vld [vmem:[%s8126_s0 + $0x518] sm:$0xff]  ;;  %v53_v10 = vld [vmem:[%s8126_s0 + $0x120] sm:$0xff] }
  0x1a   :  { %v181_v11 = vld [vmem:[%s8126_s0 + $0x520] sm:$0xff]  ;;  %v54_v12 = vld [vmem:[%s8126_s0 + $0x128] sm:$0xff]  ;;  %v55_v14 = vld [vmem:[%s8126_s0 + $0x130] sm:$0xff] }
  0x1b   :  { %4485 = vmatmul.mubr.msk.f32.gmra.mxu0 %vm275_vm1, %v28_v24  ;;  %4677 = vmatmul.mubr.msk.f32.gmra.mxu1 %vm275_vm1, %v156_v25  ;;  %v182_v13 = vld [vmem:[%s8126_s0 + $0x528] sm:$0xff]  ;;  %v183_v15 = vld [vmem:[%s8126_s0 + $0x530] sm:$0xff]  ;;  %v56_v16 = vld [vmem:[%s8126_s0 + $0x138] sm:$0xff] }
  0x1c   :  { %4487 = vmatprep.mubr.msk.f32.mxu0 %vm275_vm1, %v29_v26  ;;  %4679 = vmatprep.mubr.msk.f32.mxu1 %vm275_vm1, %v157_v27  ;;  %v184_v17 = vld [vmem:[%s8126_s0 + $0x538] sm:$0xff]  ;;  %v57_v18 = vld [vmem:[%s8126_s0 + $0x140] sm:$0xff]  ;;  %v58_v20 = vld [vmem:[%s8126_s0 + $0x148] sm:$0xff] }
  0x1d   :  { %v185_v19 = vld [vmem:[%s8126_s0 + $0x540] sm:$0xff]  ;;  %v186_v21 = vld [vmem:[%s8126_s0 + $0x548] sm:$0xff]  ;;  %v59_v22 = vld [vmem:[%s8126_s0 + $0x150] sm:$0xff] }
  0x1e   :  { %v187_v23 = vld [vmem:[%s8126_s0 + $0x550] sm:$0xff]  ;;  %v60_v24 = vld [vmem:[%s8126_s0 + $0x158] sm:$0xff]  ;;  %v61_v26 = vld [vmem:[%s8126_s0 + $0x160] sm:$0xff] }
  0x1f   :  { %4488 = vmatmul.mubr.msk.f32.gmra.mxu0 %vm275_vm1, %v30_v28  ;;  %4680 = vmatmul.mubr.msk.f32.gmra.mxu1 %vm275_vm1, %v158_v29  ;;  %v188_v25 = vld [vmem:[%s8126_s0 + $0x558] sm:$0xff]  ;;  %v189_v27 = vld [vmem:[%s8126_s0 + $0x560] sm:$0xff]  ;;  %v62_v28 = vld [vmem:[%s8126_s0 + $0x168] sm:$0xff] }
  0x20   :  { %4490 = vmatprep.mubr.msk.f32.mxu0 %vm275_vm1, %v31_v30  ;;  %4682 = vmatprep.mubr.msk.f32.mxu1 %vm275_vm1, %v159_v31  ;;  %v190_v29 = vld [vmem:[%s8126_s0 + $0x568] sm:$0xff]  ;;  %v63_v30 = vld [vmem:[%s8126_s0 + $0x170] sm:$0xff] }
  0x21   :  { %v191_v31 = vld [vmem:[%s8126_s0 + $0x570] sm:$0xff] }
  0x23   :  { %4491 = vmatmul.mubr.msk.f32.gmra.mxu0 %vm275_vm1, %v32_v32  ;;  %4683 = vmatmul.mubr.msk.f32.gmra.mxu1 %vm275_vm1, %v160_v33  ;;  %v64_v32 = vld [vmem:[%s8126_s0 + $0x178] sm:$0xff] }
  0x24   :  { %4493 = vmatprep.mubr.msk.f32.mxu0 %vm275_vm1, %v33_v34  ;;  %4685 = vmatprep.mubr.msk.f32.mxu1 %vm275_vm1, %v161_v35  ;;  %v192_v33 = vld [vmem:[%s8126_s0 + $0x578] sm:$0xff]  ;;  %v65_v34 = vld [vmem:[%s8126_s0 + $0x180] sm:$0xff] }
  0x25   :  { %v193_v35 = vld [vmem:[%s8126_s0 + $0x580] sm:$0xff] }
  0x27   :  { %4494 = vmatmul.mubr.msk.f32.gmra.mxu0 %vm275_vm1, %v34_v36  ;;  %4686 = vmatmul.mubr.msk.f32.gmra.mxu1 %vm275_vm1, %v162_v37  ;;  %v66_v36 = vld [vmem:[%s8126_s0 + $0x188] sm:$0xff] }
  0x28   :  { %4496 = vmatprep.mubr.msk.f32.mxu0 %vm275_vm1, %v35_v38  ;;  %4688 = vmatprep.mubr.msk.f32.mxu1 %vm275_vm1, %v163_v39  ;;  %v194_v37 = vld [vmem:[%s8126_s0 + $0x588] sm:$0xff]  ;;  %v67_v38 = vld [vmem:[%s8126_s0 + $0x190] sm:$0xff] }
  0x29   :  { %v195_v39 = vld [vmem:[%s8126_s0 + $0x590] sm:$0xff] }
  0x2b   :  { %4497 = vmatmul.mubr.msk.f32.gmra.mxu0 %vm275_vm1, %v36_v40  ;;  %4689 = vmatmul.mubr.msk.f32.gmra.mxu1 %vm275_vm1, %v164_v41  ;;  %v68_v40 = vld [vmem:[%s8126_s0 + $0x198] sm:$0xff] }
  0x2c   :  { %4499 = vmatprep.mubr.msk.f32.mxu0 %vm275_vm1, %v37_v42  ;;  %4691 = vmatprep.mubr.msk.f32.mxu1 %vm275_vm1, %v165_v43  ;;  %v196_v41 = vld [vmem:[%s8126_s0 + $0x598] sm:$0xff]  ;;  %v69_v42 = vld [vmem:[%s8126_s0 + $0x1a0] sm:$0xff] }
  0x2d   :  { %v197_v43 = vld [vmem:[%s8126_s0 + $0x5a0] sm:$0xff] }
  0x2f   :  { %4500 = vmatmul.mubr.msk.f32.gmra.mxu0 %vm275_vm1, %v38_v44  ;;  %4692 = vmatmul.mubr.msk.f32.gmra.mxu1 %vm275_vm1, %v166_v45  ;;  %v70_v44 = vld [vmem:[%s8126_s0 + $0x1a8] sm:$0xff] }
  0x30   :  { %4502 = vmatprep.mubr.msk.f32.mxu0 %vm275_vm1, %v39_v46  ;;  %4694 = vmatprep.mubr.msk.f32.mxu1 %vm275_vm1, %v167_v47  ;;  %v198_v45 = vld [vmem:[%s8126_s0 + $0x5a8] sm:$0xff]  ;;  %v71_v46 = vld [vmem:[%s8126_s0 + $0x1b0] sm:$0xff] }
  0x31   :  { %v199_v47 = vld [vmem:[%s8126_s0 + $0x5b0] sm:$0xff] }
  0x33   :  { %4503 = vmatmul.mubr.msk.f32.gmra.mxu0 %vm275_vm1, %v40_v48  ;;  %4695 = vmatmul.mubr.msk.f32.gmra.mxu1 %vm275_vm1, %v168_v49  ;;  %v72_v48 = vld [vmem:[%s8126_s0 + $0x1b8] sm:$0xff] }
  0x34   :  { %4505 = vmatprep.mubr.msk.f32.mxu0 %vm275_vm1, %v41_v50  ;;  %4697 = vmatprep.mubr.msk.f32.mxu1 %vm275_vm1, %v169_v51  ;;  %v200_v49 = vld [vmem:[%s8126_s0 + $0x5b8] sm:$0xff]  ;;  %v73_v50 = vld [vmem:[%s8126_s0 + $0x1c0] sm:$0xff] }
  0x35   :  { %v201_v51 = vld [vmem:[%s8126_s0 + $0x5c0] sm:$0xff] }
  0x37   :  { %4506 = vmatmul.mubr.msk.f32.gmra.mxu0 %vm275_vm1, %v42_v52  ;;  %4698 = vmatmul.mubr.msk.f32.gmra.mxu1 %vm275_vm1, %v170_v53  ;;  %v74_v52 = vld [vmem:[%s8126_s0 + $0x1c8] sm:$0xff] }
  0x38   :  { %4508 = vmatprep.mubr.msk.f32.mxu0 %vm275_vm1, %v43_v54  ;;  %4700 = vmatprep.mubr.msk.f32.mxu1 %vm275_vm1, %v171_v55  ;;  %v202_v53 = vld [vmem:[%s8126_s0 + $0x5c8] sm:$0xff]  ;;  %v75_v54 = vld [vmem:[%s8126_s0 + $0x1d0] sm:$0xff] }
  0x39   :  { %v203_v55 = vld [vmem:[%s8126_s0 + $0x5d0] sm:$0xff] }
  0x3b   :  { %4509 = vmatmul.mubr.msk.f32.gmra.mxu0 %vm275_vm1, %v44_v56  ;;  %4701 = vmatmul.mubr.msk.f32.gmra.mxu1 %vm275_vm1, %v172_v57  ;;  %v76_v56 = vld [vmem:[%s8126_s0 + $0x1d8] sm:$0xff] }
  0x3c   :  { %4511 = vmatprep.mubr.msk.f32.mxu0 %vm275_vm1, %v45_v58  ;;  %4703 = vmatprep.mubr.msk.f32.mxu1 %vm275_vm1, %v173_v59  ;;  %v204_v57 = vld [vmem:[%s8126_s0 + $0x5d8] sm:$0xff]  ;;  %v77_v58 = vld [vmem:[%s8126_s0 + $0x1e0] sm:$0xff] }
  0x3d   :  { %v205_v59 = vld [vmem:[%s8126_s0 + $0x5e0] sm:$0xff] }
  0x3f   :  { %4512 = vmatmul.mubr.msk.f32.gmra.mxu0 %vm275_vm1, %v46_v60  ;;  %4704 = vmatmul.mubr.msk.f32.gmra.mxu1 %vm275_vm1, %v174_v61  ;;  %v78_v60 = vld [vmem:[%s8126_s0 + $0x1e8] sm:$0xff] }
  0x40   :  { %4514 = vmatprep.mubr.msk.f32.mxu0 %vm275_vm1, %v47_v62  ;;  %4706 = vmatprep.mubr.msk.f32.mxu1 %vm275_vm1, %v175_v63  ;;  %v206_v61 = vld [vmem:[%s8126_s0 + $0x5e8] sm:$0xff]  ;;  %v79_v62 = vld [vmem:[%s8126_s0 + $0x1f0] sm:$0xff] }
  0x41   :  { %v207_v63 = vld [vmem:[%s8126_s0 + $0x5f0] sm:$0xff] }
  0x43   :  { %4515 = vmatmul.mubr.msk.f32.gmra.mxu0 %vm275_vm1, %v48_v0  ;;  %4707 = vmatmul.mubr.msk.f32.gmra.mxu1 %vm275_vm1, %v176_v1  ;;  %v80_v0 = vld [vmem:[%s8126_s0 + $0x1f8] sm:$0xff] }
  0x44   :  { %4517 = vmatprep.mubr.msk.f32.mxu0 %vm275_vm1, %v49_v2  ;;  %4709 = vmatprep.mubr.msk.f32.mxu1 %vm275_vm1, %v177_v3  ;;  %v208_v1 = vld [vmem:[%s8126_s0 + $0x5f8] sm:$0xff]  ;;  %v81_v2 = vld [vmem:[%s8126_s0 + $0x200] sm:$0xff] }
  0x45   :  { %v209_v3 = vld [vmem:[%s8126_s0 + $0x600] sm:$0xff] }
  0x47   :  { %4518 = vmatmul.mubr.msk.f32.gmra.mxu0 %vm275_vm1, %v50_v4  ;;  %4710 = vmatmul.mubr.msk.f32.gmra.mxu1 %vm275_vm1, %v178_v5  ;;  %v82_v4 = vld [vmem:[%s8126_s0 + $0x208] sm:$0xff] }
  0x48   :  { %4520 = vmatprep.mubr.msk.f32.mxu0 %vm275_vm1, %v51_v6  ;;  %4712 = vmatprep.mubr.msk.f32.mxu1 %vm275_vm1, %v179_v7  ;;  %v210_v5 = vld [vmem:[%s8126_s0 + $0x608] sm:$0xff]  ;;  %v83_v6 = vld [vmem:[%s8126_s0 + $0x210] sm:$0xff] }
  0x49   :  { %v211_v7 = vld [vmem:[%s8126_s0 + $0x610] sm:$0xff] }
  0x4b   :  { %4521 = vmatmul.mubr.msk.f32.gmra.mxu0 %vm275_vm1, %v52_v8  ;;  %4713 = vmatmul.mubr.msk.f32.gmra.mxu1 %vm275_vm1, %v180_v9  ;;  %v84_v8 = vld [vmem:[%s8126_s0 + $0x218] sm:$0xff] }
  0x4c   :  { %4523 = vmatprep.mubr.msk.f32.mxu0 %vm275_vm1, %v53_v10  ;;  %4715 = vmatprep.mubr.msk.f32.mxu1 %vm275_vm1, %v181_v11  ;;  %v212_v9 = vld [vmem:[%s8126_s0 + $0x618] sm:$0xff]  ;;  %v85_v10 = vld [vmem:[%s8126_s0 + $0x220] sm:$0xff] }
  0x4d   :  { %v213_v11 = vld [vmem:[%s8126_s0 + $0x620] sm:$0xff] }
  0x4f   :  { %4524 = vmatmul.mubr.msk.f32.gmra.mxu0 %vm275_vm1, %v54_v12  ;;  %4716 = vmatmul.mubr.msk.f32.gmra.mxu1 %vm275_vm1, %v182_v13  ;;  %v86_v12 = vld [vmem:[%s8126_s0 + $0x228] sm:$0xff] }
  0x50   :  { %4526 = vmatprep.mubr.msk.f32.mxu0 %vm275_vm1, %v55_v14  ;;  %4718 = vmatprep.mubr.msk.f32.mxu1 %vm275_vm1, %v183_v15  ;;  %v214_v13 = vld [vmem:[%s8126_s0 + $0x628] sm:$0xff]  ;;  %v87_v14 = vld [vmem:[%s8126_s0 + $0x230] sm:$0xff] }
  0x51   :  { %v215_v15 = vld [vmem:[%s8126_s0 + $0x630] sm:$0xff] }
  0x53   :  { %4527 = vmatmul.mubr.msk.f32.gmra.mxu0 %vm275_vm1, %v56_v16  ;;  %4719 = vmatmul.mubr.msk.f32.gmra.mxu1 %vm275_vm1, %v184_v17  ;;  %v88_v16 = vld [vmem:[%s8126_s0 + $0x238] sm:$0xff] }
  0x54   :  { %4529 = vmatprep.mubr.msk.f32.mxu0 %vm275_vm1, %v57_v18  ;;  %4721 = vmatprep.mubr.msk.f32.mxu1 %vm275_vm1, %v185_v19  ;;  %v216_v17 = vld [vmem:[%s8126_s0 + $0x638] sm:$0xff]  ;;  %v89_v18 = vld [vmem:[%s8126_s0 + $0x240] sm:$0xff] }
  0x55   :  { %v217_v19 = vld [vmem:[%s8126_s0 + $0x640] sm:$0xff] }
  0x57   :  { %4530 = vmatmul.mubr.msk.f32.gmra.mxu0 %vm275_vm1, %v58_v20  ;;  %4722 = vmatmul.mubr.msk.f32.gmra.mxu1 %vm275_vm1, %v186_v21  ;;  %v90_v20 = vld [vmem:[%s8126_s0 + $0x248] sm:$0xff] }
  0x58   :  { %4532 = vmatprep.mubr.msk.f32.mxu0 %vm275_vm1, %v59_v22  ;;  %4724 = vmatprep.mubr.msk.f32.mxu1 %vm275_vm1, %v187_v23  ;;  %v218_v21 = vld [vmem:[%s8126_s0 + $0x648] sm:$0xff]  ;;  %v91_v22 = vld [vmem:[%s8126_s0 + $0x250] sm:$0xff] }
  0x59   :  { %v219_v23 = vld [vmem:[%s8126_s0 + $0x650] sm:$0xff] }
  0x5b   :  { %4533 = vmatmul.mubr.msk.f32.gmra.mxu0 %vm275_vm1, %v60_v24  ;;  %4725 = vmatmul.mubr.msk.f32.gmra.mxu1 %vm275_vm1, %v188_v25  ;;  %v92_v24 = vld [vmem:[%s8126_s0 + $0x258] sm:$0xff] }
  0x5c   :  { %4535 = vmatprep.mubr.msk.f32.mxu0 %vm275_vm1, %v61_v26  ;;  %4727 = vmatprep.mubr.msk.f32.mxu1 %vm275_vm1, %v189_v27  ;;  %v220_v25 = vld [vmem:[%s8126_s0 + $0x658] sm:$0xff]  ;;  %v93_v26 = vld [vmem:[%s8126_s0 + $0x260] sm:$0xff] }
  0x5d   :  { %v221_v27 = vld [vmem:[%s8126_s0 + $0x660] sm:$0xff] }
  0x5f   :  { %4536 = vmatmul.mubr.msk.f32.gmra.mxu0 %vm275_vm1, %v62_v28  ;;  %4728 = vmatmul.mubr.msk.f32.gmra.mxu1 %vm275_vm1, %v190_v29  ;;  %v94_v28 = vld [vmem:[%s8126_s0 + $0x268] sm:$0xff] }
  0x60   :  { %4538 = vmatprep.mubr.msk.f32.mxu0 %vm275_vm1, %v63_v30  ;;  %4730 = vmatprep.mubr.msk.f32.mxu1 %vm275_vm1, %v191_v31  ;;  %v222_v29 = vld [vmem:[%s8126_s0 + $0x668] sm:$0xff]  ;;  %v95_v30 = vld [vmem:[%s8126_s0 + $0x270] sm:$0xff] }
  0x61   :  { %v223_v31 = vld [vmem:[%s8126_s0 + $0x670] sm:$0xff] }
  0x63   :  { %4539 = vmatmul.mubr.msk.f32.gmra.mxu0 %vm275_vm1, %v64_v32  ;;  %4731 = vmatmul.mubr.msk.f32.gmra.mxu1 %vm275_vm1, %v192_v33  ;;  %v96_v32 = vld [vmem:[%s8126_s0 + $0x278] sm:$0xff] }
  0x64   :  { %4541 = vmatprep.mubr.msk.f32.mxu0 %vm275_vm1, %v65_v34  ;;  %4733 = vmatprep.mubr.msk.f32.mxu1 %vm275_vm1, %v193_v35  ;;  %v224_v33 = vld [vmem:[%s8126_s0 + $0x678] sm:$0xff]  ;;  %v97_v34 = vld [vmem:[%s8126_s0 + $0x280] sm:$0xff] }
  0x65   :  { %v225_v35 = vld [vmem:[%s8126_s0 + $0x680] sm:$0xff] }
  0x67   :  { %4542 = vmatmul.mubr.msk.f32.gmra.mxu0 %vm275_vm1, %v66_v36  ;;  %4734 = vmatmul.mubr.msk.f32.gmra.mxu1 %vm275_vm1, %v194_v37  ;;  %v98_v36 = vld [vmem:[%s8126_s0 + $0x288] sm:$0xff] }
  0x68   :  { %4544 = vmatprep.mubr.msk.f32.mxu0 %vm275_vm1, %v67_v38  ;;  %4736 = vmatprep.mubr.msk.f32.mxu1 %vm275_vm1, %v195_v39  ;;  %v226_v37 = vld [vmem:[%s8126_s0 + $0x688] sm:$0xff]  ;;  %v99_v38 = vld [vmem:[%s8126_s0 + $0x290] sm:$0xff] }
  0x69   :  { %v227_v39 = vld [vmem:[%s8126_s0 + $0x690] sm:$0xff] }
  0x6b   :  { %4545 = vmatmul.mubr.msk.f32.gmra.mxu0 %vm275_vm1, %v68_v40  ;;  %4737 = vmatmul.mubr.msk.f32.gmra.mxu1 %vm275_vm1, %v196_v41  ;;  %v100_v40 = vld [vmem:[%s8126_s0 + $0x298] sm:$0xff] }
  0x6c   :  { %4547 = vmatprep.mubr.msk.f32.mxu0 %vm275_vm1, %v69_v42  ;;  %4739 = vmatprep.mubr.msk.f32.mxu1 %vm275_vm1, %v197_v43  ;;  %v228_v41 = vld [vmem:[%s8126_s0 + $0x698] sm:$0xff]  ;;  %v101_v42 = vld [vmem:[%s8126_s0 + $0x2a0] sm:$0xff] }
  0x6d   :  { %v229_v43 = vld [vmem:[%s8126_s0 + $0x6a0] sm:$0xff] }
  0x6f   :  { %4548 = vmatmul.mubr.msk.f32.gmra.mxu0 %vm275_vm1, %v70_v44  ;;  %4740 = vmatmul.mubr.msk.f32.gmra.mxu1 %vm275_vm1, %v198_v45  ;;  %v102_v44 = vld [vmem:[%s8126_s0 + $0x2a8] sm:$0xff] }
  0x70   :  { %4550 = vmatprep.mubr.msk.f32.mxu0 %vm275_vm1, %v71_v46  ;;  %4742 = vmatprep.mubr.msk.f32.mxu1 %vm275_vm1, %v199_v47  ;;  %v230_v45 = vld [vmem:[%s8126_s0 + $0x6a8] sm:$0xff]  ;;  %v103_v46 = vld [vmem:[%s8126_s0 + $0x2b0] sm:$0xff] }
  0x71   :  { %v231_v47 = vld [vmem:[%s8126_s0 + $0x6b0] sm:$0xff] }
  0x73   :  { %4551 = vmatmul.mubr.msk.f32.gmra.mxu0 %vm275_vm1, %v72_v48  ;;  %4743 = vmatmul.mubr.msk.f32.gmra.mxu1 %vm275_vm1, %v200_v49  ;;  %v104_v48 = vld [vmem:[%s8126_s0 + $0x2b8] sm:$0xff] }
  0x74   :  { %4553 = vmatprep.mubr.msk.f32.mxu0 %vm275_vm1, %v73_v50  ;;  %4745 = vmatprep.mubr.msk.f32.mxu1 %vm275_vm1, %v201_v51  ;;  %v232_v49 = vld [vmem:[%s8126_s0 + $0x6b8] sm:$0xff]  ;;  %v105_v50 = vld [vmem:[%s8126_s0 + $0x2c0] sm:$0xff] }
  0x75   :  { %v233_v51 = vld [vmem:[%s8126_s0 + $0x6c0] sm:$0xff] }
  0x77   :  { %4554 = vmatmul.mubr.msk.f32.gmra.mxu0 %vm275_vm1, %v74_v52  ;;  %4746 = vmatmul.mubr.msk.f32.gmra.mxu1 %vm275_vm1, %v202_v53  ;;  %v106_v52 = vld [vmem:[%s8126_s0 + $0x2c8] sm:$0xff] }
  0x78   :  { %4556 = vmatprep.mubr.msk.f32.mxu0 %vm275_vm1, %v75_v54  ;;  %4748 = vmatprep.mubr.msk.f32.mxu1 %vm275_vm1, %v203_v55  ;;  %v234_v53 = vld [vmem:[%s8126_s0 + $0x6c8] sm:$0xff]  ;;  %v107_v54 = vld [vmem:[%s8126_s0 + $0x2d0] sm:$0xff] }
  0x79   :  { %v235_v55 = vld [vmem:[%s8126_s0 + $0x6d0] sm:$0xff] }
  0x7b   :  { %4557 = vmatmul.mubr.msk.f32.gmra.mxu0 %vm275_vm1, %v76_v56  ;;  %4749 = vmatmul.mubr.msk.f32.gmra.mxu1 %vm275_vm1, %v204_v57  ;;  %v108_v56 = vld [vmem:[%s8126_s0 + $0x2d8] sm:$0xff] }
  0x7c   :  { %4559 = vmatprep.mubr.msk.f32.mxu0 %vm275_vm1, %v77_v58  ;;  %4751 = vmatprep.mubr.msk.f32.mxu1 %vm275_vm1, %v205_v59  ;;  %v236_v57 = vld [vmem:[%s8126_s0 + $0x6d8] sm:$0xff]  ;;  %v109_v58 = vld [vmem:[%s8126_s0 + $0x2e0] sm:$0xff] }
  0x7d   :  { %v237_v59 = vld [vmem:[%s8126_s0 + $0x6e0] sm:$0xff] }
  0x7f   :  { %4560 = vmatmul.mubr.msk.f32.gmra.mxu0 %vm275_vm1, %v78_v60  ;;  %4752 = vmatmul.mubr.msk.f32.gmra.mxu1 %vm275_vm1, %v206_v61  ;;  %v110_v60 = vld [vmem:[%s8126_s0 + $0x2e8] sm:$0xff] }
  0x80   :  { %4562 = vmatprep.mubr.msk.f32.mxu0 %vm275_vm1, %v79_v62  ;;  %4754 = vmatprep.mubr.msk.f32.mxu1 %vm275_vm1, %v207_v63  ;;  %v238_v61 = vld [vmem:[%s8126_s0 + $0x6e8] sm:$0xff]  ;;  %v111_v62 = vld [vmem:[%s8126_s0 + $0x2f0] sm:$0xff] }
  0x81   :  { %v239_v63 = vld [vmem:[%s8126_s0 + $0x6f0] sm:$0xff] }
  0x83   :  { %4563 = vmatmul.mubr.msk.f32.gmra.mxu0 %vm275_vm1, %v80_v0  ;;  %4755 = vmatmul.mubr.msk.f32.gmra.mxu1 %vm275_vm1, %v208_v1  ;;  %v112_v0 = vld [vmem:[%s8126_s0 + $0x2f8] sm:$0xff] }
  0x84   :  { %4565 = vmatprep.mubr.msk.f32.mxu0 %vm275_vm1, %v81_v2  ;;  %4757 = vmatprep.mubr.msk.f32.mxu1 %vm275_vm1, %v209_v3  ;;  %v240_v1 = vld [vmem:[%s8126_s0 + $0x6f8] sm:$0xff]  ;;  %v113_v2 = vld [vmem:[%s8126_s0 + $0x300] sm:$0xff] }
  0x85   :  { %v241_v3 = vld [vmem:[%s8126_s0 + $0x700] sm:$0xff] }
  0x87   :  { %4566 = vmatmul.mubr.msk.f32.gmra.mxu0 %vm275_vm1, %v82_v4  ;;  %4758 = vmatmul.mubr.msk.f32.gmra.mxu1 %vm275_vm1, %v210_v5  ;;  %v114_v4 = vld [vmem:[%s8126_s0 + $0x308] sm:$0xff] }
  0x88   :  { %4568 = vmatprep.mubr.msk.f32.mxu0 %vm275_vm1, %v83_v6  ;;  %4760 = vmatprep.mubr.msk.f32.mxu1 %vm275_vm1, %v211_v7  ;;  %v242_v5 = vld [vmem:[%s8126_s0 + $0x708] sm:$0xff]  ;;  %v5679_v6 = vld [vmem:[%s8127_s2] ss:$0 sm:$0xff]  ;;  %v115_v7 = vld [vmem:[%s8126_s0 + $0x310] sm:$0xff] }
  0x8b   :  { %4569 = vmatmul.mubr.msk.f32.gmra.mxu0 %vm275_vm1, %v84_v8  ;;  %4761 = vmatmul.mubr.msk.f32.gmra.mxu1 %vm275_vm1, %v212_v9  ;;  %v243_v8 = vld [vmem:[%s8126_s0 + $0x710] sm:$0xff] }
  0x8c   :  { %4571 = vmatprep.mubr.msk.f32.mxu0 %vm275_vm1, %v85_v10  ;;  %4763 = vmatprep.mubr.msk.f32.mxu1 %vm275_vm1, %v213_v11  ;;  %v5690_v10 = vld [vmem:[%s8128_s3] ss:$0 sm:$0xff] }
  0x8f   :  { %4572 = vmatmul.mubr.msk.f32.gmra.mxu0 %vm275_vm1, %v86_v12  ;;  %4764 = vmatmul.mubr.msk.f32.gmra.mxu1 %vm275_vm1, %v214_v13 }
  0x90   :  { %4574 = vmatprep.mubr.msk.f32.mxu0 %vm275_vm1, %v87_v14  ;;  %4766 = vmatprep.mubr.msk.f32.mxu1 %vm275_vm1, %v215_v15  ;;  %v116_v14 = vld [vmem:[%s8126_s0 + $0x318] sm:$0xff] }
  0x91   :  { %v244_v15 = vld [vmem:[%s8126_s0 + $0x718] sm:$0xff] }
  0x93   :  { %4575 = vmatmul.mubr.msk.f32.gmra.mxu0 %vm275_vm1, %v88_v16  ;;  %4767 = vmatmul.mubr.msk.f32.gmra.mxu1 %vm275_vm1, %v216_v17 }
  0x94   :  { %4577 = vmatprep.mubr.msk.f32.mxu0 %vm275_vm1, %v89_v18  ;;  %4769 = vmatprep.mubr.msk.f32.mxu1 %vm275_vm1, %v217_v19  ;;  %v117_v18 = vld [vmem:[%s8126_s0 + $0x320] sm:$0xff] }
  0x95   :  { %v245_v19 = vld [vmem:[%s8126_s0 + $0x720] sm:$0xff] }
  0x97   :  { %4578 = vmatmul.mubr.msk.f32.gmra.mxu0 %vm275_vm1, %v90_v20  ;;  %4770 = vmatmul.mubr.msk.f32.gmra.mxu1 %vm275_vm1, %v218_v21 }
  0x98   :  { %4580 = vmatprep.mubr.msk.f32.mxu0 %vm275_vm1, %v91_v22  ;;  %4772 = vmatprep.mubr.msk.f32.mxu1 %vm275_vm1, %v219_v23 }
  0x9b   :  { %4581 = vmatmul.mubr.msk.f32.gmra.mxu0 %vm275_vm1, %v92_v24  ;;  %4773 = vmatmul.mubr.msk.f32.gmra.mxu1 %vm275_vm1, %v220_v25 }
  0x9c   :  { %4583 = vmatprep.mubr.msk.f32.mxu0 %vm275_vm1, %v93_v26  ;;  %4775 = vmatprep.mubr.msk.f32.mxu1 %vm275_vm1, %v221_v27  ;;  %v118_v26 = vld [vmem:[%s8126_s0 + $0x328] sm:$0xff] }
  0x9d   :  { %v246_v27 = vld [vmem:[%s8126_s0 + $0x728] sm:$0xff] }
  0x9f   :  { %4584 = vmatmul.mubr.msk.f32.gmra.mxu0 %vm275_vm1, %v94_v28  ;;  %4776 = vmatmul.mubr.msk.f32.gmra.mxu1 %vm275_vm1, %v222_v29 }
  0xa0   :  { %4586 = vmatprep.mubr.msk.f32.mxu0 %vm275_vm1, %v95_v30  ;;  %4778 = vmatprep.mubr.msk.f32.mxu1 %vm275_vm1, %v223_v31 }
  0xa3   :  { %4587 = vmatmul.mubr.msk.f32.gmra.mxu0 %vm275_vm1, %v96_v32  ;;  %4779 = vmatmul.mubr.msk.f32.gmra.mxu1 %vm275_vm1, %v224_v33 }
  0xa4   :  { %4589 = vmatprep.mubr.msk.f32.mxu0 %vm275_vm1, %v97_v34  ;;  %4781 = vmatprep.mubr.msk.f32.mxu1 %vm275_vm1, %v225_v35 }
  0xa7   :  { %4590 = vmatmul.mubr.msk.f32.gmra.mxu0 %vm275_vm1, %v98_v36  ;;  %4782 = vmatmul.mubr.msk.f32.gmra.mxu1 %vm275_vm1, %v226_v37  ;;  %v119_v36 = vld [vmem:[%s8126_s0 + $0x330] sm:$0xff] }
  0xa8   :  { %4592 = vmatprep.mubr.msk.f32.mxu0 %vm275_vm1, %v99_v38  ;;  %4784 = vmatprep.mubr.msk.f32.mxu1 %vm275_vm1, %v227_v39 }
  0xab   :  { %4593 = vmatmul.mubr.msk.f32.gmra.mxu0 %vm275_vm1, %v100_v40  ;;  %4785 = vmatmul.mubr.msk.f32.gmra.mxu1 %vm275_vm1, %v228_v41  ;;  %v247_v41 = vld [vmem:[%s8126_s0 + $0x730] sm:$0xff] }
  0xac   :  { %4595 = vmatprep.mubr.msk.f32.mxu0 %vm275_vm1, %v101_v42  ;;  %4787 = vmatprep.mubr.msk.f32.mxu1 %vm275_vm1, %v229_v43 }
  0xaf   :  { %4596 = vmatmul.mubr.msk.f32.gmra.mxu0 %vm275_vm1, %v102_v44  ;;  %4788 = vmatmul.mubr.msk.f32.gmra.mxu1 %vm275_vm1, %v230_v45 }
  0xb0   :  { %4598 = vmatprep.mubr.msk.f32.mxu0 %vm275_vm1, %v103_v46  ;;  %4790 = vmatprep.mubr.msk.f32.mxu1 %vm275_vm1, %v231_v47 }
  0xb3   :  { %4599 = vmatmul.mubr.msk.f32.gmra.mxu0 %vm275_vm1, %v104_v48  ;;  %4791 = vmatmul.mubr.msk.f32.gmra.mxu1 %vm275_vm1, %v232_v49 }
  0xb4   :  { %4601 = vmatprep.mubr.msk.f32.mxu0 %vm275_vm1, %v105_v50  ;;  %4793 = vmatprep.mubr.msk.f32.mxu1 %vm275_vm1, %v233_v51  ;;  %v120_v50 = vld [vmem:[%s8126_s0 + $0x338] sm:$0xff] }
  0xb5   :  { %v248_v51 = vld [vmem:[%s8126_s0 + $0x738] sm:$0xff] }
  0xb7   :  { %4602 = vmatmul.mubr.msk.f32.gmra.mxu0 %vm275_vm1, %v106_v52  ;;  %4794 = vmatmul.mubr.msk.f32.gmra.mxu1 %vm275_vm1, %v234_v53 }
  0xb8   :  { %4604 = vmatprep.mubr.msk.f32.mxu0 %vm275_vm1, %v107_v54  ;;  %4796 = vmatprep.mubr.msk.f32.mxu1 %vm275_vm1, %v235_v55 }
  0xbb   :  { %4605 = vmatmul.mubr.msk.f32.gmra.mxu0 %vm275_vm1, %v108_v56  ;;  %4797 = vmatmul.mubr.msk.f32.gmra.mxu1 %vm275_vm1, %v236_v57 }
  0xbc   :  { %4607 = vmatprep.mubr.msk.f32.mxu0 %vm275_vm1, %v109_v58  ;;  %4799 = vmatprep.mubr.msk.f32.mxu1 %vm275_vm1, %v237_v59  ;;  %v121_v58 = vld [vmem:[%s8126_s0 + $0x340] sm:$0xff] }
  0xbd   :  { %v249_v59 = vld [vmem:[%s8126_s0 + $0x740] sm:$0xff] }
  0xbf   :  { %4608 = vmatmul.mubr.msk.f32.gmra.mxu0 %vm275_vm1, %v110_v60  ;;  %4800 = vmatmul.mubr.msk.f32.gmra.mxu1 %vm275_vm1, %v238_v61 }
  0xc0   :  { %4610 = vmatprep.mubr.msk.f32.mxu0 %vm275_vm1, %v111_v62  ;;  %4802 = vmatprep.mubr.msk.f32.mxu1 %vm275_vm1, %v239_v63 }
  0xc3   :  { %4611 = vmatmul.mubr.msk.f32.gmra.mxu0 %vm275_vm1, %v112_v0  ;;  %4803 = vmatmul.mubr.msk.f32.gmra.mxu1 %vm275_vm1, %v240_v1 }
  0xc4   :  { %4613 = vmatprep.mubr.msk.f32.mxu0 %vm275_vm1, %v113_v2  ;;  %4805 = vmatprep.mubr.msk.f32.mxu1 %vm275_vm1, %v241_v3 }
  0xc7   :  { %v4471_v9 = vpop.f32.mrf.mxu0  ;;  %4614 = vmatmul.mubr.msk.f32.gmra.mxu0 %vm275_vm1, %v114_v4  ;;  %v4663_v11 = vpop.f32.mrf.mxu1  ;;  %4806 = vmatmul.mubr.msk.f32.gmra.mxu1 %vm275_vm1, %v242_v5 }
  0xc8   :  { %v2401_v12 = vmul.f32 %v4471_v9, %v5679_v6  ;;  %v2529_v13 = vmul.f32 %v4663_v11, %v5679_v6  ;;  %4616 = vmatprep.mubr.msk.f32.mxu0 %vm275_vm1, %v115_v7  ;;  %4808 = vmatprep.mubr.msk.f32.mxu1 %vm275_vm1, %v243_v8  ;;  %v122_v7 = vld [vmem:[%s8126_s0 + $0x348] sm:$0xff] }
  0xc9   :  { %v1114_v16 = vpop.f32.mrf.mxu0  ;;  %v1754_v17 = vpop.f32.mrf.mxu1 }
  0xca   :  { %v2664_v20 = vadd.f32 %v5690_v10, %v2401_v12  ;;  %v2792_v21 = vadd.f32 %v5690_v10, %v2529_v13  ;;  %v2400_v22 = vmul.f32 %v5679_v6, %v1114_v16  ;;  %v2528_v23 = vmul.f32 %v5679_v6, %v1754_v17  ;;  %v123_v16 = vld [vmem:[%s8126_s0 + $0x350] sm:$0xff] }
  0xcb   :  { %v4474_v24 = vpop.f32.mrf.mxu0  ;;  %4617 = vmatmul.mubr.msk.f32.gmra.mxu0 %vm275_vm1, %v116_v14  ;;  %v4666_v25 = vpop.f32.mrf.mxu1  ;;  %4809 = vmatmul.mubr.msk.f32.gmra.mxu1 %vm275_vm1, %v244_v15  ;;  %v250_v15 = vld [vmem:[%s8126_s0 + $0x748] sm:$0xff]  ;;  %v251_v17 = vld [vmem:[%s8126_s0 + $0x750] sm:$0xff] }
  0xcc   :  { %vm2920_vm3 = vcmp.ge.f32.partialorder %v2664_v20, 0.0  ;;  %v3176_v28 = vmul.f32 0.01, %v2664_v20  ;;  %vm3048_vm4 = vcmp.ge.f32.partialorder %v2792_v21, 0.0  ;;  %v3304_v29 = vmul.f32 0.01, %v2792_v21  ;;  %4619 = vmatprep.mubr.msk.f32.mxu0 %vm275_vm1, %v117_v18  ;;  %4811 = vmatprep.mubr.msk.f32.mxu1 %vm275_vm1, %v245_v19 }
  0xcd   :  { %v2663_v30 = vadd.f32 %v5690_v10, %v2400_v22  ;;  %v2791_v31 = vadd.f32 %v5690_v10, %v2528_v23  ;;  %v2403_v32 = vmul.f32 %v4474_v24, %v5679_v6  ;;  %v2531_v33 = vmul.f32 %v4666_v25, %v5679_v6  ;;  %v1124_v34 = vpop.f32.mrf.mxu0  ;;  %v1764_v35 = vpop.f32.mrf.mxu1 }
  0xce   :  { %v3432_v37 = vsel %vm2920_vm3, %v2664_v20, %v3176_v28  ;;  %v3560_v38 = vsel %vm3048_vm4, %v2792_v21, %v3304_v29  ;;  %v2402_v39 = vmul.f32 %v5679_v6, %v1124_v34  ;;  %v2530_v40 = vmul.f32 %v5679_v6, %v1764_v35 }
  0xcf   :  { %3689 = vst.msk [vmem:[%s8129_s4 + $0x8] sm:$0xff] %vm3687_vm2, %v3432_v37  ;;  %3817 = vst.msk [vmem:[%s8129_s4 + $0x408] sm:$0xff] %vm3687_vm2, %v3560_v38  ;;  %vm2919_vm5 = vcmp.ge.f32.partialorder %v2663_v30, 0.0  ;;  %v3175_v42 = vmul.f32 0.01, %v2663_v30  ;;  %vm3047_vm6 = vcmp.ge.f32.partialorder %v2791_v31, 0.0  ;;  %v4477_v44 = vpop.f32.mrf.mxu0  ;;  %4620 = vmatmul.mubr.msk.f32.gmra.mxu0 %vm275_vm1, %v118_v26  ;;  %v4669_v45 = vpop.f32.mrf.mxu1  ;;  %4812 = vmatmul.mubr.msk.f32.gmra.mxu1 %vm275_vm1, %v246_v27  ;;  %v2666_v46 = vadd.f32 %v5690_v10, %v2403_v32 }
  0xd0   :  { %v3303_v43 = vmul.f32 0.01, %v2791_v31  ;;  %v2794_v47 = vadd.f32 %v5690_v10, %v2531_v33  ;;  %v2665_v48 = vadd.f32 %v5690_v10, %v2402_v39  ;;  %v2793_v49 = vadd.f32 %v5690_v10, %v2530_v40  ;;  %4622 = vmatprep.mubr.msk.f32.mxu0 %vm275_vm1, %v119_v36  ;;  %4814 = vmatprep.mubr.msk.f32.mxu1 %vm275_vm1, %v247_v41  ;;  %v125_v32 = vld [vmem:[%s8126_s0 + $0x360] sm:$0xff] }
  0xd1   :  { %v3431_v52 = vsel %vm2919_vm5, %v2663_v30, %v3175_v42  ;;  %v2405_v54 = vmul.f32 %v4477_v44, %v5679_v6  ;;  %v2533_v55 = vmul.f32 %v4669_v45, %v5679_v6  ;;  %v1134_v56 = vpop.f32.mrf.mxu0  ;;  %v1774_v57 = vpop.f32.mrf.mxu1  ;;  %vm2922_vm7 = vcmp.ge.f32.partialorder %v2666_v46, 0.0  ;;  %v124_v30 = vld [vmem:[%s8126_s0 + $0x358] sm:$0xff]  ;;  %v253_v41 = vld [vmem:[%s8126_s0 + $0x760] sm:$0xff] }
  0xd2   :  { %v3559_v53 = vsel %vm3047_vm6, %v2791_v31, %v3303_v43  ;;  %3688 = vst.msk [vmem:[%s8129_s4] sm:$0xff] %vm3687_vm2, %v3431_v52  ;;  %v3178_v60 = vmul.f32 0.01, %v2666_v46  ;;  %vm3050_vm8 = vcmp.ge.f32.partialorder %v2794_v47, 0.0  ;;  %v3306_v61 = vmul.f32 0.01, %v2794_v47 }
  0xd3   :  { %3816 = vst.msk [vmem:[%s8129_s4 + $0x400] sm:$0xff] %vm3687_vm2, %v3559_v53  ;;  %vm2921_vm9 = vcmp.ge.f32.partialorder %v2665_v48, 0.0  ;;  %v3177_v62 = vmul.f32 0.01, %v2665_v48  ;;  %vm3049_vm10 = vcmp.ge.f32.partialorder %v2793_v49, 0.0  ;;  %v4480_v0 = vpop.f32.mrf.mxu0  ;;  %4623 = vmatmul.mubr.msk.f32.gmra.mxu0 %vm275_vm1, %v120_v50  ;;  %v4672_v1 = vpop.f32.mrf.mxu1  ;;  %4815 = vmatmul.mubr.msk.f32.gmra.mxu1 %vm275_vm1, %v248_v51  ;;  %v2668_v4 = vadd.f32 %v5690_v10, %v2405_v54  ;;  %v252_v31 = vld [vmem:[%s8126_s0 + $0x758] sm:$0xff] }
  0xd4   :  { %v3305_v63 = vmul.f32 0.01, %v2793_v49  ;;  %v3434_v2 = vsel %vm2922_vm7, %v2666_v46, %v3178_v60  ;;  %v3562_v3 = vsel %vm3050_vm8, %v2794_v47, %v3306_v61  ;;  %v2796_v5 = vadd.f32 %v5690_v10, %v2533_v55  ;;  %4625 = vmatprep.mubr.msk.f32.mxu0 %vm275_vm1, %v121_v58  ;;  %4817 = vmatprep.mubr.msk.f32.mxu1 %vm275_vm1, %v249_v59  ;;  %v127_v50 = vld [vmem:[%s8126_s0 + $0x370] sm:$0xff] }
  0xd5   :  { %3691 = vst.msk [vmem:[%s8129_s4 + $0x18] sm:$0xff] %vm3687_vm2, %v3434_v2  ;;  %3819 = vst.msk [vmem:[%s8129_s4 + $0x418] sm:$0xff] %vm3687_vm2, %v3562_v3  ;;  %v3433_v8 = vsel %vm2921_vm9, %v2665_v48, %v3177_v62  ;;  %v2404_v11 = vmul.f32 %v5679_v6, %v1134_v56  ;;  %v2532_v12 = vmul.f32 %v5679_v6, %v1774_v57  ;;  %v1144_v13 = vpop.f32.mrf.mxu0  ;;  %v1784_v14 = vpop.f32.mrf.mxu1  ;;  %vm2924_vm11 = vcmp.ge.f32.partialorder %v2668_v4, 0.0  ;;  %v126_v48 = vld [vmem:[%s8126_s0 + $0x368] sm:$0xff]  ;;  %v255_v61 = vld [vmem:[%s8126_s0 + $0x770] sm:$0xff] }
  0xd6   :  { %v3561_v9 = vsel %vm3049_vm10, %v2793_v49, %v3305_v63  ;;  %3690 = vst.msk [vmem:[%s8129_s4 + $0x10] sm:$0xff] %vm3687_vm2, %v3433_v8  ;;  %v3180_v18 = vmul.f32 0.01, %v2668_v4  ;;  %vm3052_vm12 = vcmp.ge.f32.partialorder %v2796_v5, 0.0  ;;  %v3308_v19 = vmul.f32 0.01, %v2796_v5 }
  0xd7   :  { %3818 = vst.msk [vmem:[%s8129_s4 + $0x410] sm:$0xff] %vm3687_vm2, %v3561_v9  ;;  %v2667_v20 = vadd.f32 %v5690_v10, %v2404_v11  ;;  %v2795_v21 = vadd.f32 %v5690_v10, %v2532_v12  ;;  %v2407_v22 = vmul.f32 %v4480_v0, %v5679_v6  ;;  %v2535_v23 = vmul.f32 %v4672_v1, %v5679_v6  ;;  %v4483_v24 = vpop.f32.mrf.mxu0  ;;  %v4675_v25 = vpop.f32.mrf.mxu1  ;;  %v254_v49 = vld [vmem:[%s8126_s0 + $0x768] sm:$0xff] }
  0xd8   :  { %4626 = vmatmul.mubr.msk.f32.gmra.mxu0 %vm275_vm1, %v122_v7  ;;  %v3436_v26 = vsel %vm2924_vm11, %v2668_v4, %v3180_v18  ;;  %v3564_v27 = vsel %vm3052_vm12, %v2796_v5, %v3308_v19  ;;  %v2406_v28 = vmul.f32 %v5679_v6, %v1144_v13  ;;  %v2534_v29 = vmul.f32 %v5679_v6, %v1784_v14  ;;  %v128_v4 = vld [vmem:[%s8126_s0 + $0x378] sm:$0xff] }
  0xd9   :  { %4818 = vmatmul.mubr.msk.f32.gmra.mxu1 %vm275_vm1, %v250_v15  ;;  %3693 = vst.msk [vmem:[%s8129_s4 + $0x28] sm:$0xff] %vm3687_vm2, %v3436_v26  ;;  %3821 = vst.msk [vmem:[%s8129_s4 + $0x428] sm:$0xff] %vm3687_vm2, %v3564_v27  ;;  %vm2923_vm13 = vcmp.ge.f32.partialorder %v2667_v20, 0.0  ;;  %v3179_v33 = vmul.f32 0.01, %v2667_v20  ;;  %vm3051_vm14 = vcmp.ge.f32.partialorder %v2795_v21, 0.0  ;;  %v1154_v35 = vpop.f32.mrf.mxu0  ;;  %v1794_v36 = vpop.f32.mrf.mxu1  ;;  %4628 = vmatprep.mubr.msk.f32.mxu0 %vm275_vm1, %v123_v16  ;;  %v2670_v37 = vadd.f32 %v5690_v10, %v2407_v22 }
  0xda   :  { %v3307_v34 = vmul.f32 0.01, %v2795_v21  ;;  %4820 = vmatprep.mubr.msk.f32.mxu1 %vm275_vm1, %v251_v17  ;;  %v2798_v38 = vadd.f32 %v5690_v10, %v2535_v23  ;;  %v2669_v39 = vadd.f32 %v5690_v10, %v2406_v28  ;;  %v2797_v40 = vadd.f32 %v5690_v10, %v2534_v29  ;;  %v256_v15 = vld [vmem:[%s8126_s0 + $0x778] sm:$0xff] }
  0xdb   :  { %v3435_v42 = vsel %vm2923_vm13, %v2667_v20, %v3179_v33  ;;  %v2409_v44 = vmul.f32 %v4483_v24, %v5679_v6  ;;  %v2537_v45 = vmul.f32 %v4675_v25, %v5679_v6  ;;  %v4486_v46 = vpop.f32.mrf.mxu0  ;;  %v4678_v47 = vpop.f32.mrf.mxu1  ;;  %vm2926_vm15 = vcmp.ge.f32.partialorder %v2670_v37, 0.0  ;;  %v129_v20 = vld [vmem:[%s8126_s0 + $0x380] sm:$0xff] }
  0xdc   :  { %v3563_v43 = vsel %vm3051_vm14, %v2795_v21, %v3307_v34  ;;  %4629 = vmatmul.mubr.msk.f32.gmra.mxu0 %vm275_vm1, %v124_v30  ;;  %3692 = vst.msk [vmem:[%s8129_s4 + $0x20] sm:$0xff] %vm3687_vm2, %v3435_v42  ;;  %v3182_v51 = vmul.f32 0.01, %v2670_v37  ;;  %vm3054_vm0 = vcmp.ge.f32.partialorder %v2798_v38, 0.0  ;;  %v3310_v52 = vmul.f32 0.01, %v2798_v38 }
  0xdd   :  { %3820 = vst.msk [vmem:[%s8129_s4 + $0x420] sm:$0xff] %vm3687_vm2, %v3563_v43  ;;  %4821 = vmatmul.mubr.msk.f32.gmra.mxu1 %vm275_vm1, %v252_v31  ;;  %4631 = vmatprep.mubr.msk.f32.mxu0 %vm275_vm1, %v125_v32  ;;  %vm2925_vm3 = vcmp.ge.f32.partialorder %v2669_v39, 0.0  ;;  %v3181_v53 = vmul.f32 0.01, %v2669_v39  ;;  %vm3053_vm4 = vcmp.ge.f32.partialorder %v2797_v40, 0.0  ;;  %v1164_v55 = vpop.f32.mrf.mxu0  ;;  %v1804_v56 = vpop.f32.mrf.mxu1  ;;  %v2672_v59 = vadd.f32 %v5690_v10, %v2409_v44  ;;  %v257_v21 = vld [vmem:[%s8126_s0 + $0x780] sm:$0xff] }
  0xde   :  { %v3309_v54 = vmul.f32 0.01, %v2797_v40  ;;  %4823 = vmatprep.mubr.msk.f32.mxu1 %vm275_vm1, %v253_v41  ;;  %v3438_v57 = vsel %vm2926_vm15, %v2670_v37, %v3182_v51  ;;  %v3566_v58 = vsel %vm3054_vm0, %v2798_v38, %v3310_v52  ;;  %v2800_v60 = vadd.f32 %v5690_v10, %v2537_v45  ;;  %v130_v30 = vld [vmem:[%s8126_s0 + $0x388] sm:$0xff]  ;;  %v131_v38 = vld [vmem:[%s8126_s0 + $0x390] sm:$0xff] }
  0xdf   :  { %3695 = vst.msk [vmem:[%s8129_s4 + $0x38] sm:$0xff] %vm3687_vm2, %v3438_v57  ;;  %3823 = vst.msk [vmem:[%s8129_s4 + $0x438] sm:$0xff] %vm3687_vm2, %v3566_v58  ;;  %v3437_v62 = vsel %vm2925_vm3, %v2669_v39, %v3181_v53  ;;  %v2408_v0 = vmul.f32 %v5679_v6, %v1154_v35  ;;  %v2536_v1 = vmul.f32 %v5679_v6, %v1794_v36  ;;  %v4489_v2 = vpop.f32.mrf.mxu0  ;;  %v4681_v3 = vpop.f32.mrf.mxu1  ;;  %vm2928_vm5 = vcmp.ge.f32.partialorder %v2672_v59, 0.0  ;;  %v258_v37 = vld [vmem:[%s8126_s0 + $0x788] sm:$0xff]  ;;  %v259_v39 = vld [vmem:[%s8126_s0 + $0x790] sm:$0xff] }
  0xe0   :  { %v3565_v63 = vsel %vm3053_vm4, %v2797_v40, %v3309_v54  ;;  %4632 = vmatmul.mubr.msk.f32.gmra.mxu0 %vm275_vm1, %v126_v48  ;;  %3694 = vst.msk [vmem:[%s8129_s4 + $0x30] sm:$0xff] %vm3687_vm2, %v3437_v62  ;;  %v3184_v5 = vmul.f32 0.01, %v2672_v59  ;;  %vm3056_vm6 = vcmp.ge.f32.partialorder %v2800_v60, 0.0  ;;  %v3312_v7 = vmul.f32 0.01, %v2800_v60 }
  0xe1   :  { %3822 = vst.msk [vmem:[%s8129_s4 + $0x430] sm:$0xff] %vm3687_vm2, %v3565_v63  ;;  %4824 = vmatmul.mubr.msk.f32.gmra.mxu1 %vm275_vm1, %v254_v49  ;;  %4634 = vmatprep.mubr.msk.f32.mxu0 %vm275_vm1, %v127_v50  ;;  %v2671_v8 = vadd.f32 %v5690_v10, %v2408_v0  ;;  %v2799_v9 = vadd.f32 %v5690_v10, %v2536_v1  ;;  %v1174_v13 = vpop.f32.mrf.mxu0  ;;  %v1814_v14 = vpop.f32.mrf.mxu1  ;;  %v132_v50 = vld [vmem:[%s8126_s0 + $0x398] sm:$0xff]  ;;  %v133_v58 = vld [vmem:[%s8126_s0 + $0x3a0] sm:$0xff] }
  0xe2   :  { %v2411_v11 = vmul.f32 %v4486_v46, %v5679_v6  ;;  %v2539_v12 = vmul.f32 %v4678_v47, %v5679_v6  ;;  %4826 = vmatprep.mubr.msk.f32.mxu1 %vm275_vm1, %v255_v61  ;;  %v3440_v16 = vsel %vm2928_vm5, %v2672_v59, %v3184_v5  ;;  %v3568_v17 = vsel %vm3056_vm6, %v2800_v60, %v3312_v7  ;;  %v260_v57 = vld [vmem:[%s8126_s0 + $0x798] sm:$0xff]  ;;  %v261_v59 = vld [vmem:[%s8126_s0 + $0x7a0] sm:$0xff] }
  0xe3   :  { %v2410_v18 = vmul.f32 %v5679_v6, %v1164_v55  ;;  %v2538_v19 = vmul.f32 %v5679_v6, %v1804_v56  ;;  %3697 = vst.msk [vmem:[%s8129_s4 + $0x48] sm:$0xff] %vm3687_vm2, %v3440_v16  ;;  %3825 = vst.msk [vmem:[%s8129_s4 + $0x448] sm:$0xff] %vm3687_vm2, %v3568_v17  ;;  %vm2927_vm7 = vcmp.ge.f32.partialorder %v2671_v8, 0.0  ;;  %v3183_v22 = vmul.f32 0.01, %v2671_v8  ;;  %v4492_v24 = vpop.f32.mrf.mxu0  ;;  %v4684_v25 = vpop.f32.mrf.mxu1 }
  0xe4   :  { %vm3055_vm8 = vcmp.ge.f32.partialorder %v2799_v9, 0.0  ;;  %v3311_v23 = vmul.f32 0.01, %v2799_v9  ;;  %4635 = vmatmul.mubr.msk.f32.gmra.mxu0 %vm275_vm1, %v128_v4  ;;  %v2674_v26 = vadd.f32 %v5690_v10, %v2411_v11  ;;  %v2802_v27 = vadd.f32 %v5690_v10, %v2539_v12  ;;  %v262_v11 = vld [vmem:[%s8126_s0 + $0x7a8] sm:$0xff]  ;;  %v135_v12 = vld [vmem:[%s8126_s0 + $0x3b0] sm:$0xff] }
  0xe5   :  { %v2673_v28 = vadd.f32 %v5690_v10, %v2410_v18  ;;  %v2801_v29 = vadd.f32 %v5690_v10, %v2538_v19  ;;  %4827 = vmatmul.mubr.msk.f32.gmra.mxu1 %vm275_vm1, %v256_v15  ;;  %v3439_v31 = vsel %vm2927_vm7, %v2671_v8, %v3183_v22  ;;  %v2413_v33 = vmul.f32 %v4489_v2, %v5679_v6  ;;  %v1184_v35 = vpop.f32.mrf.mxu0  ;;  %v1824_v36 = vpop.f32.mrf.mxu1 }
  0xe6   :  { %v3567_v32 = vsel %vm3055_vm8, %v2799_v9, %v3311_v23  ;;  %v2541_v34 = vmul.f32 %v4681_v3, %v5679_v6  ;;  %4637 = vmatprep.mubr.msk.f32.mxu0 %vm275_vm1, %v129_v20  ;;  %3696 = vst.msk [vmem:[%s8129_s4 + $0x40] sm:$0xff] %vm3687_vm2, %v3439_v31  ;;  %vm2930_vm9 = vcmp.ge.f32.partialorder %v2674_v26, 0.0  ;;  %v3186_v40 = vmul.f32 0.01, %v2674_v26  ;;  %4829 = vmatprep.mubr.msk.f32.mxu1 %vm275_vm1, %v257_v21  ;;  %v134_v9 = vld [vmem:[%s8126_s0 + $0x3a8] sm:$0xff]  ;;  %v263_v21 = vld [vmem:[%s8126_s0 + $0x7b0] sm:$0xff] }
  0xe7   :  { %3824 = vst.msk [vmem:[%s8129_s4 + $0x440] sm:$0xff] %vm3687_vm2, %v3567_v32  ;;  %vm3058_vm10 = vcmp.ge.f32.partialorder %v2802_v27, 0.0  ;;  %v3314_v41 = vmul.f32 0.01, %v2802_v27  ;;  %vm2929_vm11 = vcmp.ge.f32.partialorder %v2673_v28, 0.0  ;;  %vm3057_vm12 = vcmp.ge.f32.partialorder %v2801_v29, 0.0  ;;  %v4495_v44 = vpop.f32.mrf.mxu0  ;;  %v4687_v45 = vpop.f32.mrf.mxu1 }
  0xe8   :  { %v3185_v42 = vmul.f32 0.01, %v2673_v28  ;;  %v3313_v43 = vmul.f32 0.01, %v2801_v29  ;;  %4638 = vmatmul.mubr.msk.f32.gmra.mxu0 %vm275_vm1, %v130_v30  ;;  %v3442_v46 = vsel %vm2930_vm9, %v2674_v26, %v3186_v40  ;;  %v2676_v48 = vadd.f32 %v5690_v10, %v2413_v33  ;;  %v137_v30 = vld [vmem:[%s8126_s0 + $0x3c0] sm:$0xff] }
  0xe9   :  { %v3570_v47 = vsel %vm3058_vm10, %v2802_v27, %v3314_v41  ;;  %v2804_v49 = vadd.f32 %v5690_v10, %v2541_v34  ;;  %4830 = vmatmul.mubr.msk.f32.gmra.mxu1 %vm275_vm1, %v258_v37  ;;  %3699 = vst.msk [vmem:[%s8129_s4 + $0x58] sm:$0xff] %vm3687_vm2, %v3442_v46  ;;  %v2412_v53 = vmul.f32 %v5679_v6, %v1174_v13  ;;  %v5968_v55 = vpop.f32.mrf.mxu0  ;;  %v5970_v56 = vpop.f32.mrf.mxu1  ;;  %v265_v41 = vld [vmem:[%s8126_s0 + $0x7c0] sm:$0xff] }
  0xea   :  { %3827 = vst.msk [vmem:[%s8129_s4 + $0x458] sm:$0xff] %vm3687_vm2, %v3570_v47  ;;  %v3441_v51 = vsel %vm2929_vm11, %v2673_v28, %v3185_v42  ;;  %v3569_v52 = vsel %vm3057_vm12, %v2801_v29, %v3313_v43  ;;  %v2540_v54 = vmul.f32 %v5679_v6, %v1814_v14  ;;  %4640 = vmatprep.mubr.msk.f32.mxu0 %vm275_vm1, %v131_v38  ;;  %vm2932_vm13 = vcmp.ge.f32.partialorder %v2676_v48, 0.0  ;;  %v136_v28 = vld [vmem:[%s8126_s0 + $0x3b8] sm:$0xff] }
  0xeb   :  { %3698 = vst.msk [vmem:[%s8129_s4 + $0x50] sm:$0xff] %vm3687_vm2, %v3441_v51  ;;  %3826 = vst.msk [vmem:[%s8129_s4 + $0x450] sm:$0xff] %vm3687_vm2, %v3569_v52  ;;  %v3188_v60 = vmul.f32 0.01, %v2676_v48  ;;  %vm3060_vm14 = vcmp.ge.f32.partialorder %v2804_v49, 0.0  ;;  %4832 = vmatprep.mubr.msk.f32.mxu1 %vm275_vm1, %v259_v39  ;;  %v2675_v62 = vadd.f32 %v5690_v10, %v2412_v53  ;;  %v2415_v0 = vmul.f32 %v4492_v24, %v5679_v6  ;;  %v5995_v2 = vpop.f32.mrf.mxu0  ;;  %v5998_v3 = vpop.f32.mrf.mxu1  ;;  %v264_v29 = vld [vmem:[%s8126_s0 + $0x7b8] sm:$0xff] }
  0xec   :  { %v3316_v61 = vmul.f32 0.01, %v2804_v49  ;;  %v2803_v63 = vadd.f32 %v5690_v10, %v2540_v54  ;;  %v2543_v1 = vmul.f32 %v4684_v25, %v5679_v6  ;;  %4641 = vmatmul.mubr.msk.f32.gmra.mxu0 %vm275_vm1, %v132_v50  ;;  %v2414_v7 = vmul.f32 %v5679_v6, %v1184_v35 }
  0xed   :  { %v3444_v4 = vsel %vm2932_vm13, %v2676_v48, %v3188_v60  ;;  %v2542_v8 = vmul.f32 %v5679_v6, %v1824_v36  ;;  %4833 = vmatmul.mubr.msk.f32.gmra.mxu1 %vm275_vm1, %v260_v57  ;;  %vm2931_vm15 = vcmp.ge.f32.partialorder %v2675_v62, 0.0  ;;  %v3187_v13 = vmul.f32 0.01, %v2675_v62  ;;  %v6020_v15 = vpop.f32.mrf.mxu0  ;;  %v6022_v16 = vpop.f32.mrf.mxu1  ;;  %4643 = vmatprep.mubr.msk.f32.mxu0 %vm275_vm1, %v133_v58  ;;  %v138_v48 = vld [vmem:[%s8126_s0 + $0x3c8] sm:$0xff] }
  0xee   :  { %v3572_v5 = vsel %vm3060_vm14, %v2804_v49, %v3316_v61  ;;  %3701 = vst.msk [vmem:[%s8129_s4 + $0x68] sm:$0xff] %vm3687_vm2, %v3444_v4  ;;  %vm3059_vm0 = vcmp.ge.f32.partialorder %v2803_v63, 0.0  ;;  %v3315_v14 = vmul.f32 0.01, %v2803_v63  ;;  %4835 = vmatprep.mubr.msk.f32.mxu1 %vm275_vm1, %v261_v59  ;;  %v2678_v17 = vadd.f32 %v5690_v10, %v2415_v0  ;;  %v266_v57 = vld [vmem:[%s8126_s0 + $0x7c8] sm:$0xff] }
  0xef   :  { %3829 = vst.msk [vmem:[%s8129_s4 + $0x468] sm:$0xff] %vm3687_vm2, %v3572_v5  ;;  %v2806_v18 = vadd.f32 %v5690_v10, %v2543_v1  ;;  %v2677_v19 = vadd.f32 %v5690_v10, %v2414_v7  ;;  %v2805_v20 = vadd.f32 %v5690_v10, %v2542_v8  ;;  %v3443_v22 = vsel %vm2931_vm15, %v2675_v62, %v3187_v13  ;;  %v6035_v26 = vpop.f32.mrf.mxu0  ;;  %v6038_v27 = vpop.f32.mrf.mxu1  ;;  %v139_v62 = vld [vmem:[%s8126_s0 + $0x3d0] sm:$0xff] }
  0xf0   :  { %v3571_v23 = vsel %vm3059_vm0, %v2803_v63, %v3315_v14  ;;  %v2417_v24 = vmul.f32 %v4495_v44, %v5679_v6  ;;  %v2545_v25 = vmul.f32 %v4687_v45, %v5679_v6  ;;  %4644 = vmatmul.mubr.msk.f32.gmra.mxu0 %vm275_vm1, %v134_v9  ;;  %3700 = vst.msk [vmem:[%s8129_s4 + $0x60] sm:$0xff] %vm3687_vm2, %v3443_v22  ;;  %vm2934_vm3 = vcmp.ge.f32.partialorder %v2678_v17, 0.0  ;;  %v267_v63 = vld [vmem:[%s8126_s0 + $0x7d0] sm:$0xff]  ;;  %v140_v9 = vld [vmem:[%s8126_s0 + $0x3d8] sm:$0xff] }
  0xf1   :  { %3828 = vst.msk [vmem:[%s8129_s4 + $0x460] sm:$0xff] %vm3687_vm2, %v3571_v23  ;;  %v3190_v31 = vmul.f32 0.01, %v2678_v17  ;;  %vm3062_vm4 = vcmp.ge.f32.partialorder %v2806_v18, 0.0  ;;  %v3318_v32 = vmul.f32 0.01, %v2806_v18  ;;  %4836 = vmatmul.mubr.msk.f32.gmra.mxu1 %vm275_vm1, %v262_v11  ;;  %4646 = vmatprep.mubr.msk.f32.mxu0 %vm275_vm1, %v135_v12  ;;  %v6059_v35 = vpop.f32.mrf.mxu0  ;;  %v6061_v36 = vpop.f32.mrf.mxu1  ;;  %v2416_v44 = vmul.f32 %v5679_v6, %v5968_v55 }
  0xf2   :  { %vm2933_vm5 = vcmp.ge.f32.partialorder %v2677_v19, 0.0  ;;  %v3189_v33 = vmul.f32 0.01, %v2677_v19  ;;  %vm3061_vm6 = vcmp.ge.f32.partialorder %v2805_v20, 0.0  ;;  %v3317_v34 = vmul.f32 0.01, %v2805_v20  ;;  %4838 = vmatprep.mubr.msk.f32.mxu1 %vm275_vm1, %v263_v21 }
  0xf3   :  { %v3446_v37 = vsel %vm2934_vm3, %v2678_v17, %v3190_v31  ;;  %v3574_v38 = vsel %vm3062_vm4, %v2806_v18, %v3318_v32  ;;  %v2680_v39 = vadd.f32 %v5690_v10, %v2417_v24  ;;  %v2808_v40 = vadd.f32 %v5690_v10, %v2545_v25  ;;  %v6081_v46 = vpop.f32.mrf.mxu0  ;;  %v6084_v47 = vpop.f32.mrf.mxu1  ;;  %v268_v17 = vld [vmem:[%s8126_s0 + $0x7d8] sm:$0xff]  ;;  %v141_v18 = vld [vmem:[%s8126_s0 + $0x3e0] sm:$0xff] }
  0xf4   :  { %3703 = vst.msk [vmem:[%s8129_s4 + $0x78] sm:$0xff] %vm3687_vm2, %v3446_v37  ;;  %3831 = vst.msk [vmem:[%s8129_s4 + $0x478] sm:$0xff] %vm3687_vm2, %v3574_v38  ;;  %v3445_v42 = vsel %vm2933_vm5, %v2677_v19, %v3189_v33  ;;  %v3573_v43 = vsel %vm3061_vm6, %v2805_v20, %v3317_v34  ;;  %v2544_v45 = vmul.f32 %v5679_v6, %v5970_v56  ;;  %4647 = vmatmul.mubr.msk.f32.gmra.mxu0 %vm275_vm1, %v136_v28  ;;  %v269_v19 = vld [vmem:[%s8126_s0 + $0x7e0] sm:$0xff] }
  0xf5   :  { %3702 = vst.msk [vmem:[%s8129_s4 + $0x70] sm:$0xff] %vm3687_vm2, %v3445_v42  ;;  %3830 = vst.msk [vmem:[%s8129_s4 + $0x470] sm:$0xff] %vm3687_vm2, %v3573_v43  ;;  %vm2936_vm7 = vcmp.ge.f32.partialorder %v2680_v39, 0.0  ;;  %v3192_v49 = vmul.f32 0.01, %v2680_v39  ;;  %vm3064_vm8 = vcmp.ge.f32.partialorder %v2808_v40, 0.0  ;;  %4839 = vmatmul.mubr.msk.f32.gmra.mxu1 %vm275_vm1, %v264_v29  ;;  %4649 = vmatprep.mubr.msk.f32.mxu0 %vm275_vm1, %v137_v30  ;;  %v2679_v51 = vadd.f32 %v5690_v10, %v2416_v44  ;;  %v6105_v55 = vpop.f32.mrf.mxu0  ;;  %v6107_v56 = vpop.f32.mrf.mxu1 }
  0xf6   :  { %v3320_v50 = vmul.f32 0.01, %v2808_v40  ;;  %v2807_v52 = vadd.f32 %v5690_v10, %v2544_v45  ;;  %v2419_v53 = vmul.f32 %v5995_v2, %v5679_v6  ;;  %v2547_v54 = vmul.f32 %v5998_v3, %v5679_v6  ;;  %4841 = vmatprep.mubr.msk.f32.mxu1 %vm275_vm1, %v265_v41  ;;  %v142_v30 = vld [vmem:[%s8126_s0 + $0x3e8] sm:$0xff] }
  0xf7   :  { %v3448_v58 = vsel %vm2936_vm7, %v2680_v39, %v3192_v49  ;;  %v2418_v60 = vmul.f32 %v5679_v6, %v6020_v15  ;;  %v2546_v61 = vmul.f32 %v5679_v6, %v6022_v16  ;;  %vm2935_vm9 = vcmp.ge.f32.partialorder %v2679_v51, 0.0  ;;  %v6131_v2 = vpop.f32.mrf.mxu0  ;;  %v6134_v3 = vpop.f32.mrf.mxu1  ;;  %v270_v39 = vld [vmem:[%s8126_s0 + $0x7e8] sm:$0xff] }
  0xf8   :  { %v3576_v59 = vsel %vm3064_vm8, %v2808_v40, %v3320_v50  ;;  %3705 = vst.msk [vmem:[%s8129_s4 + $0x88] sm:$0xff] %vm3687_vm2, %v3448_v58  ;;  %v3191_v0 = vmul.f32 0.01, %v2679_v51  ;;  %vm3063_vm10 = vcmp.ge.f32.partialorder %v2807_v52, 0.0  ;;  %v3319_v1 = vmul.f32 0.01, %v2807_v52  ;;  %4650 = vmatmul.mubr.msk.f32.gmra.mxu0 %vm275_vm1, %v138_v48 }
  0xf9   :  { %3833 = vst.msk [vmem:[%s8129_s4 + $0x488] sm:$0xff] %vm3687_vm2, %v3576_v59  ;;  %v2682_v4 = vadd.f32 %v5690_v10, %v2419_v53  ;;  %v2810_v5 = vadd.f32 %v5690_v10, %v2547_v54  ;;  %v2681_v7 = vadd.f32 %v5690_v10, %v2418_v60  ;;  %v2809_v8 = vadd.f32 %v5690_v10, %v2546_v61  ;;  %v6148_v15 = vpop.f32.mrf.mxu0  ;;  %v6150_v16 = vpop.f32.mrf.mxu1  ;;  %v143_v40 = vld [vmem:[%s8126_s0 + $0x3f0] sm:$0xff] }
  0xfa   :  { %4842 = vmatmul.mubr.msk.f32.gmra.mxu1 %vm275_vm1, %v266_v57  ;;  %v3447_v11 = vsel %vm2935_vm9, %v2679_v51, %v3191_v0  ;;  %v3575_v12 = vsel %vm3063_vm10, %v2807_v52, %v3319_v1  ;;  %v2421_v13 = vmul.f32 %v6035_v26, %v5679_v6  ;;  %v2549_v14 = vmul.f32 %v6038_v27, %v5679_v6 }
  0xfb   :  { %4652 = vmatprep.mubr.msk.f32.mxu0 %vm275_vm1, %v139_v62  ;;  %3704 = vst.msk [vmem:[%s8129_s4 + $0x80] sm:$0xff] %vm3687_vm2, %v3447_v11  ;;  %3832 = vst.msk [vmem:[%s8129_s4 + $0x480] sm:$0xff] %vm3687_vm2, %v3575_v12  ;;  %vm2938_vm11 = vcmp.ge.f32.partialorder %v2682_v4, 0.0  ;;  %v3194_v20 = vmul.f32 0.01, %v2682_v4  ;;  %vm3066_vm12 = vcmp.ge.f32.partialorder %v2810_v5, 0.0  ;;  %4844 = vmatprep.mubr.msk.f32.mxu1 %vm275_vm1, %v267_v63  ;;  %v6171_v24 = vpop.f32.mrf.mxu0  ;;  %v6174_v25 = vpop.f32.mrf.mxu1  ;;  %v2420_v33 = vmul.f32 %v5679_v6, %v6059_v35 }
  0xfc   :  { %v3322_v21 = vmul.f32 0.01, %v2810_v5  ;;  %vm2937_vm13 = vcmp.ge.f32.partialorder %v2681_v7, 0.0  ;;  %v3193_v22 = vmul.f32 0.01, %v2681_v7  ;;  %vm3065_vm14 = vcmp.ge.f32.partialorder %v2809_v8, 0.0  ;;  %4653 = vmatmul.mubr.msk.f32.gmra.mxu0 %vm275_vm1, %v140_v9 }
  0xfd   :  { %v3321_v23 = vmul.f32 0.01, %v2809_v8  ;;  %v3450_v26 = vsel %vm2938_vm11, %v2682_v4, %v3194_v20  ;;  %v2684_v28 = vadd.f32 %v5690_v10, %v2421_v13  ;;  %v2812_v29 = vadd.f32 %v5690_v10, %v2549_v14  ;;  %v6194_v37 = vpop.f32.mrf.mxu0  ;;  %v6196_v38 = vpop.f32.mrf.mxu1  ;;  %4655 = vmatprep.mubr.msk.f32.mxu0 %vm275_vm1, %v141_v18  ;;  %v271_v35 = vld [vmem:[%s8126_s0 + $0x7f0] sm:$0xff] }
  0xfe   :  { %v3578_v27 = vsel %vm3066_vm12, %v2810_v5, %v3322_v21  ;;  %4845 = vmatmul.mubr.msk.f32.gmra.mxu1 %vm275_vm1, %v268_v17  ;;  %3707 = vst.msk [vmem:[%s8129_s4 + $0x98] sm:$0xff] %vm3687_vm2, %v3450_v26  ;;  %v3449_v31 = vsel %vm2937_vm13, %v2681_v7, %v3193_v22  ;;  %v2548_v34 = vmul.f32 %v5679_v6, %v6061_v36 }
  0xff   :  { %3835 = vst.msk [vmem:[%s8129_s4 + $0x498] sm:$0xff] %vm3687_vm2, %v3578_v27  ;;  %v3577_v32 = vsel %vm3065_vm14, %v2809_v8, %v3321_v23  ;;  %3706 = vst.msk [vmem:[%s8129_s4 + $0x90] sm:$0xff] %vm3687_vm2, %v3449_v31  ;;  %vm2940_vm15 = vcmp.ge.f32.partialorder %v2684_v28, 0.0  ;;  %v3196_v36 = vmul.f32 0.01, %v2684_v28  ;;  %vm3068_vm0 = vcmp.ge.f32.partialorder %v2812_v29, 0.0  ;;  %4847 = vmatprep.mubr.msk.f32.mxu1 %vm275_vm1, %v269_v19  ;;  %v6223_v48 = vpop.f32.mrf.mxu0  ;;  %v6226_v49 = vpop.f32.mrf.mxu1 }
 0x100   :  { %3834 = vst.msk [vmem:[%s8129_s4 + $0x490] sm:$0xff] %vm3687_vm2, %v3577_v32  ;;  %v3324_v41 = vmul.f32 0.01, %v2812_v29  ;;  %v2683_v42 = vadd.f32 %v5690_v10, %v2420_v33  ;;  %v2811_v43 = vadd.f32 %v5690_v10, %v2548_v34  ;;  %v2423_v44 = vmul.f32 %v6081_v46, %v5679_v6  ;;  %4656 = vmatmul.mubr.msk.f32.gmra.mxu0 %vm275_vm1, %v142_v30  ;;  %v144_v46 = vld [vmem:[%s8126_s0 + $0x3f8] sm:$0xff] }
 0x101   :  { %v2551_v45 = vmul.f32 %v6084_v47, %v5679_v6  ;;  %v3452_v50 = vsel %vm2940_vm15, %v2684_v28, %v3196_v36  ;;  %v2422_v52 = vmul.f32 %v5679_v6, %v6105_v55  ;;  %v2550_v53 = vmul.f32 %v5679_v6, %v6107_v56  ;;  %v272_v47 = vld [vmem:[%s8126_s0 + $0x7f8] sm:$0xff]  ;;  %v6247_v56 = vpop.f32.mrf.mxu0  ;;  %v6249_v57 = vpop.f32.mrf.mxu1  ;;  %4658 = vmatprep.mubr.msk.f32.mxu0 %vm275_vm1, %v143_v40 }
 0x102   :  { %v3580_v51 = vsel %vm3068_vm0, %v2812_v29, %v3324_v41  ;;  %4848 = vmatmul.mubr.msk.f32.gmra.mxu1 %vm275_vm1, %v270_v39  ;;  %3709 = vst.msk [vmem:[%s8129_s4 + $0xa8] sm:$0xff] %vm3687_vm2, %v3452_v50  ;;  %vm2939_vm3 = vcmp.ge.f32.partialorder %v2683_v42, 0.0  ;;  %v3195_v54 = vmul.f32 0.01, %v2683_v42  ;;  %vm3067_vm4 = vcmp.ge.f32.partialorder %v2811_v43, 0.0 }
 0x103   :  { %3837 = vst.msk [vmem:[%s8129_s4 + $0x4a8] sm:$0xff] %vm3687_vm2, %v3580_v51  ;;  %v3323_v55 = vmul.f32 0.01, %v2811_v43  ;;  %4850 = vmatprep.mubr.msk.f32.mxu1 %vm275_vm1, %v271_v35  ;;  %v2686_v58 = vadd.f32 %v5690_v10, %v2423_v44  ;;  %v2814_v59 = vadd.f32 %v5690_v10, %v2551_v45  ;;  %v2685_v60 = vadd.f32 %v5690_v10, %v2422_v52  ;;  %v6261_v4 = vpop.f32.mrf.mxu0  ;;  %v6264_v5 = vpop.f32.mrf.mxu1 }
 0x104   :  { %v2813_v61 = vadd.f32 %v5690_v10, %v2550_v53  ;;  %v3451_v62 = vsel %vm2939_vm3, %v2683_v42, %v3195_v54  ;;  %v2425_v0 = vmul.f32 %v6131_v2, %v5679_v6  ;;  %v2553_v1 = vmul.f32 %v6134_v3, %v5679_v6  ;;  %4659 = vmatmul.mubr.msk.f32.gmra.mxu0 %vm275_vm1, %v144_v46 }
 0x105   :  { %v3579_v63 = vsel %vm3067_vm4, %v2811_v43, %v3323_v55  ;;  %3708 = vst.msk [vmem:[%s8129_s4 + $0xa0] sm:$0xff] %vm3687_vm2, %v3451_v62  ;;  %vm2942_vm5 = vcmp.ge.f32.partialorder %v2686_v58, 0.0  ;;  %v3198_v2 = vmul.f32 0.01, %v2686_v58  ;;  %vm3070_vm6 = vcmp.ge.f32.partialorder %v2814_v59, 0.0  ;;  %v6275_v9 = vpop.f32.mrf.mxu0  ;;  %v6277_v11 = vpop.f32.mrf.mxu1 }
 0x106   :  { %3836 = vst.msk [vmem:[%s8129_s4 + $0x4a0] sm:$0xff] %vm3687_vm2, %v3579_v63  ;;  %v3326_v3 = vmul.f32 0.01, %v2814_v59  ;;  %4851 = vmatmul.mubr.msk.f32.gmra.mxu1 %vm275_vm1, %v272_v47  ;;  %vm2941_vm7 = vcmp.ge.f32.partialorder %v2685_v60, 0.0  ;;  %v3197_v7 = vmul.f32 0.01, %v2685_v60  ;;  %v2688_v14 = vadd.f32 %v5690_v10, %v2425_v0 }
 0x107   :  { %vm3069_vm8 = vcmp.ge.f32.partialorder %v2813_v61, 0.0  ;;  %v3325_v8 = vmul.f32 0.01, %v2813_v61  ;;  %v3454_v12 = vsel %vm2942_vm5, %v2686_v58, %v3198_v2  ;;  %v2816_v17 = vadd.f32 %v5690_v10, %v2553_v1  ;;  %v6293_v22 = vpop.f32.mrf.mxu0  ;;  %v6295_v23 = vpop.f32.mrf.mxu1  ;;  %v6338_v43 = vld [vmem:[%s8127_s2] ss:$0 sm:$0xff] }
 0x108   :  { %v3582_v13 = vsel %vm3070_vm6, %v2814_v59, %v3326_v3  ;;  %3711 = vst.msk [vmem:[%s8129_s4 + $0xb8] sm:$0xff] %vm3687_vm2, %v3454_v12  ;;  %v3453_v18 = vsel %vm2941_vm7, %v2685_v60, %v3197_v7  ;;  %v2424_v20 = vmul.f32 %v5679_v6, %v6148_v15  ;;  %v2552_v21 = vmul.f32 %v5679_v6, %v6150_v16  ;;  %v6363_v55 = vld [vmem:[%s8128_s3] ss:$0 sm:$0xff] }
 0x109   :  { %3839 = vst.msk [vmem:[%s8129_s4 + $0x4b8] sm:$0xff] %vm3687_vm2, %v3582_v13  ;;  %v3581_v19 = vsel %vm3069_vm8, %v2813_v61, %v3325_v8  ;;  %3710 = vst.msk [vmem:[%s8129_s4 + $0xb0] sm:$0xff] %vm3687_vm2, %v3453_v18  ;;  %vm2944_vm1 = vcmp.ge.f32.partialorder %v2688_v14, 0.0  ;;  %v3200_v26 = vmul.f32 0.01, %v2688_v14  ;;  %vm3072_vm9 = vcmp.ge.f32.partialorder %v2816_v17, 0.0  ;;  %v6311_v30 = vpop.f32.mrf.mxu0  ;;  %v6313_v31 = vpop.f32.mrf.mxu1 }
 0x10a   :  { %3838 = vst.msk [vmem:[%s8129_s4 + $0x4b0] sm:$0xff] %vm3687_vm2, %v3581_v19  ;;  %v3328_v15 = vmul.f32 0.01, %v2816_v17  ;;  %v2687_v16 = vadd.f32 %v5690_v10, %v2424_v20  ;;  %v2815_v27 = vadd.f32 %v5690_v10, %v2552_v21  ;;  %v2427_v28 = vmul.f32 %v6171_v24, %v5679_v6 }
 0x10b   :  { %v2555_v29 = vmul.f32 %v6174_v25, %v5679_v6  ;;  %v3456_v32 = vsel %vm2944_vm1, %v2688_v14, %v3200_v26  ;;  %v2426_v34 = vmul.f32 %v5679_v6, %v6194_v37  ;;  %v2554_v39 = vmul.f32 %v5679_v6, %v6196_v38  ;;  %v6327_v40 = vpop.f32.mrf.mxu0  ;;  %v6329_v37 = vpop.f32.mrf.mxu1 }
 0x10c   :  { %v3584_v33 = vsel %vm3072_vm9, %v2816_v17, %v3328_v15  ;;  %3713 = vst.msk [vmem:[%s8129_s4 + $0xc8] sm:$0xff] %vm3687_vm2, %v3456_v32  ;;  %vm2943_vm10 = vcmp.ge.f32.partialorder %v2687_v16, 0.0  ;;  %v3199_v24 = vmul.f32 0.01, %v2687_v16  ;;  %vm3071_vm11 = vcmp.ge.f32.partialorder %v2815_v27, 0.0 }
 0x10d   :  { %3841 = vst.msk [vmem:[%s8129_s4 + $0x4c8] sm:$0xff] %vm3687_vm2, %v3584_v33  ;;  %v3327_v25 = vmul.f32 0.01, %v2815_v27  ;;  %v2690_v6 = vadd.f32 %v5690_v10, %v2427_v28  ;;  %v2818_v38 = vadd.f32 %v5690_v10, %v2555_v29  ;;  %v2689_v35 = vadd.f32 %v5690_v10, %v2426_v34  ;;  %v6344_v50 = vpop.f32.mrf.mxu0  ;;  %v6346_v51 = vpop.f32.mrf.mxu1 }
 0x10e   :  { %v2817_v36 = vadd.f32 %v5690_v10, %v2554_v39  ;;  %v3455_v41 = vsel %vm2943_vm10, %v2687_v16, %v3199_v24  ;;  %v2429_v44 = vmul.f32 %v6338_v43, %v6223_v48  ;;  %v2557_v45 = vmul.f32 %v6338_v43, %v6226_v49 }
 0x10f   :  { %v3583_v42 = vsel %vm3071_vm11, %v2815_v27, %v3327_v25  ;;  %3712 = vst.msk [vmem:[%s8129_s4 + $0xc0] sm:$0xff] %vm3687_vm2, %v3455_v41  ;;  %vm2946_vm12 = vcmp.ge.f32.partialorder %v2690_v6, 0.0  ;;  %v3202_v10 = vmul.f32 0.01, %v2690_v6  ;;  %vm3074_vm13 = vcmp.ge.f32.partialorder %v2818_v38, 0.0  ;;  %v6356_v53 = vpop.f32.mrf.mxu0  ;;  %v6358_v46 = vpop.f32.mrf.mxu1 }
 0x110   :  { %3840 = vst.msk [vmem:[%s8129_s4 + $0x4c0] sm:$0xff] %vm3687_vm2, %v3583_v42  ;;  %v3330_v48 = vmul.f32 0.01, %v2818_v38  ;;  %vm2945_vm14 = vcmp.ge.f32.partialorder %v2689_v35, 0.0  ;;  %v3201_v49 = vmul.f32 0.01, %v2689_v35  ;;  %v2692_v58 = vadd.f32 %v6363_v55, %v2429_v44 }
 0x111   :  { %vm3073_vm15 = vcmp.ge.f32.partialorder %v2817_v36, 0.0  ;;  %v3329_v52 = vmul.f32 0.01, %v2817_v36  ;;  %v3458_v47 = vsel %vm2946_vm12, %v2690_v6, %v3202_v10  ;;  %v2820_v59 = vadd.f32 %v6363_v55, %v2557_v45  ;;  %v6379_v0 = vpop.f32.mrf.mxu0  ;;  %v6381_v1 = vpop.f32.mrf.mxu1 }
 0x112   :  { %v3586_v54 = vsel %vm3074_vm13, %v2818_v38, %v3330_v48  ;;  %3715 = vst.msk [vmem:[%s8129_s4 + $0xd8] sm:$0xff] %vm3687_vm2, %v3458_v47  ;;  %v3457_v60 = vsel %vm2945_vm14, %v2689_v35, %v3201_v49  ;;  %v2428_v62 = vmul.f32 %v6338_v43, %v6247_v56  ;;  %v2556_v63 = vmul.f32 %v6338_v43, %v6249_v57 }
 0x113   :  { %3843 = vst.msk [vmem:[%s8129_s4 + $0x4d8] sm:$0xff] %vm3687_vm2, %v3586_v54  ;;  %v3585_v61 = vsel %vm3073_vm15, %v2817_v36, %v3329_v52  ;;  %3714 = vst.msk [vmem:[%s8129_s4 + $0xd0] sm:$0xff] %vm3687_vm2, %v3457_v60  ;;  %vm2948_vm0 = vcmp.ge.f32.partialorder %v2692_v58, 0.0  ;;  %v3204_v2 = vmul.f32 0.01, %v2692_v58  ;;  %vm3076_vm3 = vcmp.ge.f32.partialorder %v2820_v59, 0.0  ;;  %v6397_v12 = vpop.f32.mrf.mxu0  ;;  %v6399_v13 = vpop.f32.mrf.mxu1 }
 0x114   :  { %3842 = vst.msk [vmem:[%s8129_s4 + $0x4d0] sm:$0xff] %vm3687_vm2, %v3585_v61  ;;  %v3332_v56 = vmul.f32 0.01, %v2820_v59  ;;  %v2691_v57 = vadd.f32 %v6363_v55, %v2428_v62  ;;  %v2819_v3 = vadd.f32 %v6363_v55, %v2556_v63  ;;  %v2431_v7 = vmul.f32 %v6338_v43, %v6261_v4 }
 0x115   :  { %v2559_v8 = vmul.f32 %v6338_v43, %v6264_v5  ;;  %v3460_v14 = vsel %vm2948_vm0, %v2692_v58, %v3204_v2  ;;  %v2430_v18 = vmul.f32 %v6338_v43, %v6275_v9  ;;  %v2558_v19 = vmul.f32 %v6338_v43, %v6277_v11  ;;  %v6413_v20 = vpop.f32.mrf.mxu0  ;;  %v6415_v9 = vpop.f32.mrf.mxu1 }
 0x116   :  { %v3588_v17 = vsel %vm3076_vm3, %v2820_v59, %v3332_v56  ;;  %3717 = vst.msk [vmem:[%s8129_s4 + $0xe8] sm:$0xff] %vm3687_vm2, %v3460_v14  ;;  %vm2947_vm4 = vcmp.ge.f32.partialorder %v2691_v57, 0.0  ;;  %v3203_v4 = vmul.f32 0.01, %v2691_v57  ;;  %vm3075_vm5 = vcmp.ge.f32.partialorder %v2819_v3, 0.0 }
 0x117   :  { %3845 = vst.msk [vmem:[%s8129_s4 + $0x4e8] sm:$0xff] %vm3687_vm2, %v3588_v17  ;;  %v3331_v5 = vmul.f32 0.01, %v2819_v3  ;;  %v2694_v11 = vadd.f32 %v6363_v55, %v2431_v7  ;;  %v2822_v21 = vadd.f32 %v6363_v55, %v2559_v8  ;;  %v2693_v26 = vadd.f32 %v6363_v55, %v2430_v18  ;;  %v6425_v32 = vpop.f32.mrf.mxu0  ;;  %v6427_v33 = vpop.f32.mrf.mxu1 }
 0x118   :  { %v2821_v15 = vadd.f32 %v6363_v55, %v2558_v19  ;;  %v3459_v16 = vsel %vm2947_vm4, %v2691_v57, %v3203_v4  ;;  %v2433_v28 = vmul.f32 %v6338_v43, %v6293_v22  ;;  %v2561_v29 = vmul.f32 %v6338_v43, %v6295_v23 }
 0x119   :  { %v3587_v27 = vsel %vm3075_vm5, %v2819_v3, %v3331_v5  ;;  %3716 = vst.msk [vmem:[%s8129_s4 + $0xe0] sm:$0xff] %vm3687_vm2, %v3459_v16  ;;  %vm2950_vm6 = vcmp.ge.f32.partialorder %v2694_v11, 0.0  ;;  %v3206_v34 = vmul.f32 0.01, %v2694_v11  ;;  %vm3078_vm7 = vcmp.ge.f32.partialorder %v2822_v21, 0.0  ;;  %v6437_v24 = vpop.f32.mrf.mxu0  ;;  %v6439_v25 = vpop.f32.mrf.mxu1 }
 0x11a   :  { %3844 = vst.msk [vmem:[%s8129_s4 + $0x4e0] sm:$0xff] %vm3687_vm2, %v3587_v27  ;;  %v3334_v22 = vmul.f32 0.01, %v2822_v21  ;;  %vm2949_vm8 = vcmp.ge.f32.partialorder %v2693_v26, 0.0  ;;  %v3205_v23 = vmul.f32 0.01, %v2693_v26  ;;  %v2696_v35 = vadd.f32 %v6363_v55, %v2433_v28 }
 0x11b   :  { %vm3077_vm1 = vcmp.ge.f32.partialorder %v2821_v15, 0.0  ;;  %v3333_v39 = vmul.f32 0.01, %v2821_v15  ;;  %v3462_v6 = vsel %vm2950_vm6, %v2694_v11, %v3206_v34  ;;  %v2824_v36 = vadd.f32 %v6363_v55, %v2561_v29  ;;  %v6455_v10 = vpop.f32.mrf.mxu0  ;;  %v6457_v48 = vpop.f32.mrf.mxu1 }
 0x11c   :  { %v3590_v38 = vsel %vm3078_vm7, %v2822_v21, %v3334_v22  ;;  %3719 = vst.msk [vmem:[%s8129_s4 + $0xf8] sm:$0xff] %vm3687_vm2, %v3462_v6  ;;  %v3461_v41 = vsel %vm2949_vm8, %v2693_v26, %v3205_v23  ;;  %v2432_v44 = vmul.f32 %v6338_v43, %v6311_v30  ;;  %v2560_v45 = vmul.f32 %v6338_v43, %v6313_v31 }
 0x11d   :  { %3847 = vst.msk [vmem:[%s8129_s4 + $0x4f8] sm:$0xff] %vm3687_vm2, %v3590_v38  ;;  %v3589_v42 = vsel %vm3077_vm1, %v2821_v15, %v3333_v39  ;;  %3718 = vst.msk [vmem:[%s8129_s4 + $0xf0] sm:$0xff] %vm3687_vm2, %v3461_v41  ;;  %vm2952_vm9 = vcmp.ge.f32.partialorder %v2696_v35, 0.0  ;;  %v3208_v49 = vmul.f32 0.01, %v2696_v35  ;;  %vm3080_vm10 = vcmp.ge.f32.partialorder %v2824_v36, 0.0  ;;  %v6473_v58 = vpop.f32.mrf.mxu0  ;;  %v6475_v59 = vpop.f32.mrf.mxu1 }
 0x11e   :  { %3846 = vst.msk [vmem:[%s8129_s4 + $0x4f0] sm:$0xff] %vm3687_vm2, %v3589_v42  ;;  %v3336_v30 = vmul.f32 0.01, %v2824_v36  ;;  %v2695_v31 = vadd.f32 %v6363_v55, %v2432_v44  ;;  %v2823_v52 = vadd.f32 %v6363_v55, %v2560_v45  ;;  %v2435_v47 = vmul.f32 %v6338_v43, %v6327_v40 }
 0x11f   :  { %v2563_v54 = vmul.f32 %v6338_v43, %v6329_v37  ;;  %v3464_v60 = vsel %vm2952_vm9, %v2696_v35, %v3208_v49  ;;  %v2434_v62 = vmul.f32 %v6338_v43, %v6344_v50  ;;  %v2562_v63 = vmul.f32 %v6338_v43, %v6346_v51  ;;  %v6489_v2 = vpop.f32.mrf.mxu0  ;;  %v6491_v50 = vpop.f32.mrf.mxu1 }
 0x120   :  { %v3592_v61 = vsel %vm3080_vm10, %v2824_v36, %v3336_v30  ;;  %3721 = vst.msk [vmem:[%s8129_s4 + $0x108] sm:$0xff] %vm3687_vm2, %v3464_v60  ;;  %vm2951_vm11 = vcmp.ge.f32.partialorder %v2695_v31, 0.0  ;;  %v3207_v40 = vmul.f32 0.01, %v2695_v31  ;;  %vm3079_vm12 = vcmp.ge.f32.partialorder %v2823_v52, 0.0 }
 0x121   :  { %3849 = vst.msk [vmem:[%s8129_s4 + $0x508] sm:$0xff] %vm3687_vm2, %v3592_v61  ;;  %v3335_v37 = vmul.f32 0.01, %v2823_v52  ;;  %v2698_v51 = vadd.f32 %v6363_v55, %v2435_v47  ;;  %v2826_v56 = vadd.f32 %v6363_v55, %v2563_v54  ;;  %v2697_v57 = vadd.f32 %v6363_v55, %v2434_v62  ;;  %v6501_v18 = vpop.f32.mrf.mxu0  ;;  %v6503_v19 = vpop.f32.mrf.mxu1 }
 0x122   :  { %v2825_v3 = vadd.f32 %v6363_v55, %v2562_v63  ;;  %v3463_v7 = vsel %vm2951_vm11, %v2695_v31, %v3207_v40  ;;  %v2437_v14 = vmul.f32 %v6338_v43, %v6356_v53  ;;  %v2565_v17 = vmul.f32 %v6338_v43, %v6358_v46 }
 0x123   :  { %v3591_v8 = vsel %vm3079_vm12, %v2823_v52, %v3335_v37  ;;  %3720 = vst.msk [vmem:[%s8129_s4 + $0x100] sm:$0xff] %vm3687_vm2, %v3463_v7  ;;  %vm2954_vm13 = vcmp.ge.f32.partialorder %v2698_v51, 0.0  ;;  %v3210_v4 = vmul.f32 0.01, %v2698_v51  ;;  %vm3082_vm14 = vcmp.ge.f32.partialorder %v2826_v56, 0.0  ;;  %v6513_v11 = vpop.f32.mrf.mxu0  ;;  %v6515_v21 = vpop.f32.mrf.mxu1 }
 0x124   :  { %3848 = vst.msk [vmem:[%s8129_s4 + $0x500] sm:$0xff] %vm3687_vm2, %v3591_v8  ;;  %v3338_v53 = vmul.f32 0.01, %v2826_v56  ;;  %vm2953_vm15 = vcmp.ge.f32.partialorder %v2697_v57, 0.0  ;;  %v3209_v46 = vmul.f32 0.01, %v2697_v57  ;;  %v2700_v16 = vadd.f32 %v6363_v55, %v2437_v14 }
 0x125   :  { %vm3081_vm0 = vcmp.ge.f32.partialorder %v2825_v3, 0.0  ;;  %v3337_v5 = vmul.f32 0.01, %v2825_v3  ;;  %v3466_v26 = vsel %vm2954_vm13, %v2698_v51, %v3210_v4  ;;  %v2828_v27 = vadd.f32 %v6363_v55, %v2565_v17  ;;  %v6531_v23 = vpop.f32.mrf.mxu0  ;;  %v6533_v39 = vpop.f32.mrf.mxu1 }
 0x126   :  { %v3594_v15 = vsel %vm3082_vm14, %v2826_v56, %v3338_v53  ;;  %3723 = vst.msk [vmem:[%s8129_s4 + $0x118] sm:$0xff] %vm3687_vm2, %v3466_v26  ;;  %v3465_v28 = vsel %vm2953_vm15, %v2697_v57, %v3209_v46  ;;  %v2436_v34 = vmul.f32 %v6338_v43, %v6379_v0  ;;  %v2564_v22 = vmul.f32 %v6338_v43, %v6381_v1 }
 0x127   :  { %3851 = vst.msk [vmem:[%s8129_s4 + $0x518] sm:$0xff] %vm3687_vm2, %v3594_v15  ;;  %v3593_v29 = vsel %vm3081_vm0, %v2825_v3, %v3337_v5  ;;  %3722 = vst.msk [vmem:[%s8129_s4 + $0x110] sm:$0xff] %vm3687_vm2, %v3465_v28  ;;  %vm2956_vm3 = vcmp.ge.f32.partialorder %v2700_v16, 0.0  ;;  %v3212_v6 = vmul.f32 0.01, %v2700_v16  ;;  %vm3084_vm4 = vcmp.ge.f32.partialorder %v2828_v27, 0.0  ;;  %v6549_v41 = vpop.f32.mrf.mxu0  ;;  %v6551_v42 = vpop.f32.mrf.mxu1 }
 0x128   :  { %3850 = vst.msk [vmem:[%s8129_s4 + $0x510] sm:$0xff] %vm3687_vm2, %v3593_v29  ;;  %v3340_v0 = vmul.f32 0.01, %v2828_v27  ;;  %v2699_v1 = vadd.f32 %v6363_v55, %v2436_v34  ;;  %v2827_v38 = vadd.f32 %v6363_v55, %v2564_v22  ;;  %v2439_v35 = vmul.f32 %v6338_v43, %v6397_v12 }
 0x129   :  { %v2567_v36 = vmul.f32 %v6338_v43, %v6399_v13  ;;  %v3468_v44 = vsel %vm2956_vm3, %v2700_v16, %v3212_v6  ;;  %v2438_v49 = vmul.f32 %v6338_v43, %v6413_v20  ;;  %v2566_v30 = vmul.f32 %v6338_v43, %v6415_v9  ;;  %v6565_v31 = vpop.f32.mrf.mxu0  ;;  %v6567_v20 = vpop.f32.mrf.mxu1 }
 0x12a   :  { %v3596_v45 = vsel %vm3084_vm4, %v2828_v27, %v3340_v0  ;;  %3725 = vst.msk [vmem:[%s8129_s4 + $0x128] sm:$0xff] %vm3687_vm2, %v3468_v44  ;;  %vm2955_vm5 = vcmp.ge.f32.partialorder %v2699_v1, 0.0  ;;  %v3211_v12 = vmul.f32 0.01, %v2699_v1  ;;  %vm3083_vm6 = vcmp.ge.f32.partialorder %v2827_v38, 0.0 }
 0x12b   :  { %3853 = vst.msk [vmem:[%s8129_s4 + $0x528] sm:$0xff] %vm3687_vm2, %v3596_v45  ;;  %v3339_v13 = vmul.f32 0.01, %v2827_v38  ;;  %v2702_v9 = vadd.f32 %v6363_v55, %v2439_v35  ;;  %v2830_v52 = vadd.f32 %v6363_v55, %v2567_v36  ;;  %v2701_v47 = vadd.f32 %v6363_v55, %v2438_v49  ;;  %v6577_v40 = vpop.f32.mrf.mxu0  ;;  %v6579_v37 = vpop.f32.mrf.mxu1 }
 0x12c   :  { %v2829_v54 = vadd.f32 %v6363_v55, %v2566_v30  ;;  %v3467_v60 = vsel %vm2955_vm5, %v2699_v1, %v3211_v12  ;;  %v2441_v62 = vmul.f32 %v6338_v43, %v6425_v32  ;;  %v2569_v63 = vmul.f32 %v6338_v43, %v6427_v33 }
 0x12d   :  { %v3595_v61 = vsel %vm3083_vm6, %v2827_v38, %v3339_v13  ;;  %3724 = vst.msk [vmem:[%s8129_s4 + $0x120] sm:$0xff] %vm3687_vm2, %v3467_v60  ;;  %vm2958_vm7 = vcmp.ge.f32.partialorder %v2702_v9, 0.0  ;;  %v3214_v51 = vmul.f32 0.01, %v2702_v9  ;;  %vm3086_vm8 = vcmp.ge.f32.partialorder %v2830_v52, 0.0  ;;  %v6589_v57 = vpop.f32.mrf.mxu0  ;;  %v6591_v3 = vpop.f32.mrf.mxu1 }
 0x12e   :  { %3852 = vst.msk [vmem:[%s8129_s4 + $0x520] sm:$0xff] %vm3687_vm2, %v3595_v61  ;;  %v3342_v32 = vmul.f32 0.01, %v2830_v52  ;;  %vm2957_vm1 = vcmp.ge.f32.partialorder %v2701_v47, 0.0  ;;  %v3213_v33 = vmul.f32 0.01, %v2701_v47  ;;  %v2704_v14 = vadd.f32 %v6363_v55, %v2441_v62 }
 0x12f   :  { %vm3085_vm9 = vcmp.ge.f32.partialorder %v2829_v54, 0.0  ;;  %v3341_v56 = vmul.f32 0.01, %v2829_v54  ;;  %v3470_v7 = vsel %vm2958_vm7, %v2702_v9, %v3214_v51  ;;  %v2832_v17 = vadd.f32 %v6363_v55, %v2569_v63  ;;  %v6607_v26 = vpop.f32.mrf.mxu0  ;;  %v6609_v15 = vpop.f32.mrf.mxu1 }
 0x130   :  { %v3598_v8 = vsel %vm3086_vm8, %v2830_v52, %v3342_v32  ;;  %3727 = vst.msk [vmem:[%s8129_s4 + $0x138] sm:$0xff] %vm3687_vm2, %v3470_v7  ;;  %v3469_v4 = vsel %vm2957_vm1, %v2701_v47, %v3213_v33  ;;  %v2440_v46 = vmul.f32 %v6338_v43, %v6437_v24  ;;  %v2568_v5 = vmul.f32 %v6338_v43, %v6439_v25 }
 0x131   :  { %3855 = vst.msk [vmem:[%s8129_s4 + $0x538] sm:$0xff] %vm3687_vm2, %v3598_v8  ;;  %v3597_v53 = vsel %vm3085_vm9, %v2829_v54, %v3341_v56  ;;  %3726 = vst.msk [vmem:[%s8129_s4 + $0x130] sm:$0xff] %vm3687_vm2, %v3469_v4  ;;  %vm2960_vm10 = vcmp.ge.f32.partialorder %v2704_v14, 0.0  ;;  %v3216_v16 = vmul.f32 0.01, %v2704_v14  ;;  %vm3088_vm11 = vcmp.ge.f32.partialorder %v2832_v17, 0.0  ;;  %v6625_v34 = vpop.f32.mrf.mxu0  ;;  %v6627_v22 = vpop.f32.mrf.mxu1 }
 0x132   :  { %3854 = vst.msk [vmem:[%s8129_s4 + $0x530] sm:$0xff] %vm3687_vm2, %v3597_v53  ;;  %v3344_v24 = vmul.f32 0.01, %v2832_v17  ;;  %v2703_v25 = vadd.f32 %v6363_v55, %v2440_v46  ;;  %v2831_v27 = vadd.f32 %v6363_v55, %v2568_v5  ;;  %v2443_v28 = vmul.f32 %v6338_v43, %v6455_v10 }
 0x133   :  { %v2571_v29 = vmul.f32 %v6338_v43, %v6457_v48  ;;  %v3472_v6 = vsel %vm2960_vm10, %v2704_v14, %v3216_v16  ;;  %v2442_v1 = vmul.f32 %v6338_v43, %v6473_v58  ;;  %v2570_v38 = vmul.f32 %v6338_v43, %v6475_v59  ;;  %v6641_v35 = vpop.f32.mrf.mxu0  ;;  %v6643_v58 = vpop.f32.mrf.mxu1 }
 0x134   :  { %v3600_v0 = vsel %vm3088_vm11, %v2832_v17, %v3344_v24  ;;  %3729 = vst.msk [vmem:[%s8129_s4 + $0x148] sm:$0xff] %vm3687_vm2, %v3472_v6  ;;  %vm2959_vm12 = vcmp.ge.f32.partialorder %v2703_v25, 0.0  ;;  %v3215_v10 = vmul.f32 0.01, %v2703_v25  ;;  %vm3087_vm13 = vcmp.ge.f32.partialorder %v2831_v27, 0.0 }
 0x135   :  { %3857 = vst.msk [vmem:[%s8129_s4 + $0x548] sm:$0xff] %vm3687_vm2, %v3600_v0  ;;  %v3343_v48 = vmul.f32 0.01, %v2831_v27  ;;  %v2706_v59 = vadd.f32 %v6363_v55, %v2443_v28  ;;  %v2834_v36 = vadd.f32 %v6363_v55, %v2571_v29  ;;  %v2705_v44 = vadd.f32 %v6363_v55, %v2442_v1  ;;  %v6653_v9 = vpop.f32.mrf.mxu0  ;;  %v6655_v52 = vpop.f32.mrf.mxu1 }
 0x136   :  { %v2833_v45 = vadd.f32 %v6363_v55, %v2570_v38  ;;  %v3471_v49 = vsel %vm2959_vm12, %v2703_v25, %v3215_v10  ;;  %v2445_v12 = vmul.f32 %v6338_v43, %v6489_v2  ;;  %v2573_v13 = vmul.f32 %v6338_v43, %v6491_v50 }
 0x137   :  { %v3599_v30 = vsel %vm3087_vm13, %v2831_v27, %v3343_v48  ;;  %3728 = vst.msk [vmem:[%s8129_s4 + $0x140] sm:$0xff] %vm3687_vm2, %v3471_v49  ;;  %vm2962_vm14 = vcmp.ge.f32.partialorder %v2706_v59, 0.0  ;;  %v3218_v47 = vmul.f32 0.01, %v2706_v59  ;;  %vm3090_vm15 = vcmp.ge.f32.partialorder %v2834_v36, 0.0  ;;  %v6665_v60 = vpop.f32.mrf.mxu0  ;;  %v6667_v61 = vpop.f32.mrf.mxu1 }
 0x138   :  { %3856 = vst.msk [vmem:[%s8129_s4 + $0x540] sm:$0xff] %vm3687_vm2, %v3599_v30  ;;  %v3346_v2 = vmul.f32 0.01, %v2834_v36  ;;  %vm2961_vm0 = vcmp.ge.f32.partialorder %v2705_v44, 0.0  ;;  %v3217_v50 = vmul.f32 0.01, %v2705_v44  ;;  %v2708_v51 = vadd.f32 %v6363_v55, %v2445_v12 }
 0x139   :  { %vm3089_vm3 = vcmp.ge.f32.partialorder %v2833_v45, 0.0  ;;  %v3345_v54 = vmul.f32 0.01, %v2833_v45  ;;  %v3474_v62 = vsel %vm2962_vm14, %v2706_v59, %v3218_v47  ;;  %v2836_v32 = vadd.f32 %v6363_v55, %v2573_v13  ;;  %v6683_v14 = vpop.f32.mrf.mxu0  ;;  %v6685_v17 = vpop.f32.mrf.mxu1 }
 0x13a   :  { %v3602_v63 = vsel %vm3090_vm15, %v2834_v36, %v3346_v2  ;;  %3731 = vst.msk [vmem:[%s8129_s4 + $0x158] sm:$0xff] %vm3687_vm2, %v3474_v62  ;;  %v3473_v33 = vsel %vm2961_vm0, %v2705_v44, %v3217_v50  ;;  %v2444_v7 = vmul.f32 %v6338_v43, %v6501_v18  ;;  %v2572_v8 = vmul.f32 %v6338_v43, %v6503_v19 }
 0x13b   :  { %3859 = vst.msk [vmem:[%s8129_s4 + $0x558] sm:$0xff] %vm3687_vm2, %v3602_v63  ;;  %v3601_v56 = vsel %vm3089_vm3, %v2833_v45, %v3345_v54  ;;  %3730 = vst.msk [vmem:[%s8129_s4 + $0x150] sm:$0xff] %vm3687_vm2, %v3473_v33  ;;  %vm2964_vm4 = vcmp.ge.f32.partialorder %v2708_v51, 0.0  ;;  %v3220_v4 = vmul.f32 0.01, %v2708_v51  ;;  %vm3092_vm5 = vcmp.ge.f32.partialorder %v2836_v32, 0.0  ;;  %v6701_v16 = vpop.f32.mrf.mxu0  ;;  %v6703_v24 = vpop.f32.mrf.mxu1 }
 0x13c   :  { %3858 = vst.msk [vmem:[%s8129_s4 + $0x550] sm:$0xff] %vm3687_vm2, %v3601_v56  ;;  %v3348_v18 = vmul.f32 0.01, %v2836_v32  ;;  %v2707_v19 = vadd.f32 %v6363_v55, %v2444_v7  ;;  %v2835_v53 = vadd.f32 %v6363_v55, %v2572_v8  ;;  %v2447_v46 = vmul.f32 %v6338_v43, %v6513_v11 }
 0x13d   :  { %v2575_v5 = vmul.f32 %v6338_v43, %v6515_v21  ;;  %v3476_v25 = vsel %vm2964_vm4, %v2708_v51, %v3220_v4  ;;  %v2446_v28 = vmul.f32 %v6338_v43, %v6531_v23  ;;  %v2574_v29 = vmul.f32 %v6338_v43, %v6533_v39  ;;  %v6717_v6 = vpop.f32.mrf.mxu0  ;;  %v6719_v23 = vpop.f32.mrf.mxu1 }
 0x13e   :  { %v3604_v27 = vsel %vm3092_vm5, %v2836_v32, %v3348_v18  ;;  %3733 = vst.msk [vmem:[%s8129_s4 + $0x168] sm:$0xff] %vm3687_vm2, %v3476_v25  ;;  %vm2963_vm6 = vcmp.ge.f32.partialorder %v2707_v19, 0.0  ;;  %v3219_v11 = vmul.f32 0.01, %v2707_v19  ;;  %vm3091_vm7 = vcmp.ge.f32.partialorder %v2835_v53, 0.0 }
 0x13f   :  { %3861 = vst.msk [vmem:[%s8129_s4 + $0x568] sm:$0xff] %vm3687_vm2, %v3604_v27  ;;  %v3347_v21 = vmul.f32 0.01, %v2835_v53  ;;  %v2710_v39 = vadd.f32 %v6363_v55, %v2447_v46  ;;  %v2838_v0 = vadd.f32 %v6363_v55, %v2575_v5  ;;  %v2709_v1 = vadd.f32 %v6363_v55, %v2446_v28  ;;  %v6729_v44 = vpop.f32.mrf.mxu0  ;;  %v6731_v45 = vpop.f32.mrf.mxu1 }
 0x140   :  { %v2837_v38 = vadd.f32 %v6363_v55, %v2574_v29  ;;  %v3475_v10 = vsel %vm2963_vm6, %v2707_v19, %v3219_v11  ;;  %v2449_v59 = vmul.f32 %v6338_v43, %v6549_v41  ;;  %v2577_v36 = vmul.f32 %v6338_v43, %v6551_v42 }
 0x141   :  { %v3603_v48 = vsel %vm3091_vm7, %v2835_v53, %v3347_v21  ;;  %3732 = vst.msk [vmem:[%s8129_s4 + $0x160] sm:$0xff] %vm3687_vm2, %v3475_v10  ;;  %vm2966_vm8 = vcmp.ge.f32.partialorder %v2710_v39, 0.0  ;;  %v3222_v49 = vmul.f32 0.01, %v2710_v39  ;;  %vm3094_vm1 = vcmp.ge.f32.partialorder %v2838_v0, 0.0  ;;  %v6741_v12 = vpop.f32.mrf.mxu0  ;;  %v6743_v13 = vpop.f32.mrf.mxu1 }
 0x142   :  { %3860 = vst.msk [vmem:[%s8129_s4 + $0x560] sm:$0xff] %vm3687_vm2, %v3603_v48  ;;  %v3350_v41 = vmul.f32 0.01, %v2838_v0  ;;  %vm2965_vm9 = vcmp.ge.f32.partialorder %v2709_v1, 0.0  ;;  %v3221_v42 = vmul.f32 0.01, %v2709_v1  ;;  %v2712_v50 = vadd.f32 %v6363_v55, %v2449_v59 }
 0x143   :  { %vm3093_vm10 = vcmp.ge.f32.partialorder %v2837_v38, 0.0  ;;  %v3349_v30 = vmul.f32 0.01, %v2837_v38  ;;  %v3478_v47 = vsel %vm2966_vm8, %v2710_v39, %v3222_v49  ;;  %v2840_v54 = vadd.f32 %v6363_v55, %v2577_v36  ;;  %v6759_v33 = vpop.f32.mrf.mxu0  ;;  %v6761_v56 = vpop.f32.mrf.mxu1 }
 0x144   :  { %v3606_v2 = vsel %vm3094_vm1, %v2838_v0, %v3350_v41  ;;  %3735 = vst.msk [vmem:[%s8129_s4 + $0x178] sm:$0xff] %vm3687_vm2, %v3478_v47  ;;  %v3477_v62 = vsel %vm2965_vm9, %v2709_v1, %v3221_v42  ;;  %v2448_v51 = vmul.f32 %v6338_v43, %v6565_v31  ;;  %v2576_v32 = vmul.f32 %v6338_v43, %v6567_v20 }
 0x145   :  { %3863 = vst.msk [vmem:[%s8129_s4 + $0x578] sm:$0xff] %vm3687_vm2, %v3606_v2  ;;  %v3605_v63 = vsel %vm3093_vm10, %v2837_v38, %v3349_v30  ;;  %3734 = vst.msk [vmem:[%s8129_s4 + $0x170] sm:$0xff] %vm3687_vm2, %v3477_v62  ;;  %vm2968_vm11 = vcmp.ge.f32.partialorder %v2712_v50, 0.0  ;;  %v3224_v7 = vmul.f32 0.01, %v2712_v50  ;;  %vm3096_vm12 = vcmp.ge.f32.partialorder %v2840_v54, 0.0  ;;  %v6777_v19 = vpop.f32.mrf.mxu0  ;;  %v6779_v53 = vpop.f32.mrf.mxu1 }
 0x146   :  { %3862 = vst.msk [vmem:[%s8129_s4 + $0x570] sm:$0xff] %vm3687_vm2, %v3605_v63  ;;  %v3352_v31 = vmul.f32 0.01, %v2840_v54  ;;  %v2711_v20 = vadd.f32 %v6363_v55, %v2448_v51  ;;  %v2839_v8 = vadd.f32 %v6363_v55, %v2576_v32  ;;  %v2451_v4 = vmul.f32 %v6338_v43, %v6577_v40 }
 0x147   :  { %v2579_v18 = vmul.f32 %v6338_v43, %v6579_v37  ;;  %v3480_v46 = vsel %vm2968_vm11, %v2712_v50, %v3224_v7  ;;  %v2450_v25 = vmul.f32 %v6338_v43, %v6589_v57  ;;  %v2578_v27 = vmul.f32 %v6338_v43, %v6591_v3  ;;  %v6793_v28 = vpop.f32.mrf.mxu0  ;;  %v6795_v57 = vpop.f32.mrf.mxu1 }
 0x148   :  { %v3608_v5 = vsel %vm3096_vm12, %v2840_v54, %v3352_v31  ;;  %3737 = vst.msk [vmem:[%s8129_s4 + $0x188] sm:$0xff] %vm3687_vm2, %v3480_v46  ;;  %vm2967_vm13 = vcmp.ge.f32.partialorder %v2711_v20, 0.0  ;;  %v3223_v40 = vmul.f32 0.01, %v2711_v20  ;;  %vm3095_vm14 = vcmp.ge.f32.partialorder %v2839_v8, 0.0 }
 0x149   :  { %3865 = vst.msk [vmem:[%s8129_s4 + $0x588] sm:$0xff] %vm3687_vm2, %v3608_v5  ;;  %v3351_v37 = vmul.f32 0.01, %v2839_v8  ;;  %v2714_v3 = vadd.f32 %v6363_v55, %v2451_v4  ;;  %v2842_v29 = vadd.f32 %v6363_v55, %v2579_v18  ;;  %v2713_v11 = vadd.f32 %v6363_v55, %v2450_v25  ;;  %v6805_v10 = vpop.f32.mrf.mxu0  ;;  %v6807_v48 = vpop.f32.mrf.mxu1 }
 0x14a   :  { %v2841_v21 = vadd.f32 %v6363_v55, %v2578_v27  ;;  %v3479_v39 = vsel %vm2967_vm13, %v2711_v20, %v3223_v40  ;;  %v2453_v1 = vmul.f32 %v6338_v43, %v6607_v26  ;;  %v2581_v38 = vmul.f32 %v6338_v43, %v6609_v15 }
 0x14b   :  { %v3607_v0 = vsel %vm3095_vm14, %v2839_v8, %v3351_v37  ;;  %3736 = vst.msk [vmem:[%s8129_s4 + $0x180] sm:$0xff] %vm3687_vm2, %v3479_v39  ;;  %vm2970_vm15 = vcmp.ge.f32.partialorder %v2714_v3, 0.0  ;;  %v3226_v59 = vmul.f32 0.01, %v2714_v3  ;;  %vm3098_vm0 = vcmp.ge.f32.partialorder %v2842_v29, 0.0  ;;  %v6817_v49 = vpop.f32.mrf.mxu0  ;;  %v6819_v41 = vpop.f32.mrf.mxu1 }
 0x14c   :  { %3864 = vst.msk [vmem:[%s8129_s4 + $0x580] sm:$0xff] %vm3687_vm2, %v3607_v0  ;;  %v3354_v26 = vmul.f32 0.01, %v2842_v29  ;;  %vm2969_vm3 = vcmp.ge.f32.partialorder %v2713_v11, 0.0  ;;  %v3225_v15 = vmul.f32 0.01, %v2713_v11  ;;  %v2716_v47 = vadd.f32 %v6363_v55, %v2453_v1 }
 0x14d   :  { %vm3097_vm4 = vcmp.ge.f32.partialorder %v2841_v21, 0.0  ;;  %v3353_v36 = vmul.f32 0.01, %v2841_v21  ;;  %v3482_v42 = vsel %vm2970_vm15, %v2714_v3, %v3226_v59  ;;  %v2844_v2 = vadd.f32 %v6363_v55, %v2581_v38  ;;  %v6835_v51 = vpop.f32.mrf.mxu0  ;;  %v6837_v32 = vpop.f32.mrf.mxu1 }
 0x14e   :  { %v3610_v30 = vsel %vm3098_vm0, %v2842_v29, %v3354_v26  ;;  %3739 = vst.msk [vmem:[%s8129_s4 + $0x198] sm:$0xff] %vm3687_vm2, %v3482_v42  ;;  %v3481_v50 = vsel %vm2969_vm3, %v2713_v11, %v3225_v15  ;;  %v2452_v62 = vmul.f32 %v6338_v43, %v6625_v34  ;;  %v2580_v63 = vmul.f32 %v6338_v43, %v6627_v22 }
 0x14f   :  { %3867 = vst.msk [vmem:[%s8129_s4 + $0x598] sm:$0xff] %vm3687_vm2, %v3610_v30  ;;  %v3609_v54 = vsel %vm3097_vm4, %v2841_v21, %v3353_v36  ;;  %3738 = vst.msk [vmem:[%s8129_s4 + $0x190] sm:$0xff] %vm3687_vm2, %v3481_v50  ;;  %vm2972_vm5 = vcmp.ge.f32.partialorder %v2716_v47, 0.0  ;;  %v3228_v7 = vmul.f32 0.01, %v2716_v47  ;;  %vm3100_vm6 = vcmp.ge.f32.partialorder %v2844_v2, 0.0  ;;  %v6853_v4 = vpop.f32.mrf.mxu0  ;;  %v6855_v18 = vpop.f32.mrf.mxu1 }
 0x150   :  { %3866 = vst.msk [vmem:[%s8129_s4 + $0x590] sm:$0xff] %vm3687_vm2, %v3609_v54  ;;  %v3356_v34 = vmul.f32 0.01, %v2844_v2  ;;  %v2715_v22 = vadd.f32 %v6363_v55, %v2452_v62  ;;  %v2843_v31 = vadd.f32 %v6363_v55, %v2580_v63  ;;  %v2455_v20 = vmul.f32 %v6338_v43, %v6641_v35 }
 0x151   :  { %v2583_v8 = vmul.f32 %v6338_v43, %v6643_v58  ;;  %v3484_v46 = vsel %vm2972_vm5, %v2716_v47, %v3228_v7  ;;  %v2454_v25 = vmul.f32 %v6338_v43, %v6653_v9  ;;  %v2582_v27 = vmul.f32 %v6338_v43, %v6655_v52  ;;  %v6869_v40 = vpop.f32.mrf.mxu0  ;;  %v6871_v9 = vpop.f32.mrf.mxu1 }
 0x152   :  { %v3612_v5 = vsel %vm3100_vm6, %v2844_v2, %v3356_v34  ;;  %3741 = vst.msk [vmem:[%s8129_s4 + $0x1a8] sm:$0xff] %vm3687_vm2, %v3484_v46  ;;  %vm2971_vm7 = vcmp.ge.f32.partialorder %v2715_v22, 0.0  ;;  %v3227_v35 = vmul.f32 0.01, %v2715_v22  ;;  %vm3099_vm8 = vcmp.ge.f32.partialorder %v2843_v31, 0.0 }
 0x153   :  { %3869 = vst.msk [vmem:[%s8129_s4 + $0x5a8] sm:$0xff] %vm3687_vm2, %v3612_v5  ;;  %v3355_v58 = vmul.f32 0.01, %v2843_v31  ;;  %v2718_v52 = vadd.f32 %v6363_v55, %v2455_v20  ;;  %v2846_v37 = vadd.f32 %v6363_v55, %v2583_v8  ;;  %v2717_v3 = vadd.f32 %v6363_v55, %v2454_v25  ;;  %v6881_v1 = vpop.f32.mrf.mxu0  ;;  %v6883_v38 = vpop.f32.mrf.mxu1 }
 0x154   :  { %v2845_v29 = vadd.f32 %v6363_v55, %v2582_v27  ;;  %v3483_v11 = vsel %vm2971_vm7, %v2715_v22, %v3227_v35  ;;  %v2457_v39 = vmul.f32 %v6338_v43, %v6665_v60  ;;  %v2585_v0 = vmul.f32 %v6338_v43, %v6667_v61 }
 0x155   :  { %v3611_v21 = vsel %vm3099_vm8, %v2843_v31, %v3355_v58  ;;  %3740 = vst.msk [vmem:[%s8129_s4 + $0x1a0] sm:$0xff] %vm3687_vm2, %v3483_v11  ;;  %vm2974_vm1 = vcmp.ge.f32.partialorder %v2718_v52, 0.0  ;;  %v3230_v59 = vmul.f32 0.01, %v2718_v52  ;;  %vm3102_vm9 = vcmp.ge.f32.partialorder %v2846_v37, 0.0  ;;  %v6893_v15 = vpop.f32.mrf.mxu0  ;;  %v6895_v36 = vpop.f32.mrf.mxu1 }
 0x156   :  { %3868 = vst.msk [vmem:[%s8129_s4 + $0x5a0] sm:$0xff] %vm3687_vm2, %v3611_v21  ;;  %v3358_v60 = vmul.f32 0.01, %v2846_v37  ;;  %vm2973_vm10 = vcmp.ge.f32.partialorder %v2717_v3, 0.0  ;;  %v3229_v61 = vmul.f32 0.01, %v2717_v3  ;;  %v2720_v47 = vadd.f32 %v6363_v55, %v2457_v39 }
 0x157   :  { %vm3101_vm11 = vcmp.ge.f32.partialorder %v2845_v29, 0.0  ;;  %v3357_v26 = vmul.f32 0.01, %v2845_v29  ;;  %v3486_v42 = vsel %vm2974_vm1, %v2718_v52, %v3230_v59  ;;  %v2848_v2 = vadd.f32 %v6363_v55, %v2585_v0  ;;  %v6911_v7 = vpop.f32.mrf.mxu0  ;;  %v6913_v34 = vpop.f32.mrf.mxu1 }
 0x158   :  { %v3614_v30 = vsel %vm3102_vm9, %v2846_v37, %v3358_v60  ;;  %3743 = vst.msk [vmem:[%s8129_s4 + $0x1b8] sm:$0xff] %vm3687_vm2, %v3486_v42  ;;  %v3485_v50 = vsel %vm2973_vm10, %v2717_v3, %v3229_v61  ;;  %v2456_v62 = vmul.f32 %v6338_v43, %v6683_v14  ;;  %v2584_v63 = vmul.f32 %v6338_v43, %v6685_v17 }
 0x159   :  { %3871 = vst.msk [vmem:[%s8129_s4 + $0x5b8] sm:$0xff] %vm3687_vm2, %v3614_v30  ;;  %v3613_v54 = vsel %vm3101_vm11, %v2845_v29, %v3357_v26  ;;  %3742 = vst.msk [vmem:[%s8129_s4 + $0x1b0] sm:$0xff] %vm3687_vm2, %v3485_v50  ;;  %vm2976_vm12 = vcmp.ge.f32.partialorder %v2720_v47, 0.0  ;;  %v3232_v22 = vmul.f32 0.01, %v2720_v47  ;;  %vm3104_vm13 = vcmp.ge.f32.partialorder %v2848_v2, 0.0  ;;  %v6929_v46 = vpop.f32.mrf.mxu0  ;;  %v6931_v5 = vpop.f32.mrf.mxu1 }
 0x15a   :  { %3870 = vst.msk [vmem:[%s8129_s4 + $0x5b0] sm:$0xff] %vm3687_vm2, %v3613_v54  ;;  %v3360_v14 = vmul.f32 0.01, %v2848_v2  ;;  %v2719_v17 = vadd.f32 %v6363_v55, %v2456_v62  ;;  %v2847_v31 = vadd.f32 %v6363_v55, %v2584_v63  ;;  %v2459_v20 = vmul.f32 %v6338_v43, %v6701_v16 }
 0x15b   :  { %v2587_v8 = vmul.f32 %v6338_v43, %v6703_v24  ;;  %v3488_v25 = vsel %vm2976_vm12, %v2720_v47, %v3232_v22  ;;  %v2458_v35 = vmul.f32 %v6338_v43, %v6717_v6  ;;  %v2586_v58 = vmul.f32 %v6338_v43, %v6719_v23  ;;  %v6945_v52 = vpop.f32.mrf.mxu0  ;;  %v6947_v6 = vpop.f32.mrf.mxu1 }
 0x15c   :  { %v3616_v27 = vsel %vm3104_vm13, %v2848_v2, %v3360_v14  ;;  %3745 = vst.msk [vmem:[%s8129_s4 + $0x1c8] sm:$0xff] %vm3687_vm2, %v3488_v25  ;;  %vm2975_vm14 = vcmp.ge.f32.partialorder %v2719_v17, 0.0  ;;  %v3231_v16 = vmul.f32 0.01, %v2719_v17  ;;  %vm3103_vm15 = vcmp.ge.f32.partialorder %v2847_v31, 0.0 }
 0x15d   :  { %3873 = vst.msk [vmem:[%s8129_s4 + $0x5c8] sm:$0xff] %vm3687_vm2, %v3616_v27  ;;  %v3359_v24 = vmul.f32 0.01, %v2847_v31  ;;  %v2722_v23 = vadd.f32 %v6363_v55, %v2459_v20  ;;  %v2850_v37 = vadd.f32 %v6363_v55, %v2587_v8  ;;  %v2721_v3 = vadd.f32 %v6363_v55, %v2458_v35  ;;  %v6957_v59 = vpop.f32.mrf.mxu0  ;;  %v6959_v60 = vpop.f32.mrf.mxu1 }
 0x15e   :  { %v2849_v29 = vadd.f32 %v6363_v55, %v2586_v58  ;;  %v3487_v11 = vsel %vm2975_vm14, %v2719_v17, %v3231_v16  ;;  %v2461_v39 = vmul.f32 %v6338_v43, %v6729_v44  ;;  %v2589_v0 = vmul.f32 %v6338_v43, %v6731_v45 }
 0x15f   :  { %v3615_v21 = vsel %vm3103_vm15, %v2847_v31, %v3359_v24  ;;  %3744 = vst.msk [vmem:[%s8129_s4 + $0x1c0] sm:$0xff] %vm3687_vm2, %v3487_v11  ;;  %vm2978_vm0 = vcmp.ge.f32.partialorder %v2722_v23, 0.0  ;;  %v3234_v61 = vmul.f32 0.01, %v2722_v23  ;;  %vm3106_vm3 = vcmp.ge.f32.partialorder %v2850_v37, 0.0  ;;  %v6969_v42 = vpop.f32.mrf.mxu0  ;;  %v6971_v30 = vpop.f32.mrf.mxu1 }
 0x160   :  { %3872 = vst.msk [vmem:[%s8129_s4 + $0x5c0] sm:$0xff] %vm3687_vm2, %v3615_v21  ;;  %v3362_v44 = vmul.f32 0.01, %v2850_v37  ;;  %vm2977_vm4 = vcmp.ge.f32.partialorder %v2721_v3, 0.0  ;;  %v3233_v45 = vmul.f32 0.01, %v2721_v3  ;;  %v2724_v50 = vadd.f32 %v6363_v55, %v2461_v39 }
 0x161   :  { %vm3105_vm5 = vcmp.ge.f32.partialorder %v2849_v29, 0.0  ;;  %v3361_v26 = vmul.f32 0.01, %v2849_v29  ;;  %v3490_v47 = vsel %vm2978_vm0, %v2722_v23, %v3234_v61  ;;  %v2852_v54 = vadd.f32 %v6363_v55, %v2589_v0  ;;  %v6987_v17 = vpop.f32.mrf.mxu0  ;;  %v6989_v31 = vpop.f32.mrf.mxu1  ;;  %v7032_v0 = vld [vmem:[%s8127_s2] ss:$0 sm:$0xff] }
 0x162   :  { %v3618_v2 = vsel %vm3106_vm3, %v2850_v37, %v3362_v44  ;;  %3747 = vst.msk [vmem:[%s8129_s4 + $0x1d8] sm:$0xff] %vm3687_vm2, %v3490_v47  ;;  %v3489_v62 = vsel %vm2977_vm4, %v2721_v3, %v3233_v45  ;;  %v2460_v22 = vmul.f32 %v6338_v43, %v6741_v12  ;;  %v2588_v14 = vmul.f32 %v6338_v43, %v6743_v13 }
 0x163   :  { %3875 = vst.msk [vmem:[%s8129_s4 + $0x5d8] sm:$0xff] %vm3687_vm2, %v3618_v2  ;;  %v3617_v63 = vsel %vm3105_vm5, %v2849_v29, %v3361_v26  ;;  %3746 = vst.msk [vmem:[%s8129_s4 + $0x1d0] sm:$0xff] %vm3687_vm2, %v3489_v62  ;;  %vm2980_vm6 = vcmp.ge.f32.partialorder %v2724_v50, 0.0  ;;  %v3236_v20 = vmul.f32 0.01, %v2724_v50  ;;  %vm3108_vm7 = vcmp.ge.f32.partialorder %v2852_v54, 0.0  ;;  %v7005_v35 = vpop.f32.mrf.mxu0  ;;  %v7007_v58 = vpop.f32.mrf.mxu1 }
 0x164   :  { %3874 = vst.msk [vmem:[%s8129_s4 + $0x5d0] sm:$0xff] %vm3687_vm2, %v3617_v63  ;;  %v3364_v12 = vmul.f32 0.01, %v2852_v54  ;;  %v2723_v13 = vadd.f32 %v6363_v55, %v2460_v22  ;;  %v2851_v8 = vadd.f32 %v6363_v55, %v2588_v14  ;;  %v2463_v25 = vmul.f32 %v6338_v43, %v6759_v33  ;;  %v7057_v63 = vld [vmem:[%s8128_s3] ss:$0 sm:$0xff] }
 0x165   :  { %v2591_v27 = vmul.f32 %v6338_v43, %v6761_v56  ;;  %v3492_v16 = vsel %vm2980_vm6, %v2724_v50, %v3236_v20  ;;  %v2462_v23 = vmul.f32 %v6338_v43, %v6777_v19  ;;  %v2590_v37 = vmul.f32 %v6338_v43, %v6779_v53  ;;  %v7021_v3 = vpop.f32.mrf.mxu0  ;;  %v7023_v19 = vpop.f32.mrf.mxu1 }
 0x166   :  { %v3620_v24 = vsel %vm3108_vm7, %v2852_v54, %v3364_v12  ;;  %3749 = vst.msk [vmem:[%s8129_s4 + $0x1e8] sm:$0xff] %vm3687_vm2, %v3492_v16  ;;  %vm2979_vm8 = vcmp.ge.f32.partialorder %v2723_v13, 0.0  ;;  %v3235_v33 = vmul.f32 0.01, %v2723_v13  ;;  %vm3107_vm1 = vcmp.ge.f32.partialorder %v2851_v8, 0.0 }
 0x167   :  { %3877 = vst.msk [vmem:[%s8129_s4 + $0x5e8] sm:$0xff] %vm3687_vm2, %v3620_v24  ;;  %v3363_v56 = vmul.f32 0.01, %v2851_v8  ;;  %v2726_v43 = vadd.f32 %v6363_v55, %v2463_v25  ;;  %v2854_v53 = vadd.f32 %v6363_v55, %v2591_v27  ;;  %v2725_v29 = vadd.f32 %v6363_v55, %v2462_v23  ;;  %v7038_v45 = vpop.f32.mrf.mxu0  ;;  %v7040_v26 = vpop.f32.mrf.mxu1 }
 0x168   :  { %v2853_v11 = vadd.f32 %v6363_v55, %v2590_v37  ;;  %v3491_v21 = vsel %vm2979_vm8, %v2723_v13, %v3235_v33  ;;  %v2465_v61 = vmul.f32 %v7032_v0, %v6793_v28  ;;  %v2593_v44 = vmul.f32 %v7032_v0, %v6795_v57 }
 0x169   :  { %v3619_v39 = vsel %vm3107_vm1, %v2851_v8, %v3363_v56  ;;  %3748 = vst.msk [vmem:[%s8129_s4 + $0x1e0] sm:$0xff] %vm3687_vm2, %v3491_v21  ;;  %vm2982_vm9 = vcmp.ge.f32.partialorder %v2726_v43, 0.0  ;;  %v3238_v55 = vmul.f32 0.01, %v2726_v43  ;;  %vm3110_vm10 = vcmp.ge.f32.partialorder %v2854_v53, 0.0  ;;  %v7050_v2 = vpop.f32.mrf.mxu0  ;;  %v7052_v50 = vpop.f32.mrf.mxu1 }
 0x16a   :  { %3876 = vst.msk [vmem:[%s8129_s4 + $0x5e0] sm:$0xff] %vm3687_vm2, %v3619_v39  ;;  %v3366_v28 = vmul.f32 0.01, %v2854_v53  ;;  %vm2981_vm11 = vcmp.ge.f32.partialorder %v2725_v29, 0.0  ;;  %v3237_v57 = vmul.f32 0.01, %v2725_v29  ;;  %v2728_v22 = vadd.f32 %v7057_v63, %v2465_v61 }
 0x16b   :  { %vm3109_vm12 = vcmp.ge.f32.partialorder %v2853_v11, 0.0  ;;  %v3365_v47 = vmul.f32 0.01, %v2853_v11  ;;  %v3494_v54 = vsel %vm2982_vm9, %v2726_v43, %v3238_v55  ;;  %v2856_v14 = vadd.f32 %v7057_v63, %v2593_v44  ;;  %v7073_v25 = vpop.f32.mrf.mxu0  ;;  %v7075_v27 = vpop.f32.mrf.mxu1 }
 0x16c   :  { %v3622_v62 = vsel %vm3110_vm10, %v2854_v53, %v3366_v28  ;;  %3751 = vst.msk [vmem:[%s8129_s4 + $0x1f8] sm:$0xff] %vm3687_vm2, %v3494_v54  ;;  %v3493_v20 = vsel %vm2981_vm11, %v2725_v29, %v3237_v57  ;;  %v2464_v13 = vmul.f32 %v7032_v0, %v6805_v10  ;;  %v2592_v8 = vmul.f32 %v7032_v0, %v6807_v48 }
 0x16d   :  { %3879 = vst.msk [vmem:[%s8129_s4 + $0x5f8] sm:$0xff] %vm3687_vm2, %v3622_v62  ;;  %v3621_v12 = vsel %vm3109_vm12, %v2853_v11, %v3365_v47  ;;  %3750 = vst.msk [vmem:[%s8129_s4 + $0x1f0] sm:$0xff] %vm3687_vm2, %v3493_v20  ;;  %vm2984_vm13 = vcmp.ge.f32.partialorder %v2728_v22, 0.0  ;;  %v3240_v16 = vmul.f32 0.01, %v2728_v22  ;;  %vm3112_vm14 = vcmp.ge.f32.partialorder %v2856_v14, 0.0  ;;  %v7091_v33 = vpop.f32.mrf.mxu0  ;;  %v7093_v56 = vpop.f32.mrf.mxu1 }
 0x16e   :  { %3878 = vst.msk [vmem:[%s8129_s4 + $0x5f0] sm:$0xff] %vm3687_vm2, %v3621_v12  ;;  %v3368_v10 = vmul.f32 0.01, %v2856_v14  ;;  %v2727_v48 = vadd.f32 %v7057_v63, %v2464_v13  ;;  %v2855_v24 = vadd.f32 %v7057_v63, %v2592_v8  ;;  %v2467_v23 = vmul.f32 %v7032_v0, %v6817_v49 }
 0x16f   :  { %v2595_v37 = vmul.f32 %v7032_v0, %v6819_v41  ;;  %v3496_v43 = vsel %vm2984_vm13, %v2728_v22, %v3240_v16  ;;  %v2466_v29 = vmul.f32 %v7032_v0, %v6835_v51  ;;  %v2594_v11 = vmul.f32 %v7032_v0, %v6837_v32  ;;  %v7107_v21 = vpop.f32.mrf.mxu0  ;;  %v7109_v51 = vpop.f32.mrf.mxu1 }
 0x170   :  { %v3624_v53 = vsel %vm3112_vm14, %v2856_v14, %v3368_v10  ;;  %3753 = vst.msk [vmem:[%s8129_s4 + $0x208] sm:$0xff] %vm3687_vm2, %v3496_v43  ;;  %vm2983_vm15 = vcmp.ge.f32.partialorder %v2727_v48, 0.0  ;;  %v3239_v49 = vmul.f32 0.01, %v2727_v48  ;;  %vm3111_vm0 = vcmp.ge.f32.partialorder %v2855_v24, 0.0 }
 0x171   :  { %3881 = vst.msk [vmem:[%s8129_s4 + $0x608] sm:$0xff] %vm3687_vm2, %v3624_v53  ;;  %v3367_v41 = vmul.f32 0.01, %v2855_v24  ;;  %v2730_v32 = vadd.f32 %v7057_v63, %v2467_v23  ;;  %v2858_v39 = vadd.f32 %v7057_v63, %v2595_v37  ;;  %v2729_v61 = vadd.f32 %v7057_v63, %v2466_v29  ;;  %v7119_v54 = vpop.f32.mrf.mxu0  ;;  %v7121_v62 = vpop.f32.mrf.mxu1 }
 0x172   :  { %v2857_v44 = vadd.f32 %v7057_v63, %v2594_v11  ;;  %v3495_v55 = vsel %vm2983_vm15, %v2727_v48, %v3239_v49  ;;  %v2469_v57 = vmul.f32 %v7032_v0, %v6853_v4  ;;  %v2597_v47 = vmul.f32 %v7032_v0, %v6855_v18 }
 0x173   :  { %v3623_v28 = vsel %vm3111_vm0, %v2855_v24, %v3367_v41  ;;  %3752 = vst.msk [vmem:[%s8129_s4 + $0x200] sm:$0xff] %vm3687_vm2, %v3495_v55  ;;  %vm2986_vm3 = vcmp.ge.f32.partialorder %v2730_v32, 0.0  ;;  %v3242_v22 = vmul.f32 0.01, %v2730_v32  ;;  %vm3114_vm4 = vcmp.ge.f32.partialorder %v2858_v39, 0.0  ;;  %v7131_v20 = vpop.f32.mrf.mxu0  ;;  %v7133_v12 = vpop.f32.mrf.mxu1 }
 0x174   :  { %3880 = vst.msk [vmem:[%s8129_s4 + $0x600] sm:$0xff] %vm3687_vm2, %v3623_v28  ;;  %v3370_v4 = vmul.f32 0.01, %v2858_v39  ;;  %vm2985_vm5 = vcmp.ge.f32.partialorder %v2729_v61, 0.0  ;;  %v3241_v18 = vmul.f32 0.01, %v2729_v61  ;;  %v2732_v16 = vadd.f32 %v7057_v63, %v2469_v57 }
 0x175   :  { %vm3113_vm6 = vcmp.ge.f32.partialorder %v2857_v44, 0.0  ;;  %v3369_v14 = vmul.f32 0.01, %v2857_v44  ;;  %v3498_v13 = vsel %vm2986_vm3, %v2730_v32, %v3242_v22  ;;  %v2860_v10 = vadd.f32 %v7057_v63, %v2597_v47  ;;  %v7149_v43 = vpop.f32.mrf.mxu0  ;;  %v7151_v53 = vpop.f32.mrf.mxu1 }
 0x176   :  { %v3626_v8 = vsel %vm3114_vm4, %v2858_v39, %v3370_v4  ;;  %3755 = vst.msk [vmem:[%s8129_s4 + $0x218] sm:$0xff] %vm3687_vm2, %v3498_v13  ;;  %v3497_v48 = vsel %vm2985_vm5, %v2729_v61, %v3241_v18  ;;  %v2468_v23 = vmul.f32 %v7032_v0, %v6869_v40  ;;  %v2596_v37 = vmul.f32 %v7032_v0, %v6871_v9 }
 0x177   :  { %3883 = vst.msk [vmem:[%s8129_s4 + $0x618] sm:$0xff] %vm3687_vm2, %v3626_v8  ;;  %v3625_v24 = vsel %vm3113_vm6, %v2857_v44, %v3369_v14  ;;  %3754 = vst.msk [vmem:[%s8129_s4 + $0x210] sm:$0xff] %vm3687_vm2, %v3497_v48  ;;  %vm2988_vm7 = vcmp.ge.f32.partialorder %v2732_v16, 0.0  ;;  %v3244_v29 = vmul.f32 0.01, %v2732_v16  ;;  %vm3116_vm8 = vcmp.ge.f32.partialorder %v2860_v10, 0.0  ;;  %v7167_v32 = vpop.f32.mrf.mxu0  ;;  %v7169_v39 = vpop.f32.mrf.mxu1 }
 0x178   :  { %3882 = vst.msk [vmem:[%s8129_s4 + $0x610] sm:$0xff] %vm3687_vm2, %v3625_v24  ;;  %v3372_v40 = vmul.f32 0.01, %v2860_v10  ;;  %v2731_v9 = vadd.f32 %v7057_v63, %v2468_v23  ;;  %v2859_v11 = vadd.f32 %v7057_v63, %v2596_v37  ;;  %v2471_v49 = vmul.f32 %v7032_v0, %v6881_v1 }
 0x179   :  { %v2599_v41 = vmul.f32 %v7032_v0, %v6883_v38  ;;  %v3500_v61 = vsel %vm2988_vm7, %v2732_v16, %v3244_v29  ;;  %v2470_v55 = vmul.f32 %v7032_v0, %v6893_v15  ;;  %v2598_v28 = vmul.f32 %v7032_v0, %v6895_v36  ;;  %v7183_v57 = vpop.f32.mrf.mxu0  ;;  %v7185_v15 = vpop.f32.mrf.mxu1 }
 0x17a   :  { %v3628_v44 = vsel %vm3116_vm8, %v2860_v10, %v3372_v40  ;;  %3757 = vst.msk [vmem:[%s8129_s4 + $0x228] sm:$0xff] %vm3687_vm2, %v3500_v61  ;;  %vm2987_vm1 = vcmp.ge.f32.partialorder %v2731_v9, 0.0  ;;  %v3243_v1 = vmul.f32 0.01, %v2731_v9  ;;  %vm3115_vm9 = vcmp.ge.f32.partialorder %v2859_v11, 0.0 }
 0x17b   :  { %3885 = vst.msk [vmem:[%s8129_s4 + $0x628] sm:$0xff] %vm3687_vm2, %v3628_v44  ;;  %v3371_v38 = vmul.f32 0.01, %v2859_v11  ;;  %v2734_v36 = vadd.f32 %v7057_v63, %v2471_v49  ;;  %v2862_v47 = vadd.f32 %v7057_v63, %v2599_v41  ;;  %v2733_v22 = vadd.f32 %v7057_v63, %v2470_v55  ;;  %v7195_v16 = vpop.f32.mrf.mxu0  ;;  %v7197_v10 = vpop.f32.mrf.mxu1 }
 0x17c   :  { %v2861_v4 = vadd.f32 %v7057_v63, %v2598_v28  ;;  %v3499_v18 = vsel %vm2987_vm1, %v2731_v9, %v3243_v1  ;;  %v2473_v13 = vmul.f32 %v7032_v0, %v6911_v7  ;;  %v2601_v8 = vmul.f32 %v7032_v0, %v6913_v34 }
 0x17d   :  { %v3627_v14 = vsel %vm3115_vm9, %v2859_v11, %v3371_v38  ;;  %3756 = vst.msk [vmem:[%s8129_s4 + $0x220] sm:$0xff] %vm3687_vm2, %v3499_v18  ;;  %vm2990_vm10 = vcmp.ge.f32.partialorder %v2734_v36, 0.0  ;;  %v3246_v48 = vmul.f32 0.01, %v2734_v36  ;;  %vm3118_vm11 = vcmp.ge.f32.partialorder %v2862_v47, 0.0  ;;  %v7207_v23 = vpop.f32.mrf.mxu0  ;;  %v7209_v37 = vpop.f32.mrf.mxu1 }
 0x17e   :  { %3884 = vst.msk [vmem:[%s8129_s4 + $0x620] sm:$0xff] %vm3687_vm2, %v3627_v14  ;;  %v3374_v7 = vmul.f32 0.01, %v2862_v47  ;;  %vm2989_vm12 = vcmp.ge.f32.partialorder %v2733_v22, 0.0  ;;  %v3245_v34 = vmul.f32 0.01, %v2733_v22  ;;  %v2736_v9 = vadd.f32 %v7057_v63, %v2473_v13 }
 0x17f   :  { %vm3117_vm13 = vcmp.ge.f32.partialorder %v2861_v4, 0.0  ;;  %v3373_v24 = vmul.f32 0.01, %v2861_v4  ;;  %v3502_v29 = vsel %vm2990_vm10, %v2734_v36, %v3246_v48  ;;  %v2864_v11 = vadd.f32 %v7057_v63, %v2601_v8  ;;  %v7225_v55 = vpop.f32.mrf.mxu0  ;;  %v7227_v28 = vpop.f32.mrf.mxu1 }
 0x180   :  { %v3630_v40 = vsel %vm3118_vm11, %v2862_v47, %v3374_v7  ;;  %3759 = vst.msk [vmem:[%s8129_s4 + $0x238] sm:$0xff] %vm3687_vm2, %v3502_v29  ;;  %v3501_v49 = vsel %vm2989_vm12, %v2733_v22, %v3245_v34  ;;  %v2472_v61 = vmul.f32 %v7032_v0, %v6929_v46  ;;  %v2600_v44 = vmul.f32 %v7032_v0, %v6931_v5 }
 0x181   :  { %3887 = vst.msk [vmem:[%s8129_s4 + $0x638] sm:$0xff] %vm3687_vm2, %v3630_v40  ;;  %v3629_v41 = vsel %vm3117_vm13, %v2861_v4, %v3373_v24  ;;  %3758 = vst.msk [vmem:[%s8129_s4 + $0x230] sm:$0xff] %vm3687_vm2, %v3501_v49  ;;  %vm2992_vm14 = vcmp.ge.f32.partialorder %v2736_v9, 0.0  ;;  %v3248_v1 = vmul.f32 0.01, %v2736_v9  ;;  %vm3120_vm15 = vcmp.ge.f32.partialorder %v2864_v11, 0.0  ;;  %v7243_v22 = vpop.f32.mrf.mxu0  ;;  %v7245_v4 = vpop.f32.mrf.mxu1 }
 0x182   :  { %3886 = vst.msk [vmem:[%s8129_s4 + $0x630] sm:$0xff] %vm3687_vm2, %v3629_v41  ;;  %v3376_v46 = vmul.f32 0.01, %v2864_v11  ;;  %v2735_v5 = vadd.f32 %v7057_v63, %v2472_v61  ;;  %v2863_v38 = vadd.f32 %v7057_v63, %v2600_v44  ;;  %v2475_v36 = vmul.f32 %v7032_v0, %v6945_v52 }
 0x183   :  { %v2603_v47 = vmul.f32 %v7032_v0, %v6947_v6  ;;  %v3504_v18 = vsel %vm2992_vm14, %v2736_v9, %v3248_v1  ;;  %v2474_v13 = vmul.f32 %v7032_v0, %v6957_v59  ;;  %v2602_v8 = vmul.f32 %v7032_v0, %v6959_v60  ;;  %v7259_v48 = vpop.f32.mrf.mxu0  ;;  %v7261_v59 = vpop.f32.mrf.mxu1 }
 0x184   :  { %v3632_v14 = vsel %vm3120_vm15, %v2864_v11, %v3376_v46  ;;  %3761 = vst.msk [vmem:[%s8129_s4 + $0x248] sm:$0xff] %vm3687_vm2, %v3504_v18  ;;  %vm2991_vm0 = vcmp.ge.f32.partialorder %v2735_v5, 0.0  ;;  %v3247_v52 = vmul.f32 0.01, %v2735_v5  ;;  %vm3119_vm3 = vcmp.ge.f32.partialorder %v2863_v38, 0.0 }
 0x185   :  { %3889 = vst.msk [vmem:[%s8129_s4 + $0x648] sm:$0xff] %vm3687_vm2, %v3632_v14  ;;  %v3375_v6 = vmul.f32 0.01, %v2863_v38  ;;  %v2738_v60 = vadd.f32 %v7057_v63, %v2475_v36  ;;  %v2866_v7 = vadd.f32 %v7057_v63, %v2603_v47  ;;  %v2737_v34 = vadd.f32 %v7057_v63, %v2474_v13  ;;  %v7271_v49 = vpop.f32.mrf.mxu0  ;;  %v7273_v41 = vpop.f32.mrf.mxu1 }
 0x186   :  { %v2865_v24 = vadd.f32 %v7057_v63, %v2602_v8  ;;  %v3503_v29 = vsel %vm2991_vm0, %v2735_v5, %v3247_v52  ;;  %v2477_v9 = vmul.f32 %v7032_v0, %v6969_v42  ;;  %v2605_v11 = vmul.f32 %v7032_v0, %v6971_v30 }
 0x187   :  { %v3631_v40 = vsel %vm3119_vm3, %v2863_v38, %v3375_v6  ;;  %3760 = vst.msk [vmem:[%s8129_s4 + $0x240] sm:$0xff] %vm3687_vm2, %v3503_v29  ;;  %vm2994_vm4 = vcmp.ge.f32.partialorder %v2738_v60, 0.0  ;;  %v3250_v61 = vmul.f32 0.01, %v2738_v60  ;;  %vm3122_vm5 = vcmp.ge.f32.partialorder %v2866_v7, 0.0  ;;  %v7283_v1 = vpop.f32.mrf.mxu0  ;;  %v7285_v46 = vpop.f32.mrf.mxu1 }
 0x188   :  { %3888 = vst.msk [vmem:[%s8129_s4 + $0x640] sm:$0xff] %vm3687_vm2, %v3631_v40  ;;  %v3378_v42 = vmul.f32 0.01, %v2866_v7  ;;  %vm2993_vm6 = vcmp.ge.f32.partialorder %v2737_v34, 0.0  ;;  %v3249_v30 = vmul.f32 0.01, %v2737_v34  ;;  %v2740_v36 = vadd.f32 %v7057_v63, %v2477_v9 }
 0x189   :  { %vm3121_vm7 = vcmp.ge.f32.partialorder %v2865_v24, 0.0  ;;  %v3377_v44 = vmul.f32 0.01, %v2865_v24  ;;  %v3506_v5 = vsel %vm2994_vm4, %v2738_v60, %v3250_v61  ;;  %v2868_v47 = vadd.f32 %v7057_v63, %v2605_v11  ;;  %v7301_v52 = vpop.f32.mrf.mxu0  ;;  %v7303_v6 = vpop.f32.mrf.mxu1 }
 0x18a   :  { %v3634_v38 = vsel %vm3122_vm5, %v2866_v7, %v3378_v42  ;;  %3763 = vst.msk [vmem:[%s8129_s4 + $0x258] sm:$0xff] %vm3687_vm2, %v3506_v5  ;;  %v3505_v18 = vsel %vm2993_vm6, %v2737_v34, %v3249_v30  ;;  %v2476_v13 = vmul.f32 %v7032_v0, %v6987_v17  ;;  %v2604_v8 = vmul.f32 %v7032_v0, %v6989_v31 }
 0x18b   :  { %3891 = vst.msk [vmem:[%s8129_s4 + $0x658] sm:$0xff] %vm3687_vm2, %v3634_v38  ;;  %v3633_v14 = vsel %vm3121_vm7, %v2865_v24, %v3377_v44  ;;  %3762 = vst.msk [vmem:[%s8129_s4 + $0x250] sm:$0xff] %vm3687_vm2, %v3505_v18  ;;  %vm2996_vm8 = vcmp.ge.f32.partialorder %v2740_v36, 0.0  ;;  %v3252_v60 = vmul.f32 0.01, %v2740_v36  ;;  %vm3124_vm1 = vcmp.ge.f32.partialorder %v2868_v47, 0.0  ;;  %v7331_v61 = vpop.f32.mrf.mxu0 }
 0x18c   :  { %3890 = vst.msk [vmem:[%s8129_s4 + $0x650] sm:$0xff] %vm3687_vm2, %v3633_v14  ;;  %v3380_v17 = vmul.f32 0.01, %v2868_v47  ;;  %v2739_v31 = vadd.f32 %v7057_v63, %v2476_v13  ;;  %v2867_v7 = vadd.f32 %v7057_v63, %v2604_v8  ;;  %v2479_v34 = vmul.f32 %v7032_v0, %v7005_v35 }
 0x18d   :  { %v2607_v24 = vmul.f32 %v7032_v0, %v7007_v58  ;;  %v3508_v29 = vsel %vm2996_vm8, %v2740_v36, %v3252_v60  ;;  %v2478_v9 = vmul.f32 %v7032_v0, %v7021_v3  ;;  %v2606_v11 = vmul.f32 %v7032_v0, %v7023_v19  ;;  %v7333_v3 = vpop.f32.mrf.mxu1  ;;  %v7351_v8 = vpop.f32.mrf.mxu0 }
 0x18e   :  { %v3636_v40 = vsel %vm3124_vm1, %v2868_v47, %v3380_v17  ;;  %3765 = vst.msk [vmem:[%s8129_s4 + $0x268] sm:$0xff] %vm3687_vm2, %v3508_v29  ;;  %vm2995_vm9 = vcmp.ge.f32.partialorder %v2739_v31, 0.0  ;;  %v3251_v35 = vmul.f32 0.01, %v2739_v31  ;;  %vm3123_vm10 = vcmp.ge.f32.partialorder %v2867_v7, 0.0 }
 0x18f   :  { %3893 = vst.msk [vmem:[%s8129_s4 + $0x668] sm:$0xff] %vm3687_vm2, %v3636_v40  ;;  %v3379_v58 = vmul.f32 0.01, %v2867_v7  ;;  %v2742_v19 = vadd.f32 %v7057_v63, %v2479_v34  ;;  %v2870_v42 = vadd.f32 %v7057_v63, %v2607_v24  ;;  %v2741_v30 = vadd.f32 %v7057_v63, %v2478_v9 }
 0x190   :  { %v2869_v44 = vadd.f32 %v7057_v63, %v2606_v11  ;;  %v3507_v5 = vsel %vm2995_vm9, %v2739_v31, %v3251_v35  ;;  %v2481_v36 = vmul.f32 %v7032_v0, %v7038_v45  ;;  %v2609_v47 = vmul.f32 %v7032_v0, %v7040_v26  ;;  %v7353_v26 = vpop.f32.mrf.mxu1 }
 0x191   :  { %v3635_v38 = vsel %vm3123_vm10, %v2867_v7, %v3379_v58  ;;  %3764 = vst.msk [vmem:[%s8129_s4 + $0x260] sm:$0xff] %vm3687_vm2, %v3507_v5  ;;  %vm2998_vm11 = vcmp.ge.f32.partialorder %v2742_v19, 0.0  ;;  %v3254_v18 = vmul.f32 0.01, %v2742_v19  ;;  %vm3126_vm12 = vcmp.ge.f32.partialorder %v2870_v42, 0.0 }
 0x192   :  { %3892 = vst.msk [vmem:[%s8129_s4 + $0x660] sm:$0xff] %vm3687_vm2, %v3635_v38  ;;  %v3382_v14 = vmul.f32 0.01, %v2870_v42  ;;  %vm2997_vm13 = vcmp.ge.f32.partialorder %v2741_v30, 0.0  ;;  %v3253_v13 = vmul.f32 0.01, %v2741_v30  ;;  %v2744_v31 = vadd.f32 %v7057_v63, %v2481_v36 }
 0x193   :  { %vm3125_vm14 = vcmp.ge.f32.partialorder %v2869_v44, 0.0  ;;  %v3381_v45 = vmul.f32 0.01, %v2869_v44  ;;  %v3510_v60 = vsel %vm2998_vm11, %v2742_v19, %v3254_v18  ;;  %v2872_v7 = vadd.f32 %v7057_v63, %v2609_v47  ;;  %v7383_v19 = vpop.f32.mrf.mxu0 }
 0x194   :  { %v3638_v17 = vsel %vm3126_vm12, %v2870_v42, %v3382_v14  ;;  %3767 = vst.msk [vmem:[%s8129_s4 + $0x278] sm:$0xff] %vm3687_vm2, %v3510_v60  ;;  %v3509_v34 = vsel %vm2997_vm13, %v2741_v30, %v3253_v13  ;;  %v2480_v29 = vmul.f32 %v7032_v0, %v7050_v2  ;;  %v2608_v40 = vmul.f32 %v7032_v0, %v7052_v50  ;;  %v7385_v42 = vpop.f32.mrf.mxu1 }
 0x195   :  { %3895 = vst.msk [vmem:[%s8129_s4 + $0x678] sm:$0xff] %vm3687_vm2, %v3638_v17  ;;  %v3637_v24 = vsel %vm3125_vm14, %v2869_v44, %v3381_v45  ;;  %3766 = vst.msk [vmem:[%s8129_s4 + $0x270] sm:$0xff] %vm3687_vm2, %v3509_v34  ;;  %vm3000_vm15 = vcmp.ge.f32.partialorder %v2744_v31, 0.0  ;;  %v3256_v9 = vmul.f32 0.01, %v2744_v31  ;;  %vm3128_vm0 = vcmp.ge.f32.partialorder %v2872_v7, 0.0  ;;  %v7407_v60 = vpop.f32.mrf.mxu0 }
 0x196   :  { %3894 = vst.msk [vmem:[%s8129_s4 + $0x670] sm:$0xff] %vm3687_vm2, %v3637_v24  ;;  %v3384_v11 = vmul.f32 0.01, %v2872_v7  ;;  %v2743_v35 = vadd.f32 %v7057_v63, %v2480_v29  ;;  %v2871_v2 = vadd.f32 %v7057_v63, %v2608_v40  ;;  %v2483_v50 = vmul.f32 %v7032_v0, %v7073_v25  ;;  %v7409_v17 = vpop.f32.mrf.mxu1 }
 0x197   :  { %v2611_v58 = vmul.f32 %v7032_v0, %v7075_v27  ;;  %v3512_v30 = vsel %vm3000_vm15, %v2744_v31, %v3256_v9  ;;  %v2482_v5 = vmul.f32 %v7032_v0, %v7091_v33  ;;  %v2610_v38 = vmul.f32 %v7032_v0, %v7093_v56 }
 0x198   :  { %v3640_v44 = vsel %vm3128_vm0, %v2872_v7, %v3384_v11  ;;  %3769 = vst.msk [vmem:[%s8129_s4 + $0x288] sm:$0xff] %vm3687_vm2, %v3512_v30  ;;  %vm2999_vm3 = vcmp.ge.f32.partialorder %v2743_v35, 0.0  ;;  %v3255_v25 = vmul.f32 0.01, %v2743_v35  ;;  %vm3127_vm4 = vcmp.ge.f32.partialorder %v2871_v2, 0.0 }
 0x199   :  { %3897 = vst.msk [vmem:[%s8129_s4 + $0x688] sm:$0xff] %vm3687_vm2, %v3640_v44  ;;  %v3383_v27 = vmul.f32 0.01, %v2871_v2  ;;  %v2746_v36 = vadd.f32 %v7057_v63, %v2483_v50  ;;  %v2874_v33 = vadd.f32 %v7057_v63, %v2611_v58  ;;  %v2745_v56 = vadd.f32 %v7057_v63, %v2482_v5  ;;  %v7433_v50 = vpop.f32.mrf.mxu0  ;;  %v7435_v58 = vpop.f32.mrf.mxu1 }
 0x19a   :  { %v2873_v47 = vadd.f32 %v7057_v63, %v2610_v38  ;;  %v3511_v18 = vsel %vm2999_vm3, %v2743_v35, %v3255_v25  ;;  %v2485_v13 = vmul.f32 %v7032_v0, %v7107_v21  ;;  %v2613_v45 = vmul.f32 %v7032_v0, %v7109_v51 }
 0x19b   :  { %v3639_v14 = vsel %vm3127_vm4, %v2871_v2, %v3383_v27  ;;  %3768 = vst.msk [vmem:[%s8129_s4 + $0x280] sm:$0xff] %vm3687_vm2, %v3511_v18  ;;  %vm3002_vm5 = vcmp.ge.f32.partialorder %v2746_v36, 0.0  ;;  %v3258_v31 = vmul.f32 0.01, %v2746_v36  ;;  %vm3130_vm6 = vcmp.ge.f32.partialorder %v2874_v33, 0.0 }
 0x19c   :  { %3896 = vst.msk [vmem:[%s8129_s4 + $0x680] sm:$0xff] %vm3687_vm2, %v3639_v14  ;;  %v3386_v21 = vmul.f32 0.01, %v2874_v33  ;;  %vm3001_vm7 = vcmp.ge.f32.partialorder %v2745_v56, 0.0  ;;  %v3257_v51 = vmul.f32 0.01, %v2745_v56  ;;  %v2748_v29 = vadd.f32 %v7057_v63, %v2485_v13 }
 0x19d   :  { %vm3129_vm8 = vcmp.ge.f32.partialorder %v2873_v47, 0.0  ;;  %v3385_v7 = vmul.f32 0.01, %v2873_v47  ;;  %v3514_v34 = vsel %vm3002_vm5, %v2746_v36, %v3258_v31  ;;  %v2876_v40 = vadd.f32 %v7057_v63, %v2613_v45 }
 0x19e   :  { %v3642_v24 = vsel %vm3130_vm6, %v2874_v33, %v3386_v21  ;;  %3771 = vst.msk [vmem:[%s8129_s4 + $0x298] sm:$0xff] %vm3687_vm2, %v3514_v34  ;;  %v3513_v9 = vsel %vm3001_vm7, %v2745_v56, %v3257_v51  ;;  %v2484_v35 = vmul.f32 %v7032_v0, %v7119_v54  ;;  %v2612_v2 = vmul.f32 %v7032_v0, %v7121_v62  ;;  %v7463_v56 = vpop.f32.mrf.mxu0 }
 0x19f   :  { %3899 = vst.msk [vmem:[%s8129_s4 + $0x698] sm:$0xff] %vm3687_vm2, %v3642_v24  ;;  %v3641_v11 = vsel %vm3129_vm8, %v2873_v47, %v3385_v7  ;;  %3770 = vst.msk [vmem:[%s8129_s4 + $0x290] sm:$0xff] %vm3687_vm2, %v3513_v9  ;;  %vm3004_vm1 = vcmp.ge.f32.partialorder %v2748_v29, 0.0  ;;  %v3260_v30 = vmul.f32 0.01, %v2748_v29  ;;  %vm3132_vm9 = vcmp.ge.f32.partialorder %v2876_v40, 0.0 }
 0x1a0   :  { %3898 = vst.msk [vmem:[%s8129_s4 + $0x690] sm:$0xff] %vm3687_vm2, %v3641_v11  ;;  %v3388_v54 = vmul.f32 0.01, %v2876_v40  ;;  %v2747_v62 = vadd.f32 %v7057_v63, %v2484_v35  ;;  %v2875_v44 = vadd.f32 %v7057_v63, %v2612_v2  ;;  %v2487_v5 = vmul.f32 %v7032_v0, %v7131_v20  ;;  %v7483_v24 = vpop.f32.mrf.mxu0 }
 0x1a1   :  { %v2615_v38 = vmul.f32 %v7032_v0, %v7133_v12  ;;  %v3516_v25 = vsel %vm3004_vm1, %v2748_v29, %v3260_v30  ;;  %v2486_v36 = vmul.f32 %v7032_v0, %v7149_v43  ;;  %v2614_v33 = vmul.f32 %v7032_v0, %v7151_v53  ;;  %v7465_v43 = vpop.f32.mrf.mxu1 }
 0x1a2   :  { %v3644_v27 = vsel %vm3132_vm9, %v2876_v40, %v3388_v54  ;;  %3773 = vst.msk [vmem:[%s8129_s4 + $0x2a8] sm:$0xff] %vm3687_vm2, %v3516_v25  ;;  %vm3003_vm10 = vcmp.ge.f32.partialorder %v2747_v62, 0.0  ;;  %v3259_v20 = vmul.f32 0.01, %v2747_v62  ;;  %vm3131_vm11 = vcmp.ge.f32.partialorder %v2875_v44, 0.0  ;;  %v7515_v25 = vpop.f32.mrf.mxu0 }
 0x1a3   :  { %3901 = vst.msk [vmem:[%s8129_s4 + $0x6a8] sm:$0xff] %vm3687_vm2, %v3644_v27  ;;  %v3387_v12 = vmul.f32 0.01, %v2875_v44  ;;  %v2750_v53 = vadd.f32 %v7057_v63, %v2487_v5  ;;  %v2878_v47 = vadd.f32 %v7057_v63, %v2615_v38  ;;  %v2749_v18 = vadd.f32 %v7057_v63, %v2486_v36 }
 0x1a4   :  { %v2877_v14 = vadd.f32 %v7057_v63, %v2614_v33  ;;  %v3515_v13 = vsel %vm3003_vm10, %v2747_v62, %v3259_v20  ;;  %v2489_v31 = vmul.f32 %v7032_v0, %v7167_v32  ;;  %v2617_v21 = vmul.f32 %v7032_v0, %v7169_v39  ;;  %v7485_v39 = vpop.f32.mrf.mxu1 }
 0x1a5   :  { %v3643_v45 = vsel %vm3131_vm11, %v2875_v44, %v3387_v12  ;;  %3772 = vst.msk [vmem:[%s8129_s4 + $0x2a0] sm:$0xff] %vm3687_vm2, %v3515_v13  ;;  %vm3006_vm12 = vcmp.ge.f32.partialorder %v2750_v53, 0.0  ;;  %v3262_v51 = vmul.f32 0.01, %v2750_v53  ;;  %vm3134_vm13 = vcmp.ge.f32.partialorder %v2878_v47, 0.0 }
 0x1a6   :  { %3900 = vst.msk [vmem:[%s8129_s4 + $0x6a0] sm:$0xff] %vm3687_vm2, %v3643_v45  ;;  %v3390_v7 = vmul.f32 0.01, %v2878_v47  ;;  %vm3005_vm14 = vcmp.ge.f32.partialorder %v2749_v18, 0.0  ;;  %v3261_v34 = vmul.f32 0.01, %v2749_v18  ;;  %v2752_v9 = vadd.f32 %v7057_v63, %v2489_v31  ;;  %v7517_v27 = vpop.f32.mrf.mxu1  ;;  %v7539_v31 = vpop.f32.mrf.mxu0 }
 0x1a7   :  { %vm3133_vm15 = vcmp.ge.f32.partialorder %v2877_v14, 0.0  ;;  %v3389_v32 = vmul.f32 0.01, %v2877_v14  ;;  %v3518_v29 = vsel %vm3006_vm12, %v2750_v53, %v3262_v51  ;;  %v2880_v11 = vadd.f32 %v7057_v63, %v2617_v21 }
 0x1a8   :  { %v3646_v40 = vsel %vm3134_vm13, %v2878_v47, %v3390_v7  ;;  %3775 = vst.msk [vmem:[%s8129_s4 + $0x2b8] sm:$0xff] %vm3687_vm2, %v3518_v29  ;;  %v3517_v35 = vsel %vm3005_vm14, %v2749_v18, %v3261_v34  ;;  %v2488_v30 = vmul.f32 %v7032_v0, %v7183_v57  ;;  %v2616_v54 = vmul.f32 %v7032_v0, %v7185_v15  ;;  %v7541_v21 = vpop.f32.mrf.mxu1 }
 0x1a9   :  { %3903 = vst.msk [vmem:[%s8129_s4 + $0x6b8] sm:$0xff] %vm3687_vm2, %v3646_v40  ;;  %v3645_v2 = vsel %vm3133_vm15, %v2877_v14, %v3389_v32  ;;  %3774 = vst.msk [vmem:[%s8129_s4 + $0x2b0] sm:$0xff] %vm3687_vm2, %v3517_v35  ;;  %vm3008_vm0 = vcmp.ge.f32.partialorder %v2752_v9, 0.0  ;;  %v3264_v62 = vmul.f32 0.01, %v2752_v9  ;;  %vm3136_vm3 = vcmp.ge.f32.partialorder %v2880_v11, 0.0 }
 0x1aa   :  { %3902 = vst.msk [vmem:[%s8129_s4 + $0x6b0] sm:$0xff] %vm3687_vm2, %v3645_v2  ;;  %v3392_v44 = vmul.f32 0.01, %v2880_v11  ;;  %v2751_v5 = vadd.f32 %v7057_v63, %v2488_v30  ;;  %v2879_v57 = vadd.f32 %v7057_v63, %v2616_v54  ;;  %v2491_v15 = vmul.f32 %v7032_v0, %v7195_v16  ;;  %v7565_v30 = vpop.f32.mrf.mxu0  ;;  %v7567_v54 = vpop.f32.mrf.mxu1 }
 0x1ab   :  { %v2619_v38 = vmul.f32 %v7032_v0, %v7197_v10  ;;  %v3520_v36 = vsel %vm3008_vm0, %v2752_v9, %v3264_v62  ;;  %v2490_v20 = vmul.f32 %v7032_v0, %v7207_v23  ;;  %v2618_v12 = vmul.f32 %v7032_v0, %v7209_v37 }
 0x1ac   :  { %v3648_v33 = vsel %vm3136_vm3, %v2880_v11, %v3392_v44  ;;  %3777 = vst.msk [vmem:[%s8129_s4 + $0x2c8] sm:$0xff] %vm3687_vm2, %v3520_v36  ;;  %vm3007_vm4 = vcmp.ge.f32.partialorder %v2751_v5, 0.0  ;;  %v3263_v16 = vmul.f32 0.01, %v2751_v5  ;;  %vm3135_vm5 = vcmp.ge.f32.partialorder %v2879_v57, 0.0 }
 0x1ad   :  { %3905 = vst.msk [vmem:[%s8129_s4 + $0x6c8] sm:$0xff] %vm3687_vm2, %v3648_v33  ;;  %v3391_v10 = vmul.f32 0.01, %v2879_v57  ;;  %v2754_v53 = vadd.f32 %v7057_v63, %v2491_v15  ;;  %v2882_v23 = vadd.f32 %v7057_v63, %v2619_v38  ;;  %v2753_v37 = vadd.f32 %v7057_v63, %v2490_v20  ;;  %v7595_v20 = vpop.f32.mrf.mxu0 }
 0x1ae   :  { %v2881_v47 = vadd.f32 %v7057_v63, %v2618_v12  ;;  %v3519_v18 = vsel %vm3007_vm4, %v2751_v5, %v3263_v16  ;;  %v2493_v13 = vmul.f32 %v7032_v0, %v7225_v55  ;;  %v2621_v45 = vmul.f32 %v7032_v0, %v7227_v28 }
 0x1af   :  { %v3647_v14 = vsel %vm3135_vm5, %v2879_v57, %v3391_v10  ;;  %3776 = vst.msk [vmem:[%s8129_s4 + $0x2c0] sm:$0xff] %vm3687_vm2, %v3519_v18  ;;  %vm3010_vm6 = vcmp.ge.f32.partialorder %v2754_v53, 0.0  ;;  %v3266_v51 = vmul.f32 0.01, %v2754_v53  ;;  %vm3138_vm7 = vcmp.ge.f32.partialorder %v2882_v23, 0.0 }
 0x1b0   :  { %3904 = vst.msk [vmem:[%s8129_s4 + $0x6c0] sm:$0xff] %vm3687_vm2, %v3647_v14  ;;  %v3394_v55 = vmul.f32 0.01, %v2882_v23  ;;  %vm3009_vm8 = vcmp.ge.f32.partialorder %v2753_v37, 0.0  ;;  %v3265_v28 = vmul.f32 0.01, %v2753_v37  ;;  %v2756_v29 = vadd.f32 %v7057_v63, %v2493_v13 }
 0x1b1   :  { %vm3137_vm1 = vcmp.ge.f32.partialorder %v2881_v47, 0.0  ;;  %v3393_v7 = vmul.f32 0.01, %v2881_v47  ;;  %v3522_v34 = vsel %vm3010_vm6, %v2754_v53, %v3266_v51  ;;  %v2884_v40 = vadd.f32 %v7057_v63, %v2621_v45  ;;  %v7615_v45 = vpop.f32.mrf.mxu0 }
 0x1b2   :  { %v3650_v32 = vsel %vm3138_vm7, %v2882_v23, %v3394_v55  ;;  %3779 = vst.msk [vmem:[%s8129_s4 + $0x2d8] sm:$0xff] %vm3687_vm2, %v3522_v34  ;;  %v3521_v9 = vsel %vm3009_vm8, %v2753_v37, %v3265_v28  ;;  %v2492_v35 = vmul.f32 %v7032_v0, %v7243_v22  ;;  %v2620_v2 = vmul.f32 %v7032_v0, %v7245_v4 }
 0x1b3   :  { %3907 = vst.msk [vmem:[%s8129_s4 + $0x6d8] sm:$0xff] %vm3687_vm2, %v3650_v32  ;;  %v3649_v11 = vsel %vm3137_vm1, %v2881_v47, %v3393_v7  ;;  %3778 = vst.msk [vmem:[%s8129_s4 + $0x2d0] sm:$0xff] %vm3687_vm2, %v3521_v9  ;;  %vm3012_vm9 = vcmp.ge.f32.partialorder %v2756_v29, 0.0  ;;  %v3268_v62 = vmul.f32 0.01, %v2756_v29  ;;  %vm3140_vm10 = vcmp.ge.f32.partialorder %v2884_v40, 0.0 }
 0x1b4   :  { %3906 = vst.msk [vmem:[%s8129_s4 + $0x6d0] sm:$0xff] %vm3687_vm2, %v3649_v11  ;;  %v3396_v22 = vmul.f32 0.01, %v2884_v40  ;;  %v2755_v4 = vadd.f32 %v7057_v63, %v2492_v35  ;;  %v2883_v44 = vadd.f32 %v7057_v63, %v2620_v2  ;;  %v2495_v5 = vmul.f32 %v7032_v0, %v7259_v48 }
 0x1b5   :  { %v2623_v57 = vmul.f32 %v7032_v0, %v7261_v59  ;;  %v3524_v15 = vsel %vm3012_vm9, %v2756_v29, %v3268_v62  ;;  %v2494_v36 = vmul.f32 %v7032_v0, %v7271_v49  ;;  %v2622_v33 = vmul.f32 %v7032_v0, %v7273_v41  ;;  %v7597_v49 = vpop.f32.mrf.mxu1  ;;  %v7647_v62 = vpop.f32.mrf.mxu0 }
 0x1b6   :  { %v3652_v38 = vsel %vm3140_vm10, %v2884_v40, %v3396_v22  ;;  %3781 = vst.msk [vmem:[%s8129_s4 + $0x2e8] sm:$0xff] %vm3687_vm2, %v3524_v15  ;;  %vm3011_vm11 = vcmp.ge.f32.partialorder %v2755_v4, 0.0  ;;  %v3267_v48 = vmul.f32 0.01, %v2755_v4  ;;  %vm3139_vm12 = vcmp.ge.f32.partialorder %v2883_v44, 0.0 }
 0x1b7   :  { %3909 = vst.msk [vmem:[%s8129_s4 + $0x6e8] sm:$0xff] %vm3687_vm2, %v3652_v38  ;;  %v3395_v59 = vmul.f32 0.01, %v2883_v44  ;;  %v2758_v41 = vadd.f32 %v7057_v63, %v2495_v5  ;;  %v2886_v12 = vadd.f32 %v7057_v63, %v2623_v57  ;;  %v2757_v16 = vadd.f32 %v7057_v63, %v2494_v36 }
 0x1b8   :  { %v2885_v10 = vadd.f32 %v7057_v63, %v2622_v33  ;;  %v3523_v53 = vsel %vm3011_vm11, %v2755_v4, %v3267_v48  ;;  %v2497_v37 = vmul.f32 %v7032_v0, %v7283_v1  ;;  %v2625_v47 = vmul.f32 %v7032_v0, %v7285_v46  ;;  %v7617_v46 = vpop.f32.mrf.mxu1 }
 0x1b9   :  { %v3651_v23 = vsel %vm3139_vm12, %v2883_v44, %v3395_v59  ;;  %3780 = vst.msk [vmem:[%s8129_s4 + $0x2e0] sm:$0xff] %vm3687_vm2, %v3523_v53  ;;  %vm3014_vm13 = vcmp.ge.f32.partialorder %v2758_v41, 0.0  ;;  %v3270_v18 = vmul.f32 0.01, %v2758_v41  ;;  %vm3142_vm14 = vcmp.ge.f32.partialorder %v2886_v12, 0.0 }
 0x1ba   :  { %3908 = vst.msk [vmem:[%s8129_s4 + $0x6e0] sm:$0xff] %vm3687_vm2, %v3651_v23  ;;  %v3398_v14 = vmul.f32 0.01, %v2886_v12  ;;  %vm3013_vm15 = vcmp.ge.f32.partialorder %v2757_v16, 0.0  ;;  %v3269_v13 = vmul.f32 0.01, %v2757_v16  ;;  %v2760_v28 = vadd.f32 %v7057_v63, %v2497_v37  ;;  %v7649_v22 = vpop.f32.mrf.mxu1 }
 0x1bb   :  { %vm3141_vm0 = vcmp.ge.f32.partialorder %v2885_v10, 0.0  ;;  %v3397_v1 = vmul.f32 0.01, %v2885_v10  ;;  %v3526_v51 = vsel %vm3014_vm13, %v2758_v41, %v3270_v18  ;;  %v2888_v7 = vadd.f32 %v7057_v63, %v2625_v47  ;;  %v7671_v41 = vpop.f32.mrf.mxu0 }
 0x1bc   :  { %v3654_v55 = vsel %vm3142_vm14, %v2886_v12, %v3398_v14  ;;  %3783 = vst.msk [vmem:[%s8129_s4 + $0x2f8] sm:$0xff] %vm3687_vm2, %v3526_v51  ;;  %v3525_v34 = vsel %vm3013_vm15, %v2757_v16, %v3269_v13  ;;  %v2496_v29 = vmul.f32 %v7032_v0, %v7301_v52  ;;  %v2624_v40 = vmul.f32 %v7032_v0, %v7303_v6  ;;  %v7673_v12 = vpop.f32.mrf.mxu1  ;;  %v7696_v14 = vld [vmem:[%s8127_s2] ss:$0 sm:$0xff] }
 0x1bd   :  { %3911 = vst.msk [vmem:[%s8129_s4 + $0x6f8] sm:$0xff] %vm3687_vm2, %v3654_v55  ;;  %v3653_v32 = vsel %vm3141_vm0, %v2885_v10, %v3397_v1  ;;  %3782 = vst.msk [vmem:[%s8129_s4 + $0x2f0] sm:$0xff] %vm3687_vm2, %v3525_v34  ;;  %vm3016_vm3 = vcmp.ge.f32.partialorder %v2760_v28, 0.0  ;;  %v3272_v9 = vmul.f32 0.01, %v2760_v28  ;;  %vm3144_vm4 = vcmp.ge.f32.partialorder %v2888_v7, 0.0  ;;  %v7702_v51 = vpop.f32.mrf.mxu0 }
 0x1be   :  { %3910 = vst.msk [vmem:[%s8129_s4 + $0x6f0] sm:$0xff] %vm3687_vm2, %v3653_v32  ;;  %v3400_v11 = vmul.f32 0.01, %v2888_v7  ;;  %v2759_v35 = vadd.f32 %v7057_v63, %v2496_v29  ;;  %v2887_v52 = vadd.f32 %v7057_v63, %v2624_v40  ;;  %v2499_v6 = vmul.f32 %v7032_v0, %v7331_v61  ;;  %v7704_v55 = vpop.f32.mrf.mxu1 }
 0x1bf   :  { %v2627_v2 = vmul.f32 %v7032_v0, %v7333_v3  ;;  %v3528_v4 = vsel %vm3016_vm3, %v2760_v28, %v3272_v9  ;;  %v2498_v5 = vmul.f32 %v7032_v0, %v7351_v8  ;;  %v2626_v57 = vmul.f32 %v7032_v0, %v7353_v26 }
 0x1c0   :  { %v3656_v44 = vsel %vm3144_vm4, %v2888_v7, %v3400_v11  ;;  %3785 = vst.msk [vmem:[%s8129_s4 + $0x308] sm:$0xff] %vm3687_vm2, %v3528_v4  ;;  %vm3015_vm5 = vcmp.ge.f32.partialorder %v2759_v35, 0.0  ;;  %v3271_v61 = vmul.f32 0.01, %v2759_v35  ;;  %vm3143_vm6 = vcmp.ge.f32.partialorder %v2887_v52, 0.0 }
 0x1c1   :  { %3913 = vst.msk [vmem:[%s8129_s4 + $0x708] sm:$0xff] %vm3687_vm2, %v3656_v44  ;;  %v3399_v3 = vmul.f32 0.01, %v2887_v52  ;;  %v2762_v15 = vadd.f32 %v7057_v63, %v2499_v6  ;;  %v2890_v8 = vadd.f32 %v7057_v63, %v2627_v2  ;;  %v2761_v26 = vadd.f32 %v7057_v63, %v2498_v5 }
 0x1c2   :  { %v2889_v38 = vadd.f32 %v7057_v63, %v2626_v57  ;;  %v3527_v36 = vsel %vm3015_vm5, %v2759_v35, %v3271_v61  ;;  %v2501_v48 = vmul.f32 %v7032_v0, %v7383_v19  ;;  %v2629_v59 = vmul.f32 %v7032_v0, %v7385_v42 }
 0x1c3   :  { %v3655_v33 = vsel %vm3143_vm6, %v2887_v52, %v3399_v3  ;;  %3784 = vst.msk [vmem:[%s8129_s4 + $0x300] sm:$0xff] %vm3687_vm2, %v3527_v36  ;;  %vm3018_vm7 = vcmp.ge.f32.partialorder %v2762_v15, 0.0  ;;  %v3274_v16 = vmul.f32 0.01, %v2762_v15  ;;  %vm3146_vm8 = vcmp.ge.f32.partialorder %v2890_v8, 0.0 }
 0x1c4   :  { %3912 = vst.msk [vmem:[%s8129_s4 + $0x700] sm:$0xff] %vm3687_vm2, %v3655_v33  ;;  %v3402_v19 = vmul.f32 0.01, %v2890_v8  ;;  %vm3017_vm1 = vcmp.ge.f32.partialorder %v2761_v26, 0.0  ;;  %v3273_v0 = vmul.f32 0.01, %v2761_v26  ;;  %v2764_v23 = vadd.f32 %v7057_v63, %v2501_v48 }
 0x1c5   :  { %vm3145_vm9 = vcmp.ge.f32.partialorder %v2889_v38, 0.0  ;;  %v3401_v42 = vmul.f32 0.01, %v2889_v38  ;;  %v3530_v10 = vsel %vm3018_vm7, %v2762_v15, %v3274_v16  ;;  %v2892_v37 = vadd.f32 %v7057_v63, %v2629_v59 }
 0x1c6   :  { %v3658_v53 = vsel %vm3146_vm8, %v2890_v8, %v3402_v19  ;;  %3787 = vst.msk [vmem:[%s8129_s4 + $0x318] sm:$0xff] %vm3687_vm2, %v3530_v10  ;;  %v3529_v47 = vsel %vm3017_vm1, %v2761_v26, %v3273_v0  ;;  %v2500_v13 = vmul.f32 %v7696_v14, %v7407_v60  ;;  %v2628_v1 = vmul.f32 %v7696_v14, %v7409_v17 }
 0x1c7   :  { %3915 = vst.msk [vmem:[%s8129_s4 + $0x718] sm:$0xff] %vm3687_vm2, %v3658_v53  ;;  %v3657_v18 = vsel %vm3145_vm9, %v2889_v38, %v3401_v42  ;;  %3786 = vst.msk [vmem:[%s8129_s4 + $0x310] sm:$0xff] %vm3687_vm2, %v3529_v47  ;;  %vm3020_vm10 = vcmp.ge.f32.partialorder %v2764_v23, 0.0  ;;  %v3276_v28 = vmul.f32 0.01, %v2764_v23  ;;  %vm3148_vm11 = vcmp.ge.f32.partialorder %v2892_v37, 0.0 }
 0x1c8   :  { %3914 = vst.msk [vmem:[%s8129_s4 + $0x710] sm:$0xff] %vm3687_vm2, %v3657_v18  ;;  %v3404_v60 = vmul.f32 0.01, %v2892_v37  ;;  %v2763_v17 = vadd.f32 %v7057_v63, %v2500_v13  ;;  %v2891_v7 = vadd.f32 %v7057_v63, %v2628_v1  ;;  %v2503_v34 = vmul.f32 %v7696_v14, %v7433_v50 }
 0x1c9   :  { %v2631_v32 = vmul.f32 %v7696_v14, %v7435_v58  ;;  %v3532_v29 = vsel %vm3020_vm10, %v2764_v23, %v3276_v28  ;;  %v2502_v9 = vmul.f32 %v7696_v14, %v7463_v56  ;;  %v2630_v11 = vmul.f32 %v7696_v14, %v7465_v43  ;;  %v7732_v58 = vpop.f32.mrf.mxu0  ;;  %v7734_v56 = vpop.f32.mrf.mxu1  ;;  %v7739_v43 = vld [vmem:[%s8128_s3] ss:$0 sm:$0xff] }
 0x1ca   :  { %v3660_v40 = vsel %vm3148_vm11, %v2892_v37, %v3404_v60  ;;  %3789 = vst.msk [vmem:[%s8129_s4 + $0x328] sm:$0xff] %vm3687_vm2, %v3532_v29  ;;  %vm3019_vm12 = vcmp.ge.f32.partialorder %v2763_v17, 0.0  ;;  %v3275_v63 = vmul.f32 0.01, %v2763_v17  ;;  %vm3147_vm13 = vcmp.ge.f32.partialorder %v2891_v7, 0.0 }
 0x1cb   :  { %3917 = vst.msk [vmem:[%s8129_s4 + $0x728] sm:$0xff] %vm3687_vm2, %v3660_v40  ;;  %v3403_v50 = vmul.f32 0.01, %v2891_v7  ;;  %v2766_v35 = vadd.f32 %v7739_v43, %v2503_v34  ;;  %v2894_v52 = vadd.f32 %v7739_v43, %v2631_v32  ;;  %v2765_v6 = vadd.f32 %v7739_v43, %v2502_v9  ;;  %v7757_v8 = vpop.f32.mrf.mxu0 }
 0x1cc   :  { %v2893_v2 = vadd.f32 %v7739_v43, %v2630_v11  ;;  %v3531_v4 = vsel %vm3019_vm12, %v2763_v17, %v3275_v63  ;;  %v2505_v5 = vmul.f32 %v7696_v14, %v7483_v24  ;;  %v2633_v57 = vmul.f32 %v7696_v14, %v7485_v39  ;;  %v7759_v39 = vpop.f32.mrf.mxu1 }
 0x1cd   :  { %v3659_v44 = vsel %vm3147_vm13, %v2891_v7, %v3403_v50  ;;  %3788 = vst.msk [vmem:[%s8129_s4 + $0x320] sm:$0xff] %vm3687_vm2, %v3531_v4  ;;  %vm3022_vm14 = vcmp.ge.f32.partialorder %v2766_v35, 0.0  ;;  %v3278_v61 = vmul.f32 0.01, %v2766_v35  ;;  %vm3150_vm15 = vcmp.ge.f32.partialorder %v2894_v52, 0.0  ;;  %v7789_v23 = vpop.f32.mrf.mxu0 }
 0x1ce   :  { %3916 = vst.msk [vmem:[%s8129_s4 + $0x720] sm:$0xff] %vm3687_vm2, %v3659_v44  ;;  %v3406_v3 = vmul.f32 0.01, %v2894_v52  ;;  %vm3021_vm0 = vcmp.ge.f32.partialorder %v2765_v6, 0.0  ;;  %v3277_v15 = vmul.f32 0.01, %v2765_v6  ;;  %v2768_v36 = vadd.f32 %v7739_v43, %v2505_v5  ;;  %v7791_v37 = vpop.f32.mrf.mxu1 }
 0x1cf   :  { %vm3149_vm3 = vcmp.ge.f32.partialorder %v2893_v2, 0.0  ;;  %v3405_v24 = vmul.f32 0.01, %v2893_v2  ;;  %v3534_v26 = vsel %vm3022_vm14, %v2766_v35, %v3278_v61  ;;  %v2896_v33 = vadd.f32 %v7739_v43, %v2633_v57  ;;  %v7813_v29 = vpop.f32.mrf.mxu0 }
 0x1d0   :  { %v3662_v38 = vsel %vm3150_vm15, %v2894_v52, %v3406_v3  ;;  %3791 = vst.msk [vmem:[%s8129_s4 + $0x338] sm:$0xff] %vm3687_vm2, %v3534_v26  ;;  %v3533_v48 = vsel %vm3021_vm0, %v2765_v6, %v3277_v15  ;;  %v2504_v16 = vmul.f32 %v7696_v14, %v7515_v25  ;;  %v2632_v19 = vmul.f32 %v7696_v14, %v7517_v27  ;;  %v7815_v40 = vpop.f32.mrf.mxu1 }
 0x1d1   :  { %3919 = vst.msk [vmem:[%s8129_s4 + $0x738] sm:$0xff] %vm3687_vm2, %v3662_v38  ;;  %v3661_v59 = vsel %vm3149_vm3, %v2893_v2, %v3405_v24  ;;  %3790 = vst.msk [vmem:[%s8129_s4 + $0x330] sm:$0xff] %vm3687_vm2, %v3533_v48  ;;  %vm3024_vm4 = vcmp.ge.f32.partialorder %v2768_v36, 0.0  ;;  %v3280_v0 = vmul.f32 0.01, %v2768_v36  ;;  %vm3152_vm5 = vcmp.ge.f32.partialorder %v2896_v33, 0.0  ;;  %v7839_v5 = vpop.f32.mrf.mxu0 }
 0x1d2   :  { %3918 = vst.msk [vmem:[%s8129_s4 + $0x730] sm:$0xff] %vm3687_vm2, %v3661_v59  ;;  %v3408_v42 = vmul.f32 0.01, %v2896_v33  ;;  %v2767_v10 = vadd.f32 %v7739_v43, %v2504_v16  ;;  %v2895_v25 = vadd.f32 %v7739_v43, %v2632_v19  ;;  %v2507_v27 = vmul.f32 %v7696_v14, %v7539_v31  ;;  %v7841_v57 = vpop.f32.mrf.mxu1 }
 0x1d3   :  { %v2635_v53 = vmul.f32 %v7696_v14, %v7541_v21  ;;  %v3536_v47 = vsel %vm3024_vm4, %v2768_v36, %v3280_v0  ;;  %v2506_v13 = vmul.f32 %v7696_v14, %v7565_v30  ;;  %v2634_v1 = vmul.f32 %v7696_v14, %v7567_v54  ;;  %v7869_v48 = vpop.f32.mrf.mxu0 }
 0x1d4   :  { %v3664_v18 = vsel %vm3152_vm5, %v2896_v33, %v3408_v42  ;;  %3793 = vst.msk [vmem:[%s8129_s4 + $0x348] sm:$0xff] %vm3687_vm2, %v3536_v47  ;;  %vm3023_vm6 = vcmp.ge.f32.partialorder %v2767_v10, 0.0  ;;  %v3279_v31 = vmul.f32 0.01, %v2767_v10  ;;  %vm3151_vm7 = vcmp.ge.f32.partialorder %v2895_v25, 0.0 }
 0x1d5   :  { %3921 = vst.msk [vmem:[%s8129_s4 + $0x748] sm:$0xff] %vm3687_vm2, %v3664_v18  ;;  %v3407_v21 = vmul.f32 0.01, %v2895_v25  ;;  %v2770_v28 = vadd.f32 %v7739_v43, %v2507_v27  ;;  %v2898_v30 = vadd.f32 %v7739_v43, %v2635_v53  ;;  %v2769_v54 = vadd.f32 %v7739_v43, %v2506_v13  ;;  %v7889_v18 = vpop.f32.mrf.mxu0 }
 0x1d6   :  { %v2897_v60 = vadd.f32 %v7739_v43, %v2634_v1  ;;  %v3535_v17 = vsel %vm3023_vm6, %v2767_v10, %v3279_v31  ;;  %v2509_v34 = vmul.f32 %v7696_v14, %v7595_v20  ;;  %v2637_v32 = vmul.f32 %v7696_v14, %v7597_v49 }
 0x1d7   :  { %v3663_v7 = vsel %vm3151_vm7, %v2895_v25, %v3407_v21  ;;  %3792 = vst.msk [vmem:[%s8129_s4 + $0x340] sm:$0xff] %vm3687_vm2, %v3535_v17  ;;  %vm3026_vm8 = vcmp.ge.f32.partialorder %v2770_v28, 0.0  ;;  %v3282_v9 = vmul.f32 0.01, %v2770_v28  ;;  %vm3154_vm1 = vcmp.ge.f32.partialorder %v2898_v30, 0.0 }
 0x1d8   :  { %3920 = vst.msk [vmem:[%s8129_s4 + $0x740] sm:$0xff] %vm3687_vm2, %v3663_v7  ;;  %v3410_v20 = vmul.f32 0.01, %v2898_v30  ;;  %vm3025_vm9 = vcmp.ge.f32.partialorder %v2769_v54, 0.0  ;;  %v3281_v49 = vmul.f32 0.01, %v2769_v54  ;;  %v2772_v35 = vadd.f32 %v7739_v43, %v2509_v34 }
 0x1d9   :  { %vm3153_vm10 = vcmp.ge.f32.partialorder %v2897_v60, 0.0  ;;  %v3409_v11 = vmul.f32 0.01, %v2897_v60  ;;  %v3538_v63 = vsel %vm3026_vm8, %v2770_v28, %v3282_v9  ;;  %v2900_v52 = vadd.f32 %v7739_v43, %v2637_v32  ;;  %v7921_v9 = vpop.f32.mrf.mxu0 }
 0x1da   :  { %v3666_v50 = vsel %vm3154_vm1, %v2898_v30, %v3410_v20  ;;  %3795 = vst.msk [vmem:[%s8129_s4 + $0x358] sm:$0xff] %vm3687_vm2, %v3538_v63  ;;  %v3537_v6 = vsel %vm3025_vm9, %v2769_v54, %v3281_v49  ;;  %v2508_v4 = vmul.f32 %v7696_v14, %v7615_v45  ;;  %v2636_v44 = vmul.f32 %v7696_v14, %v7617_v46 }
 0x1db   :  { %3923 = vst.msk [vmem:[%s8129_s4 + $0x758] sm:$0xff] %vm3687_vm2, %v3666_v50  ;;  %v3665_v2 = vsel %vm3153_vm10, %v2897_v60, %v3409_v11  ;;  %3794 = vst.msk [vmem:[%s8129_s4 + $0x350] sm:$0xff] %vm3687_vm2, %v3537_v6  ;;  %vm3028_vm11 = vcmp.ge.f32.partialorder %v2772_v35, 0.0  ;;  %v3284_v61 = vmul.f32 0.01, %v2772_v35  ;;  %vm3156_vm12 = vcmp.ge.f32.partialorder %v2900_v52, 0.0 }
 0x1dc   :  { %3922 = vst.msk [vmem:[%s8129_s4 + $0x750] sm:$0xff] %vm3687_vm2, %v3665_v2  ;;  %v3412_v45 = vmul.f32 0.01, %v2900_v52  ;;  %v2771_v46 = vadd.f32 %v7739_v43, %v2508_v4  ;;  %v2899_v3 = vadd.f32 %v7739_v43, %v2636_v44  ;;  %v2511_v15 = vmul.f32 %v7696_v14, %v7647_v62 }
 0x1dd   :  { %v2639_v24 = vmul.f32 %v7696_v14, %v7649_v22  ;;  %v3540_v26 = vsel %vm3028_vm11, %v2772_v35, %v3284_v61  ;;  %v2510_v36 = vmul.f32 %v7696_v14, %v7671_v41  ;;  %v2638_v33 = vmul.f32 %v7696_v14, %v7673_v12  ;;  %v7871_v41 = vpop.f32.mrf.mxu1  ;;  %v7945_v61 = vpop.f32.mrf.mxu0 }
 0x1de   :  { %v3668_v38 = vsel %vm3156_vm12, %v2900_v52, %v3412_v45  ;;  %3797 = vst.msk [vmem:[%s8129_s4 + $0x368] sm:$0xff] %vm3687_vm2, %v3540_v26  ;;  %vm3027_vm13 = vcmp.ge.f32.partialorder %v2771_v46, 0.0  ;;  %v3283_v62 = vmul.f32 0.01, %v2771_v46  ;;  %vm3155_vm14 = vcmp.ge.f32.partialorder %v2899_v3, 0.0 }
 0x1df   :  { %3925 = vst.msk [vmem:[%s8129_s4 + $0x768] sm:$0xff] %vm3687_vm2, %v3668_v38  ;;  %v3411_v22 = vmul.f32 0.01, %v2899_v3  ;;  %v2774_v12 = vadd.f32 %v7739_v43, %v2511_v15  ;;  %v2902_v59 = vadd.f32 %v7739_v43, %v2639_v24  ;;  %v2773_v16 = vadd.f32 %v7739_v43, %v2510_v36 }
 0x1e0   :  { %v2901_v19 = vadd.f32 %v7739_v43, %v2638_v33  ;;  %v3539_v0 = vsel %vm3027_vm13, %v2771_v46, %v3283_v62  ;;  %v2513_v10 = vmul.f32 %v7696_v14, %v7702_v51  ;;  %v2641_v25 = vmul.f32 %v7696_v14, %v7704_v55  ;;  %v7891_v55 = vpop.f32.mrf.mxu1 }
 0x1e1   :  { %v3667_v42 = vsel %vm3155_vm14, %v2899_v3, %v3411_v22  ;;  %3796 = vst.msk [vmem:[%s8129_s4 + $0x360] sm:$0xff] %vm3687_vm2, %v3539_v0  ;;  %vm3030_vm15 = vcmp.ge.f32.partialorder %v2774_v12, 0.0  ;;  %v3286_v27 = vmul.f32 0.01, %v2774_v12  ;;  %vm3158_vm0 = vcmp.ge.f32.partialorder %v2902_v59, 0.0 }
 0x1e2   :  { %3924 = vst.msk [vmem:[%s8129_s4 + $0x760] sm:$0xff] %vm3687_vm2, %v3667_v42  ;;  %v3414_v53 = vmul.f32 0.01, %v2902_v59  ;;  %vm3029_vm3 = vcmp.ge.f32.partialorder %v2773_v16, 0.0  ;;  %v3285_v47 = vmul.f32 0.01, %v2773_v16  ;;  %v2776_v31 = vadd.f32 %v7739_v43, %v2513_v10  ;;  %v7923_v20 = vpop.f32.mrf.mxu1 }
 0x1e3   :  { %vm3157_vm4 = vcmp.ge.f32.partialorder %v2901_v19, 0.0  ;;  %v3413_v51 = vmul.f32 0.01, %v2901_v19  ;;  %v3542_v13 = vsel %vm3030_vm15, %v2774_v12, %v3286_v27  ;;  %v2904_v21 = vadd.f32 %v7739_v43, %v2641_v25  ;;  %v4654_v12 = vpop.f32.mrf.mxu0 }
 0x1e4   :  { %v3670_v1 = vsel %vm3158_vm0, %v2902_v59, %v3414_v53  ;;  %3799 = vst.msk [vmem:[%s8129_s4 + $0x378] sm:$0xff] %vm3687_vm2, %v3542_v13  ;;  %v3541_v28 = vsel %vm3029_vm3, %v2773_v16, %v3285_v47  ;;  %v2512_v54 = vmul.f32 %v7696_v14, %v7732_v58  ;;  %v2640_v60 = vmul.f32 %v7696_v14, %v7734_v56  ;;  %v7947_v45 = vpop.f32.mrf.mxu1 }
 0x1e5   :  { %3927 = vst.msk [vmem:[%s8129_s4 + $0x778] sm:$0xff] %vm3687_vm2, %v3670_v1  ;;  %v3669_v30 = vsel %vm3157_vm4, %v2901_v19, %v3413_v51  ;;  %3798 = vst.msk [vmem:[%s8129_s4 + $0x370] sm:$0xff] %vm3687_vm2, %v3541_v28  ;;  %vm3032_vm5 = vcmp.ge.f32.partialorder %v2776_v31, 0.0  ;;  %v3288_v17 = vmul.f32 0.01, %v2776_v31  ;;  %vm3160_vm6 = vcmp.ge.f32.partialorder %v2904_v21, 0.0  ;;  %v1724_v47 = vpop.f32.mrf.mxu0 }
 0x1e6   :  { %3926 = vst.msk [vmem:[%s8129_s4 + $0x770] sm:$0xff] %vm3687_vm2, %v3669_v30  ;;  %v3416_v7 = vmul.f32 0.01, %v2904_v21  ;;  %v2775_v34 = vadd.f32 %v7739_v43, %v2512_v54  ;;  %v2903_v58 = vadd.f32 %v7739_v43, %v2640_v60  ;;  %v2515_v56 = vmul.f32 %v7696_v14, %v7757_v8  ;;  %v4846_v59 = vpop.f32.mrf.mxu1 }
 0x1e7   :  { %v2643_v32 = vmul.f32 %v7696_v14, %v7759_v39  ;;  %v3544_v49 = vsel %vm3032_vm5, %v2776_v31, %v3288_v17  ;;  %v2514_v63 = vmul.f32 %v7696_v14, %v7789_v23  ;;  %v2642_v50 = vmul.f32 %v7696_v14, %v7791_v37 }
 0x1e8   :  { %v3672_v11 = vsel %vm3160_vm6, %v2904_v21, %v3416_v7  ;;  %3801 = vst.msk [vmem:[%s8129_s4 + $0x388] sm:$0xff] %vm3687_vm2, %v3544_v49  ;;  %vm3031_vm7 = vcmp.ge.f32.partialorder %v2775_v34, 0.0  ;;  %v3287_v8 = vmul.f32 0.01, %v2775_v34  ;;  %vm3159_vm8 = vcmp.ge.f32.partialorder %v2903_v58, 0.0  ;;  %v2364_v51 = vpop.f32.mrf.mxu1 }
 0x1e9   :  { %3929 = vst.msk [vmem:[%s8129_s4 + $0x788] sm:$0xff] %vm3687_vm2, %v3672_v11  ;;  %v3415_v39 = vmul.f32 0.01, %v2903_v58  ;;  %v2778_v35 = vadd.f32 %v7739_v43, %v2515_v56  ;;  %v2906_v23 = vadd.f32 %v7739_v43, %v2643_v32  ;;  %v2777_v37 = vadd.f32 %v7739_v43, %v2514_v63 }
 0x1ea   :  { %v2905_v52 = vadd.f32 %v7739_v43, %v2642_v50  ;;  %v3543_v6 = vsel %vm3031_vm7, %v2775_v34, %v3287_v8  ;;  %v2517_v4 = vmul.f32 %v7696_v14, %v7813_v29  ;;  %v2645_v44 = vmul.f32 %v7696_v14, %v7815_v40  ;;  %v4657_v34 = vpop.f32.mrf.mxu0 }
 0x1eb   :  { %v3671_v2 = vsel %vm3159_vm8, %v2903_v58, %v3415_v39  ;;  %3800 = vst.msk [vmem:[%s8129_s4 + $0x380] sm:$0xff] %vm3687_vm2, %v3543_v6  ;;  %vm3034_vm1 = vcmp.ge.f32.partialorder %v2778_v35, 0.0  ;;  %v3290_v46 = vmul.f32 0.01, %v2778_v35  ;;  %vm3162_vm9 = vcmp.ge.f32.partialorder %v2906_v23, 0.0  ;;  %v4849_v58 = vpop.f32.mrf.mxu1 }
 0x1ec   :  { %3928 = vst.msk [vmem:[%s8129_s4 + $0x780] sm:$0xff] %vm3687_vm2, %v3671_v2  ;;  %v3418_v29 = vmul.f32 0.01, %v2906_v23  ;;  %vm3033_vm10 = vcmp.ge.f32.partialorder %v2777_v37, 0.0  ;;  %v3289_v40 = vmul.f32 0.01, %v2777_v37  ;;  %v2780_v26 = vadd.f32 %v7739_v43, %v2517_v4  ;;  %v1734_v6 = vpop.f32.mrf.mxu0 }
 0x1ed   :  { %vm3161_vm11 = vcmp.ge.f32.partialorder %v2905_v52, 0.0  ;;  %v3417_v3 = vmul.f32 0.01, %v2905_v52  ;;  %v3546_v15 = vsel %vm3034_vm1, %v2778_v35, %v3290_v46  ;;  %v2908_v38 = vadd.f32 %v7739_v43, %v2645_v44  ;;  %v2374_v2 = vpop.f32.mrf.mxu1 }
 0x1ee   :  { %v3674_v24 = vsel %vm3162_vm9, %v2906_v23, %v3418_v29  ;;  %3803 = vst.msk [vmem:[%s8129_s4 + $0x398] sm:$0xff] %vm3687_vm2, %v3546_v15  ;;  %v3545_v36 = vsel %vm3033_vm10, %v2777_v37, %v3289_v40  ;;  %v2516_v62 = vmul.f32 %v7696_v14, %v7839_v5  ;;  %v2644_v22 = vmul.f32 %v7696_v14, %v7841_v57 }
 0x1ef   :  { %3931 = vst.msk [vmem:[%s8129_s4 + $0x798] sm:$0xff] %vm3687_vm2, %v3674_v24  ;;  %v3673_v33 = vsel %vm3161_vm11, %v2905_v52, %v3417_v3  ;;  %3802 = vst.msk [vmem:[%s8129_s4 + $0x390] sm:$0xff] %vm3687_vm2, %v3545_v36  ;;  %vm3036_vm12 = vcmp.ge.f32.partialorder %v2780_v26, 0.0  ;;  %v3292_v16 = vmul.f32 0.01, %v2780_v26  ;;  %vm3164_vm13 = vcmp.ge.f32.partialorder %v2908_v38, 0.0 }
 0x1f0   :  { %3930 = vst.msk [vmem:[%s8129_s4 + $0x790] sm:$0xff] %vm3687_vm2, %v3673_v33  ;;  %v3420_v19 = vmul.f32 0.01, %v2908_v38  ;;  %v2779_v5 = vadd.f32 %v7739_v43, %v2516_v62  ;;  %v2907_v57 = vadd.f32 %v7739_v43, %v2644_v22  ;;  %v2519_v0 = vmul.f32 %v7696_v14, %v7869_v48  ;;  %v4660_v62 = vpop.f32.mrf.mxu0  ;;  %v4852_v22 = vpop.f32.mrf.mxu1 }
 0x1f1   :  { %v2647_v42 = vmul.f32 %v7696_v14, %v7871_v41  ;;  %v3548_v10 = vsel %vm3036_vm12, %v2780_v26, %v3292_v16  ;;  %v2518_v27 = vmul.f32 %v7696_v14, %v7889_v18  ;;  %v2646_v53 = vmul.f32 %v7696_v14, %v7891_v55 }
 0x1f2   :  { %v3676_v25 = vsel %vm3164_vm13, %v2908_v38, %v3420_v19  ;;  %3805 = vst.msk [vmem:[%s8129_s4 + $0x3a8] sm:$0xff] %vm3687_vm2, %v3548_v10  ;;  %vm3035_vm14 = vcmp.ge.f32.partialorder %v2779_v5, 0.0  ;;  %v3291_v48 = vmul.f32 0.01, %v2779_v5  ;;  %vm3163_vm15 = vcmp.ge.f32.partialorder %v2907_v57, 0.0 }
 0x1f3   :  { %3933 = vst.msk [vmem:[%s8129_s4 + $0x7a8] sm:$0xff] %vm3687_vm2, %v3676_v25  ;;  %v3419_v41 = vmul.f32 0.01, %v2907_v57  ;;  %v2782_v18 = vadd.f32 %v7739_v43, %v2519_v0  ;;  %v2910_v55 = vadd.f32 %v7739_v43, %v2647_v42  ;;  %v2781_v13 = vadd.f32 %v7739_v43, %v2518_v27 }
 0x1f4   :  { %v2909_v1 = vadd.f32 %v7739_v43, %v2646_v53  ;;  %v3547_v31 = vsel %vm3035_vm14, %v2779_v5, %v3291_v48  ;;  %v2521_v28 = vmul.f32 %v7696_v14, %v7921_v9  ;;  %v2649_v30 = vmul.f32 %v7696_v14, %v7923_v20  ;;  %v1744_v48 = vpop.f32.mrf.mxu0 }
 0x1f5   :  { %v3675_v21 = vsel %vm3163_vm15, %v2907_v57, %v3419_v41  ;;  %3804 = vst.msk [vmem:[%s8129_s4 + $0x3a0] sm:$0xff] %vm3687_vm2, %v3547_v31  ;;  %vm3038_vm0 = vcmp.ge.f32.partialorder %v2782_v18, 0.0  ;;  %v3294_v54 = vmul.f32 0.01, %v2782_v18  ;;  %vm3166_vm3 = vcmp.ge.f32.partialorder %v2910_v55, 0.0  ;;  %v2384_v41 = vpop.f32.mrf.mxu1 }
 0x1f6   :  { %3932 = vst.msk [vmem:[%s8129_s4 + $0x7a0] sm:$0xff] %vm3687_vm2, %v3675_v21  ;;  %v3422_v60 = vmul.f32 0.01, %v2910_v55  ;;  %vm3037_vm4 = vcmp.ge.f32.partialorder %v2781_v13, 0.0  ;;  %v3293_v17 = vmul.f32 0.01, %v2781_v13  ;;  %v2784_v9 = vadd.f32 %v7739_v43, %v2521_v28 }
 0x1f7   :  { %vm3165_vm5 = vcmp.ge.f32.partialorder %v2909_v1, 0.0  ;;  %v3421_v7 = vmul.f32 0.01, %v2909_v1  ;;  %v3550_v56 = vsel %vm3038_vm0, %v2782_v18, %v3294_v54  ;;  %v2912_v20 = vadd.f32 %v7739_v43, %v2649_v30 }
 0x1f8   :  { %v3678_v32 = vsel %vm3166_vm3, %v2910_v55, %v3422_v60  ;;  %3807 = vst.msk [vmem:[%s8129_s4 + $0x3b8] sm:$0xff] %vm3687_vm2, %v3550_v56  ;;  %v3549_v49 = vsel %vm3037_vm4, %v2781_v13, %v3293_v17  ;;  %v2520_v63 = vmul.f32 %v7696_v14, %v7945_v61  ;;  %v2648_v50 = vmul.f32 %v7696_v14, %v7947_v45 }
 0x1f9   :  { %3935 = vst.msk [vmem:[%s8129_s4 + $0x7b8] sm:$0xff] %vm3687_vm2, %v3678_v32  ;;  %v3677_v11 = vsel %vm3165_vm5, %v2909_v1, %v3421_v7  ;;  %3806 = vst.msk [vmem:[%s8129_s4 + $0x3b0] sm:$0xff] %vm3687_vm2, %v3549_v49  ;;  %vm3040_vm6 = vcmp.ge.f32.partialorder %v2784_v9, 0.0  ;;  %v3296_v8 = vmul.f32 0.01, %v2784_v9  ;;  %vm3168_vm7 = vcmp.ge.f32.partialorder %v2912_v20, 0.0 }
 0x1fa   :  { %3934 = vst.msk [vmem:[%s8129_s4 + $0x7b0] sm:$0xff] %vm3687_vm2, %v3677_v11  ;;  %v3424_v39 = vmul.f32 0.01, %v2912_v20  ;;  %v2783_v35 = vadd.f32 %v7739_v43, %v2520_v63  ;;  %v2911_v23 = vadd.f32 %v7739_v43, %v2648_v50  ;;  %v2523_v37 = vmul.f32 %v7696_v14, %v4654_v12 }
 0x1fb   :  { %v2651_v52 = vmul.f32 %v7696_v14, %v4846_v59  ;;  %v3552_v4 = vsel %vm3040_vm6, %v2784_v9, %v3296_v8  ;;  %v2522_v61 = vmul.f32 %v7696_v14, %v1724_v47  ;;  %v2650_v45 = vmul.f32 %v7696_v14, %v2364_v51 }
 0x1fc   :  { %v3680_v44 = vsel %vm3168_vm7, %v2912_v20, %v3424_v39  ;;  %3809 = vst.msk [vmem:[%s8129_s4 + $0x3c8] sm:$0xff] %vm3687_vm2, %v3552_v4  ;;  %vm3039_vm8 = vcmp.ge.f32.partialorder %v2783_v35, 0.0  ;;  %v3295_v46 = vmul.f32 0.01, %v2783_v35  ;;  %vm3167_vm1 = vcmp.ge.f32.partialorder %v2911_v23, 0.0 }
 0x1fd   :  { %3937 = vst.msk [vmem:[%s8129_s4 + $0x7c8] sm:$0xff] %vm3687_vm2, %v3680_v44  ;;  %v3423_v29 = vmul.f32 0.01, %v2911_v23  ;;  %v2786_v40 = vadd.f32 %v7739_v43, %v2523_v37  ;;  %v2914_v3 = vadd.f32 %v7739_v43, %v2651_v52  ;;  %v2785_v15 = vadd.f32 %v7739_v43, %v2522_v61 }
 0x1fe   :  { %v2913_v24 = vadd.f32 %v7739_v43, %v2650_v45  ;;  %v3551_v26 = vsel %vm3039_vm8, %v2783_v35, %v3295_v46  ;;  %v2525_v36 = vmul.f32 %v7696_v14, %v4657_v34  ;;  %v2653_v33 = vmul.f32 %v7696_v14, %v4849_v58 }
 0x1ff   :  { %v3679_v38 = vsel %vm3167_vm1, %v2911_v23, %v3423_v29  ;;  %3808 = vst.msk [vmem:[%s8129_s4 + $0x3c0] sm:$0xff] %vm3687_vm2, %v3551_v26  ;;  %vm3042_vm9 = vcmp.ge.f32.partialorder %v2786_v40, 0.0  ;;  %v3298_v12 = vmul.f32 0.01, %v2786_v40  ;;  %vm3170_vm10 = vcmp.ge.f32.partialorder %v2914_v3, 0.0 }
 0x200   :  { %3936 = vst.msk [vmem:[%s8129_s4 + $0x7c0] sm:$0xff] %vm3687_vm2, %v3679_v38  ;;  %v3426_v59 = vmul.f32 0.01, %v2914_v3  ;;  %vm3041_vm11 = vcmp.ge.f32.partialorder %v2785_v15, 0.0  ;;  %v3297_v16 = vmul.f32 0.01, %v2785_v15  ;;  %v2788_v0 = vadd.f32 %v7739_v43, %v2525_v36 }
 0x201   :  { %vm3169_vm12 = vcmp.ge.f32.partialorder %v2913_v24, 0.0  ;;  %v3425_v19 = vmul.f32 0.01, %v2913_v24  ;;  %v3554_v5 = vsel %vm3042_vm9, %v2786_v40, %v3298_v12  ;;  %v2916_v42 = vadd.f32 %v7739_v43, %v2653_v33 }
 0x202   :  { %v3682_v57 = vsel %vm3170_vm10, %v2914_v3, %v3426_v59  ;;  %3811 = vst.msk [vmem:[%s8129_s4 + $0x3d8] sm:$0xff] %vm3687_vm2, %v3554_v5  ;;  %v3553_v10 = vsel %vm3041_vm11, %v2785_v15, %v3297_v16  ;;  %v2524_v27 = vmul.f32 %v7696_v14, %v1734_v6  ;;  %v2652_v53 = vmul.f32 %v7696_v14, %v2374_v2 }
 0x203   :  { %3939 = vst.msk [vmem:[%s8129_s4 + $0x7d8] sm:$0xff] %vm3687_vm2, %v3682_v57  ;;  %v3681_v25 = vsel %vm3169_vm12, %v2913_v24, %v3425_v19  ;;  %3810 = vst.msk [vmem:[%s8129_s4 + $0x3d0] sm:$0xff] %vm3687_vm2, %v3553_v10  ;;  %vm3044_vm13 = vcmp.ge.f32.partialorder %v2788_v0, 0.0  ;;  %v3300_v47 = vmul.f32 0.01, %v2788_v0  ;;  %vm3172_vm14 = vcmp.ge.f32.partialorder %v2916_v42, 0.0 }
 0x204   :  { %3938 = vst.msk [vmem:[%s8129_s4 + $0x7d0] sm:$0xff] %vm3687_vm2, %v3681_v25  ;;  %v3428_v51 = vmul.f32 0.01, %v2916_v42  ;;  %v2787_v18 = vadd.f32 %v7739_v43, %v2524_v27  ;;  %v2915_v55 = vadd.f32 %v7739_v43, %v2652_v53  ;;  %v2527_v13 = vmul.f32 %v7696_v14, %v4660_v62 }
 0x205   :  { %v2655_v1 = vmul.f32 %v7696_v14, %v4852_v22  ;;  %v3556_v31 = vsel %vm3044_vm13, %v2788_v0, %v3300_v47  ;;  %v2526_v28 = vmul.f32 %v7696_v14, %v1744_v48  ;;  %v2654_v30 = vmul.f32 %v7696_v14, %v2384_v41 }
 0x206   :  { %v3684_v21 = vsel %vm3172_vm14, %v2916_v42, %v3428_v51  ;;  %3813 = vst.msk [vmem:[%s8129_s4 + $0x3e8] sm:$0xff] %vm3687_vm2, %v3556_v31  ;;  %vm3043_vm15 = vcmp.ge.f32.partialorder %v2787_v18, 0.0  ;;  %v3299_v54 = vmul.f32 0.01, %v2787_v18  ;;  %vm3171_vm0 = vcmp.ge.f32.partialorder %v2915_v55, 0.0 }
 0x207   :  { %3941 = vst.msk [vmem:[%s8129_s4 + $0x7e8] sm:$0xff] %vm3687_vm2, %v3684_v21  ;;  %v3427_v60 = vmul.f32 0.01, %v2915_v55  ;;  %v2790_v17 = vadd.f32 %v7739_v43, %v2527_v13  ;;  %v2918_v7 = vadd.f32 %v7739_v43, %v2655_v1  ;;  %v2789_v14 = vadd.f32 %v7739_v43, %v2526_v28 }
 0x208   :  { %v2917_v34 = vadd.f32 %v7739_v43, %v2654_v30  ;;  %v3555_v58 = vsel %vm3043_vm15, %v2787_v18, %v3299_v54 }
 0x209   :  { %v3683_v56 = vsel %vm3171_vm0, %v2915_v55, %v3427_v60  ;;  %3812 = vst.msk [vmem:[%s8129_s4 + $0x3e0] sm:$0xff] %vm3687_vm2, %v3555_v58  ;;  %vm3046_vm3 = vcmp.ge.f32.partialorder %v2790_v17, 0.0  ;;  %v3302_v32 = vmul.f32 0.01, %v2790_v17  ;;  %vm3174_vm4 = vcmp.ge.f32.partialorder %v2918_v7, 0.0 }
 0x20a   :  { %3940 = vst.msk [vmem:[%s8129_s4 + $0x7e0] sm:$0xff] %vm3687_vm2, %v3683_v56  ;;  %v3430_v9 = vmul.f32 0.01, %v2918_v7  ;;  %vm3045_vm5 = vcmp.ge.f32.partialorder %v2789_v14, 0.0  ;;  %v3301_v20 = vmul.f32 0.01, %v2789_v14 }
 0x20b   :  { %vm3173_vm6 = vcmp.ge.f32.partialorder %v2917_v34, 0.0  ;;  %v3429_v43 = vmul.f32 0.01, %v2917_v34  ;;  %v3558_v49 = vsel %vm3046_vm3, %v2790_v17, %v3302_v32 }
 0x20c   :  { %v3686_v11 = vsel %vm3174_vm4, %v2918_v7, %v3430_v9  ;;  %3815 = vst.msk [vmem:[%s8129_s4 + $0x3f8] sm:$0xff] %vm3687_vm2, %v3558_v49  ;;  %v3557_v63 = vsel %vm3045_vm5, %v2789_v14, %v3301_v20 }
 0x20d   :  { %3943 = vst.msk [vmem:[%s8129_s4 + $0x7f8] sm:$0xff] %vm3687_vm2, %v3686_v11  ;;  %v3685_v50 = vsel %vm3173_vm6, %v2917_v34, %v3429_v43  ;;  %3814 = vst.msk [vmem:[%s8129_s4 + $0x3f0] sm:$0xff] %vm3687_vm2, %v3557_v63 }
 0x20e   :  { %3942 = vst.msk [vmem:[%s8129_s4 + $0x7f0] sm:$0xff] %vm3687_vm2, %v3685_v50 }

</bundles_post_ra>
